<compile_context>
chip_gen: v7x
topology: tpu7x:2x2x1
jax: 0.10.0
libtpu: 0.0.40
codegen_flags: <defaults>
</compile_context>

<pallas_src>
import functools

import jax
import jax.numpy as jnp
from jax.experimental import pallas as pl
from jax.experimental.pallas import tpu as pltpu


def _round_up(x, m):
    return (x + m - 1) // m * m


def _multi_reward_kernel(x_ref, a_ref, wb_ref, wab_ref, o_ref, *, n_stocks):
    # Per grid step:
    #   x_ref   : (tb*N, dtot)  bf16  state rows, row index = t_local*N + s
    #   a_ref   : (tb*N, 1)     f32   action per row
    #   wb_ref  : (dtot, fhp)   bf16  block-diagonal encoder weights (softmax folded)
    #   wab_ref : (8, fhp)      f32   row0 = action-weight row, row1 = bias (softmax folded)
    #   o_ref   : (1, g, 128)   f32   packed rewards, g = tb // 128
    fhp = wb_ref.shape[1]
    g = o_ref.shape[1]

    # One MXU matmul for every encoder; the action column enters as a rank-1
    # update so the concatenated [data, action] input is never materialized.
    h = jnp.dot(x_ref[...], wb_ref[...], preferred_element_type=jnp.float32)
    h = h + a_ref[...] * wab_ref[0:1, :] + wab_ref[1:2, :]
    h = jnp.maximum(h, 0.0)                       # ReLU (mix weights already folded in)

    # Lane reduce first (padding columns are zero, so they contribute nothing).
    # The reshape only splits the sublane dim at a multiple of 8 -> free.
    h3 = h.reshape(g, 128 * n_stocks, fhp)
    rowsum = jnp.sum(h3, axis=-1)                 # (g, 128*N), batch-chunk rows on lanes

    # Mean over stocks + pack 128 rewards per vreg in one small MXU matmul:
    #   pool[k, q] = 1/N  iff  k // N == q      (k = t_local*N + s within a chunk)
    # Built per step from iotas (no HBM traffic, no scratch -> safe under
    # "parallel" megacore splitting of the grid).
    k_idx = jax.lax.broadcasted_iota(jnp.int32, (128 * n_stocks, 128), 0)
    q_idx = jax.lax.broadcasted_iota(jnp.int32, (128 * n_stocks, 128), 1)
    sel = (k_idx >= q_idx * n_stocks) & (k_idx < (q_idx + 1) * n_stocks)
    pool = jnp.where(sel, jnp.float32(1.0 / n_stocks), jnp.float32(0.0))
    packed = jnp.dot(rowsum, pool, preferred_element_type=jnp.float32)   # (g, 128)

    o_ref[...] = packed[None, :, :]               # lane-dense, unmasked stores


def _pick_batch_tile(batch_pad, n_stocks, dtot, fh_pad,
                     target_rows=8192, vmem_budget=12 * 1024 * 1024):
    """tb = batch rows per tile.  Multiple of 128 (dense 128-wide reward pack),
    divides batch_pad, capped by a row/VMEM budget that is safe on every
    generation (incl. v7x's 64 MiB), and kept small enough that the grid has
    >= 2 steps when possible (v7x megacore sharding + pipeline overlap)."""
    n_blocks = batch_pad // 128
    # Rough per-state-row VMEM upper bound: lane-padded bf16 x + lane-padded
    # f32 action (both double-buffered by the pipeline) + the f32 h value.
    bytes_per_row = 2 * 2 * max(dtot, 128) + 2 * 4 * 128 + 4 * fh_pad
    row_cap = min(target_rows, max(128 * n_stocks, vmem_budget // bytes_per_row))
    cap = max(1, row_cap // (128 * n_stocks))
    if n_blocks >= 2:
        cap = min(cap, n_blocks // 2)             # keep >= 2 tiles when possible
    cap = max(1, min(cap, n_blocks))
    best = 1
    for k in range(1, cap + 1):
        if n_blocks % k == 0:
            best = k
    return 128 * best


def multi_reward_forward(state2, action2, wb, wab, batch, n_stocks):
    """Fused forward.  state2: (batch*N, dtot) bf16, action2: (batch*N, 1) f32,
    wb: (dtot, fhp) bf16 (softmax-folded), wab: (8, fhp) f32 (row0 = action
    weight, row1 = bias, softmax-folded).  Returns (batch, 1) f32 rewards."""
    dtot = state2.shape[1]
    fh_pad = wb.shape[1]

    # Pad the batch to a multiple of 128 so the packed-output tiling is always
    # legal (replaces the old "single huge tile" fallback for awkward batches).
    batch_pad = _round_up(batch, 128)
    if batch_pad != batch:
        extra = (batch_pad - batch) * n_stocks
        state2 = jnp.pad(state2, ((0, extra), (0, 0)))
        action2 = jnp.pad(action2, ((0, extra), (0, 0)))

    tb = _pick_batch_tile(batch_pad, n_stocks, dtot, fh_pad)
    g = tb // 128
    num_tiles = batch_pad // tb
    rows_tile = tb * n_stocks
    rows_pad = batch_pad * n_stocks

    kern = functools.partial(_multi_reward_kernel, n_stocks=n_stocks)

    flops = 2 * rows_pad * dtot * fh_pad + 2 * rows_pad * 128 + 4 * rows_pad * fh_pad
    bytes_accessed = (rows_pad * dtot * 2 + rows_pad * 4
                      + dtot * fh_pad * 2 + 8 * fh_pad * 4 + batch_pad * 4)

    out = pl.pallas_call(
        kern,
        out_shape=jax.ShapeDtypeStruct((num_tiles, g, 128), jnp.float32),
        grid_spec=pltpu.PrefetchScalarGridSpec(
            num_scalar_prefetch=0,
            grid=(num_tiles,),
            in_specs=[
                pl.BlockSpec((rows_tile, dtot), lambda i: (i, 0)),   # state rows (bf16)
                pl.BlockSpec((rows_tile, 1), lambda i: (i, 0)),      # action rows (f32)
                pl.BlockSpec((dtot, fh_pad), lambda i: (0, 0)),      # packed weights (fetched once)
                pl.BlockSpec((8, fh_pad), lambda i: (0, 0)),         # action row + bias
            ],
            out_specs=pl.BlockSpec((1, g, 128), lambda i: (i, 0, 0)),
        ),
        compiler_params=pltpu.CompilerParams(
            dimension_semantics=("parallel",),      # shard batch tiles across TCs (v7x)
            vmem_limit_bytes=32 * 1024 * 1024,      # tiles are sized well below this
        ),
        cost_estimate=pl.CostEstimate(
            flops=int(flops), transcendentals=0, bytes_accessed=int(bytes_accessed)),
    )(state2, action2, wb, wab)

    # (num_tiles, g, 128) in row-major order IS batch order -> cheap reshape,
    # then drop the padded batch rows.
    return out.reshape(batch_pad)[:batch].reshape(batch, 1)


class MultiRewardNetworkPallas:
    """JAX/Pallas port of MultiRewardNetwork (deterministic in-script init)."""

    def __init__(self, input_dim, num_stocks, hidden_dim=64,
                 ind_yn=False, pos_yn=False, neg_yn=False, key=None):
        self.feature_dims = {
            "base": input_dim,
            "ind": num_stocks if ind_yn else 0,
            "pos": num_stocks if pos_yn else 0,
            "neg": num_stocks if neg_yn else 0,
        }
        self.hidden_dim = hidden_dim
        if key is None:
            key = jax.random.PRNGKey(0)

        active = [(f, d) for f, d in self.feature_dims.items() if d > 0]
        self.num_rewards = len(active)
        self.total_dim = sum(d for _, d in active)
        H = hidden_dim
        F = self.num_rewards
        self.fh = F * H
        self.fh_pad = max(128, _round_up(self.fh, 128))  # lane-align (zero-padded cols)

        # Per-feature params (for the pure-JAX reference) + packed blocks for
        # the fused kernel: one zero-padded block-diagonal (total_dim, fhp)
        # feature weight, plus an (8, fhp) constant holding the action-weight
        # row (row 0) and the bias (row 1).
        self.params = {}
        wb = jnp.zeros((self.total_dim, self.fh_pad), jnp.float32)
        wab = jnp.zeros((8, self.fh_pad), jnp.float32)
        ptr = 0
        for j, (feat, dim) in enumerate(active):
            key, kw, kb = jax.random.split(key, 3)
            fan_in = dim + 1
            bound = 1.0 / (fan_in ** 0.5)
            # stored transposed relative to torch nn.Linear: (in, out)
            w = jax.random.uniform(kw, (fan_in, H), jnp.float32,
                                   minval=-bound, maxval=bound)
            b = jax.random.uniform(kb, (1, H), jnp.float32,
                                   minval=-bound, maxval=bound)
            self.params[feat] = (w, b)
            wb = wb.at[ptr:ptr + dim, j * H:(j + 1) * H].set(w[:dim])
            wab = wab.at[0:1, j * H:(j + 1) * H].set(w[dim:dim + 1])
            wab = wab.at[1:2, j * H:(j + 1) * H].set(b)
            ptr += dim
        self.block_weight = wb
        self.wab = wab
        # nn.Parameter(torch.ones(num_rewards))
        self.mix_weights = jnp.ones((F,), jnp.float32)

    def __call__(self, state, action):
        # state: (B, N, sum(active feature dims)), action: (B, N)
        # NOTE: torch's data.squeeze() is a no-op for the intended (B, N, dim)
        # layout with B, N, dim > 1; explicit reshapes keep singleton batches safe.
        batch, n_stocks = action.shape
        # Fold softmax mixing into the encoder params (valid: softmax weights > 0
        # and s * relu(z) == relu(s * z)); padding columns stay zero.
        soft = jax.nn.softmax(self.mix_weights)
        lane = jnp.zeros((self.fh_pad,), jnp.float32)
        lane = lane.at[: self.fh].set(jnp.repeat(soft, self.hidden_dim))
        wb = (self.block_weight * lane[None, :]).astype(jnp.bfloat16)
        wab = self.wab * lane[None, :]
        # bf16 state halves the dominant HBM read (cast is a no-op if the caller
        # already supplies bf16 state); matmul still accumulates in f32.
        state2 = state.reshape(batch * n_stocks, self.total_dim).astype(jnp.bfloat16)
        action2 = action.reshape(batch * n_stocks, 1).astype(jnp.float32)
        return multi_reward_forward(state2, action2, wb, wab, batch, n_stocks)


def reference_forward(net, state, action):
    """Pure-JAX f32 reference mirroring the PyTorch forward."""
    ptr = 0
    rewards = []
    for feat, dim in net.feature_dims.items():
        if dim <= 0:
            continue
        data = state[..., ptr:ptr + dim]
        ptr += dim
        fused = jnp.concatenate([data, action[..., None]], axis=-1)
        w, b = net.params[feat]
        enc = jax.nn.relu(fused @ w + b).mean(axis=1)
        rewards.append(enc.sum(axis=-1, keepdims=True))
    soft = jax.nn.softmax(net.mix_weights)
    return sum(sw * r for sw, r in zip(soft, rewards))


if __name__ == "__main__":
    B, N, INPUT_DIM, HIDDEN = 2, 8, 4, 32   # batch, num_stocks, input_dim, hidden_dim

    net = MultiRewardNetworkPallas(INPUT_DIM, N, hidden_dim=HIDDEN,
                                   ind_yn=True,  # active feats: base (4), ind (8)
                                   key=jax.random.PRNGKey(42))
    total_dim = net.total_dim                                        # 4 + 8 = 12

    key = jax.random.PRNGKey(0)
    k1, k2 = jax.random.split(key)
    state = jax.random.normal(k1, (B, N, total_dim), jnp.float32)
    action = jax.random.normal(k2, (B, N), jnp.float32)

    out = jax.block_until_ready(net(state, action))

    ref = reference_forward(net, state, action)
    assert out.shape == (B, 1), out.shape
    # Kernel feeds bf16 activations/weights to the MXU (f32 accumulation), so
    # compare against the f32 reference with bf16-appropriate tolerances.
    assert jnp.allclose(out, ref, atol=5e-2, rtol=5e-2), (out, ref)

    print("KERNEL_OK")
</pallas_src>

<mosaic_0001>
module attributes {stable_mosaic.version = 11 : i64} {
  func.func @_multi_reward_kernel(%arg0: i32, %arg1: memref<1024x12xbf16, #tpu.memory_space<vmem>>, %arg2: memref<1024x1xf32, #tpu.memory_space<vmem>>, %arg3: memref<12x128xbf16, #tpu.memory_space<vmem>>, %arg4: memref<8x128xf32, #tpu.memory_space<vmem>>, %arg5: memref<1x1x128xf32, #tpu.memory_space<vmem>>) attributes {dimension_semantics = [#tpu.dimension_semantics<parallel>], iteration_bounds = array<i64: 1>, scalar_prefetch = 0 : i64, scratch_operands = 0 : i64, tpu.core_type = #tpu.core_type<tc>, window_params = [{transform_indices = @transform_0, window_bounds = array<i64: 1024, 12>}, {transform_indices = @transform_1, window_bounds = array<i64: 1024, 1>}, {pipeline_mode = #tpu.pipeline_mode<synchronous>, transform_indices = @transform_2, window_bounds = array<i64: 12, 128>}, {pipeline_mode = #tpu.pipeline_mode<synchronous>, transform_indices = @transform_3, window_bounds = array<i64: 8, 128>}, {transform_indices = @transform_4, window_bounds = array<i64: 1, 1, 128>}]} {
    %c0 = arith.constant 0 : index
    %c0_0 = arith.constant 0 : index
    %0 = vector.load %arg1[%c0, %c0_0] : memref<1024x12xbf16, #tpu.memory_space<vmem>>, vector<1024x12xbf16>
    %c0_1 = arith.constant 0 : index
    %c0_2 = arith.constant 0 : index
    %1 = vector.load %arg3[%c0_1, %c0_2] : memref<12x128xbf16, #tpu.memory_space<vmem>>, vector<12x128xbf16>
    %cst = arith.constant dense<0.000000e+00> : vector<1024x128xf32>
    %2 = tpu.matmul %0, %1, %cst {dimension_numbers = #tpu.dot_dimension_numbers<[1], [0], [0], [1], [0, 0, 1, 1], [], []>} : vector<1024x12xbf16>, vector<12x128xbf16>, vector<1024x128xf32> -> vector<1024x128xf32>
    %c0_3 = arith.constant 0 : index
    %c0_4 = arith.constant 0 : index
    %3 = vector.load %arg2[%c0_3, %c0_4] : memref<1024x1xf32, #tpu.memory_space<vmem>>, vector<1024x1xf32>
    %c0_5 = arith.constant 0 : index
    %c0_6 = arith.constant 0 : index
    %4 = vector.load %arg4[%c0_5, %c0_6] : memref<8x128xf32, #tpu.memory_space<vmem>>, vector<1x128xf32>
    %5 = vector.broadcast %3 : vector<1024x1xf32> to vector<1024x128xf32>
    %6 = vector.broadcast %4 : vector<1x128xf32> to vector<1024x128xf32>
    %7 = arith.mulf %5, %6 : vector<1024x128xf32>
    %8 = arith.addf %2, %7 : vector<1024x128xf32>
    %c1 = arith.constant 1 : index
    %c0_7 = arith.constant 0 : index
    %9 = vector.load %arg4[%c1, %c0_7] : memref<8x128xf32, #tpu.memory_space<vmem>>, vector<1x128xf32>
    %10 = vector.broadcast %9 : vector<1x128xf32> to vector<1024x128xf32>
    %11 = arith.addf %8, %10 : vector<1024x128xf32>
    %cst_8 = arith.constant 0.000000e+00 : f32
    %12 = vector.broadcast %cst_8 : f32 to vector<1024x128xf32>
    %13 = arith.maximumf %11, %12 : vector<1024x128xf32>
    %14 = vector.shape_cast %13 : vector<1024x128xf32> to vector<1x1024x128xf32>
    %cst_9 = arith.constant dense<0.000000e+00> : vector<1x1024xf32>
    %15 = vector.multi_reduction <add>, %14, %cst_9 [2] : vector<1x1024x128xf32> to vector<1x1024xf32>
    %16 = tpu.iota {dimensions = array<i32: 0>} : vector<1024x128xi32>
    %17 = tpu.iota {dimensions = array<i32: 1>} : vector<1024x128xi32>
    %c8_i32 = arith.constant 8 : i32
    %18 = vector.broadcast %c8_i32 : i32 to vector<1024x128xi32>
    %19 = arith.muli %17, %18 : vector<1024x128xi32>
    %20 = arith.cmpi sge, %16, %19 : vector<1024x128xi32>
    %c1_i32 = arith.constant 1 : i32
    %21 = vector.broadcast %c1_i32 : i32 to vector<1024x128xi32>
    %22 = arith.addi %17, %21 : vector<1024x128xi32>
    %c8_i32_10 = arith.constant 8 : i32
    %23 = vector.broadcast %c8_i32_10 : i32 to vector<1024x128xi32>
    %24 = arith.muli %22, %23 : vector<1024x128xi32>
    %25 = arith.cmpi slt, %16, %24 : vector<1024x128xi32>
    %26 = arith.andi %20, %25 : vector<1024x128xi1>
    %cst_11 = arith.constant 1.250000e-01 : f32
    %cst_12 = arith.constant 0.000000e+00 : f32
    %27 = vector.broadcast %cst_11 : f32 to vector<1024x128xf32>
    %28 = vector.broadcast %cst_12 : f32 to vector<1024x128xf32>
    %29 = arith.select %26, %27, %28 : vector<1024x128xi1>, vector<1024x128xf32>
    %cst_13 = arith.constant dense<0.000000e+00> : vector<1x128xf32>
    %30 = tpu.matmul %15, %29, %cst_13 {dimension_numbers = #tpu.dot_dimension_numbers<[1], [0], [0], [1], [0, 0, 1, 1], [], []>} : vector<1x1024xf32>, vector<1024x128xf32>, vector<1x128xf32> -> vector<1x128xf32>
    %31 = vector.shape_cast %30 : vector<1x128xf32> to vector<1x1x128xf32>
    %c0_14 = arith.constant 0 : index
    %c0_15 = arith.constant 0 : index
    %c0_16 = arith.constant 0 : index
    %32 = vector.load %arg5[%c0_14, %c0_15, %c0_16] : memref<1x1x128xf32, #tpu.memory_space<vmem>>, vector<1x1x128xf32>
    tpu.vector_store %arg5[%c0_14, %c0_15, %c0_16], %31 {strides = array<i32>} : memref<1x1x128xf32, #tpu.memory_space<vmem>>, vector<1x1x128xf32>,
    return
  }
  func.func @transform_0(%arg0: i32) -> (i32, i32) {
    %c0_i32 = arith.constant 0 : i32
    %c0_i32_0 = arith.constant 0 : i32
    return %arg0, %c0_i32 : i32, i32
  }
  func.func @transform_1(%arg0: i32) -> (i32, i32) {
    %c0_i32 = arith.constant 0 : i32
    %c0_i32_0 = arith.constant 0 : i32
    return %arg0, %c0_i32 : i32, i32
  }
  func.func @transform_2(%arg0: i32) -> (i32, i32) {
    %c0_i32 = arith.constant 0 : i32
    %c0_i32_0 = arith.constant 0 : i32
    %c0_i32_1 = arith.constant 0 : i32
    return %c0_i32, %c0_i32_0 : i32, i32
  }
  func.func @transform_3(%arg0: i32) -> (i32, i32) {
    %c0_i32 = arith.constant 0 : i32
    %c0_i32_0 = arith.constant 0 : i32
    %c0_i32_1 = arith.constant 0 : i32
    return %c0_i32, %c0_i32_0 : i32, i32
  }
  func.func @transform_4(%arg0: i32) -> (i32, i32, i32) {
    %c0_i32 = arith.constant 0 : i32
    %c0_i32_0 = arith.constant 0 : i32
    %c0_i32_1 = arith.constant 0 : i32
    return %arg0, %c0_i32, %c0_i32_0 : i32, i32, i32
  }
}

</mosaic_0001>

<bundles_post_ra>
// kernel: tpu_custom_call.1
= control target key start
LH: loop header
LB: loop body
LE: loop exit
PB: predicated region body
PF: predicated region fallthrough
CT: control target
= control target key end

     0   :  { %v5197_v1 = vmov 0   ;;  %vm1568_vm0 = vcmask 1045504   ;;  %vm1375_vm1 = vcmask 97280   ;;  %s8780_s0 = inlined_call_operand.vmem [shape: bf16[1024,12], index: 0, kind: input, shape index: {}]   ;;  %s8781_s1 = inlined_call_operand.vmem [shape: f32[1024,1], index: 1, kind: input, shape index: {}]   ;;  %s8782_s2 = inlined_call_operand.vmem [shape: bf16[12,128], index: 2, kind: input, shape index: {}]   ;;  %s8783_s3 = inlined_call_operand.vmem [shape: f32[8,128], index: 3, kind: input, shape index: {}]   ;;  %s8784_s4 = inlined_call_operand.hbm [shape: f32[1,1,128], index: 4, kind: output, shape index: {}]  }
   0x1   :  { %v151_v0 = vld [vmem:[%s8781_s1 + $0x10] sm:$0xff]  ;;  %5103 = vset.pattern.permute.xlu1 %v5197_v1  ;;  %v5104_v2 = vld [vmem:[%s8782_s2] sm:$0x3f]   ;;  %v152_v3 = vld [vmem:[%s8781_s1 + $0x18] sm:$0xff]  ;;  %5102 = vset.pattern.permute.xlu0 %v5197_v1 }
   0x2   :  { %290 = vperm.xlu1 %5103, %v151_v0   ;;  %v5105_v4 = vld [vmem:[%s8780_s0] sm:$0xff]   ;;  %5097 = vmatprep.subr.msk.bf16.mxu0 %vm1568_vm0, %v5104_v2  ;;  %v1570_v5 = vsel %vm1568_vm0, %v5104_v2, 0  ;;  %v5106_v6 = vld [vmem:[%s8780_s0 + $0x8] sm:$0xff]   ;;  %v5107_v8 = vld [vmem:[%s8780_s0 + $0x10] sm:$0xff]  }
   0x3   :  { %v149_v7 = vld [vmem:[%s8781_s1] sm:$0xff]  ;;  %5098 = vmatprep.subr.msk.bf16.mxu1 %vm1568_vm0, %v5104_v2  ;;  %4838 = vmatpush3.bf16.msra.mxu0 %v1570_v5  ;;  %v150_v9 = vld [vmem:[%s8781_s1 + $0x8] sm:$0xff]  ;;  %v156_v12 = vld [vmem:[%s8781_s1 + $0x38] sm:$0xff] }
   0x4   :  { %4839 = vmatprep.mubr.msk.bf16.mxu0 %vm1375_vm1, %v5105_v4  ;;  %280 = vperm.xlu0 %5102, %v149_v7   ;;  %v154_v10 = vld [vmem:[%s8781_s1 + $0x28] sm:$0xff]  ;;  %v153_v11 = vld [vmem:[%s8781_s1 + $0x20] sm:$0xff]  ;;  %v5108_v13 = vld [vmem:[%s8780_s0 + $0x18] sm:$0xff]  }
   0x5   :  { %5096 = vmatpush3.bf16.msra.mxu1 %v1570_v5  ;;  %v5109_v14 = vld [vmem:[%s8780_s0 + $0x20] sm:$0xff]   ;;  %v155_v15 = vld [vmem:[%s8781_s1 + $0x30] sm:$0xff]  ;;  %v158_v16 = vld [vmem:[%s8781_s1 + $0x48] sm:$0xff] }
   0x6   :  { %295 = vperm.xlu1 %5103, %v152_v3   ;;  %4840 = vmatmul.mubr.msk.bf16.vlgmr.msra.gmra.mrb[0].mxu0 %vm1375_vm1, %v5106_v6  ;;  %v160_v17 = vld [vmem:[%s8781_s1 + $0x58] sm:$0xff]  ;;  %v157_v18 = vld [vmem:[%s8781_s1 + $0x40] sm:$0xff]  ;;  %v5110_v19 = vld [vmem:[%s8780_s0 + $0x28] sm:$0xff]  }
   0x7   :  { %4843 = vmatprep.mubr.msk.bf16.mxu0 %vm1375_vm1, %v5107_v8  ;;  %v5111_v20 = vld [vmem:[%s8780_s0 + $0x30] sm:$0xff]   ;;  %v162_v22 = vld [vmem:[%s8781_s1 + $0x68] sm:$0xff]  ;;  %v161_v23 = vld [vmem:[%s8781_s1 + $0x60] sm:$0xff] }
   0x8   :  { %285 = vperm.xlu0 %5102, %v150_v9   ;;  %v159_v21 = vld [vmem:[%s8781_s1 + $0x50] sm:$0xff]  ;;  %v164_v24 = vld [vmem:[%s8781_s1 + $0x78] sm:$0xff]  ;;  %v5113_v26 = vld [vmem:[%s8780_s0 + $0x40] sm:$0xff]  }
   0x9   :  { %v5112_v25 = vld [vmem:[%s8780_s0 + $0x38] sm:$0xff]   ;;  %v163_v27 = vld [vmem:[%s8781_s1 + $0x70] sm:$0xff]  ;;  %v166_v28 = vld [vmem:[%s8781_s1 + $0x88] sm:$0xff] }
   0xa   :  { %305 = vperm.xlu1 %5103, %v154_v10   ;;  %v168_v29 = vld [vmem:[%s8781_s1 + $0x98] sm:$0xff]  ;;  %v165_v30 = vld [vmem:[%s8781_s1 + $0x80] sm:$0xff]  ;;  %v5114_v31 = vld [vmem:[%s8780_s0 + $0x48] sm:$0xff]  }
   0xb   :  { %v5115_v32 = vld [vmem:[%s8780_s0 + $0x50] sm:$0xff]   ;;  %v170_v34 = vld [vmem:[%s8781_s1 + $0xa8] sm:$0xff]  ;;  %v169_v35 = vld [vmem:[%s8781_s1 + $0xa0] sm:$0xff] }
   0xc   :  { %300 = vperm.xlu0 %5102, %v153_v11   ;;  %v167_v33 = vld [vmem:[%s8781_s1 + $0x90] sm:$0xff]  ;;  %v172_v36 = vld [vmem:[%s8781_s1 + $0xb8] sm:$0xff]  ;;  %v5117_v38 = vld [vmem:[%s8780_s0 + $0x60] sm:$0xff]  }
   0xd   :  { %v5116_v37 = vld [vmem:[%s8780_s0 + $0x58] sm:$0xff]   ;;  %v174_v39 = vld [vmem:[%s8781_s1 + $0xc8] sm:$0xff]  ;;  %v171_v40 = vld [vmem:[%s8781_s1 + $0xb0] sm:$0xff] }
   0xe   :  { %315 = vperm.xlu1 %5103, %v156_v12   ;;  %4844 = vmatmul.mubr.msk.bf16.gmra.mrb[4].mxu0 %vm1375_vm1, %v5108_v13  ;;  %v173_v41 = vld [vmem:[%s8781_s1 + $0xc0] sm:$0xff]  ;;  %v176_v42 = vld [vmem:[%s8781_s1 + $0xd8] sm:$0xff]  ;;  %v5118_v43 = vld [vmem:[%s8780_s0 + $0x68] sm:$0xff]  }
   0xf   :  { %4847 = vmatprep.mubr.msk.bf16.mxu0 %vm1375_vm1, %v5109_v14  ;;  %v5119_v44 = vld [vmem:[%s8780_s0 + $0x70] sm:$0xff]   ;;  %v178_v46 = vld [vmem:[%s8781_s1 + $0xe8] sm:$0xff]  ;;  %v177_v47 = vld [vmem:[%s8781_s1 + $0xe0] sm:$0xff] }
  0x10   :  { %310 = vperm.xlu0 %5102, %v155_v15   ;;  %v175_v45 = vld [vmem:[%s8781_s1 + $0xd0] sm:$0xff]  ;;  %v180_v48 = vld [vmem:[%s8781_s1 + $0xf8] sm:$0xff]  ;;  %v5121_v50 = vld [vmem:[%s8780_s0 + $0x80] sm:$0xff]  }
  0x11   :  { %v5120_v49 = vld [vmem:[%s8780_s0 + $0x78] sm:$0xff]   ;;  %v179_v51 = vld [vmem:[%s8781_s1 + $0xf0] sm:$0xff]  ;;  %v182_v52 = vld [vmem:[%s8781_s1 + $0x108] sm:$0xff] }
  0x12   :  { %325 = vperm.xlu1 %5103, %v158_v16   ;;  %v181_v53 = vld [vmem:[%s8781_s1 + $0x100] sm:$0xff]  ;;  %v184_v54 = vld [vmem:[%s8781_s1 + $0x118] sm:$0xff]  ;;  %v5122_v55 = vld [vmem:[%s8780_s0 + $0x88] sm:$0xff]  }
  0x13   :  { %v5123_v56 = vld [vmem:[%s8780_s0 + $0x90] sm:$0xff]   ;;  %v186_v58 = vld [vmem:[%s8781_s1 + $0x128] sm:$0xff] }
  0x14   :  { %320 = vperm.xlu0 %5102, %v157_v18   ;;  %v183_v57 = vld [vmem:[%s8781_s1 + $0x110] sm:$0xff] }
  0x16   :  { %335 = vperm.xlu1 %5103, %v160_v17   ;;  %4848 = vmatmul.mubr.msk.bf16.gmra.mrb[8].mxu0 %vm1375_vm1, %v5110_v19 }
  0x17   :  { %4851 = vmatprep.mubr.msk.bf16.mxu0 %vm1375_vm1, %v5111_v20 }
  0x18   :  { %330 = vperm.xlu0 %5102, %v159_v21  }
  0x1a   :  { %345 = vperm.xlu1 %5103, %v162_v22  }
  0x1c   :  { %340 = vperm.xlu0 %5102, %v161_v23  }
  0x1e   :  { %355 = vperm.xlu1 %5103, %v164_v24   ;;  %4852 = vmatmul.mubr.msk.bf16.gmra.mrb[12].mxu0 %vm1375_vm1, %v5112_v25 }
  0x1f   :  { %4855 = vmatprep.mubr.msk.bf16.mxu0 %vm1375_vm1, %v5113_v26 }
  0x20   :  { %350 = vperm.xlu0 %5102, %v163_v27  }
  0x22   :  { %365 = vperm.xlu1 %5103, %v166_v28  }
  0x24   :  { %360 = vperm.xlu0 %5102, %v165_v30  }
  0x26   :  { %375 = vperm.xlu1 %5103, %v168_v29   ;;  %4856 = vmatmul.mubr.msk.bf16.gmra.mrb[16].mxu0 %vm1375_vm1, %v5114_v31 }
  0x27   :  { %4859 = vmatprep.mubr.msk.bf16.mxu0 %vm1375_vm1, %v5115_v32 }
  0x28   :  { %370 = vperm.xlu0 %5102, %v167_v33  }
  0x2a   :  { %385 = vperm.xlu1 %5103, %v170_v34  }
  0x2c   :  { %380 = vperm.xlu0 %5102, %v169_v35  }
  0x2e   :  { %395 = vperm.xlu1 %5103, %v172_v36   ;;  %4860 = vmatmul.mubr.msk.bf16.gmra.mrb[20].mxu0 %vm1375_vm1, %v5116_v37 }
  0x2f   :  { %4863 = vmatprep.mubr.msk.bf16.mxu0 %vm1375_vm1, %v5117_v38 }
  0x30   :  { %390 = vperm.xlu0 %5102, %v171_v40  }
  0x32   :  { %405 = vperm.xlu1 %5103, %v174_v39  }
  0x34   :  { %400 = vperm.xlu0 %5102, %v173_v41  }
  0x36   :  { %415 = vperm.xlu1 %5103, %v176_v42   ;;  %4864 = vmatmul.mubr.msk.bf16.gmra.mrb[24].mxu0 %vm1375_vm1, %v5118_v43 }
  0x37   :  { %4867 = vmatprep.mubr.msk.bf16.mxu0 %vm1375_vm1, %v5119_v44 }
  0x38   :  { %410 = vperm.xlu0 %5102, %v175_v45  }
  0x3a   :  { %425 = vperm.xlu1 %5103, %v178_v46  }
  0x3c   :  { %420 = vperm.xlu0 %5102, %v177_v47  }
  0x3e   :  { %435 = vperm.xlu1 %5103, %v180_v48   ;;  %4868 = vmatmul.mubr.msk.bf16.gmra.mrb[28].mxu0 %vm1375_vm1, %v5120_v49 }
  0x3f   :  { %4871 = vmatprep.mubr.msk.bf16.mxu0 %vm1375_vm1, %v5121_v50 }
  0x40   :  { %430 = vperm.xlu0 %5102, %v179_v51  }
  0x42   :  { %445 = vperm.xlu1 %5103, %v182_v52  }
  0x44   :  { %440 = vperm.xlu0 %5102, %v181_v53  }
  0x46   :  { %455 = vperm.xlu1 %5103, %v184_v54   ;;  %4872 = vmatmul.mubr.msk.bf16.gmra.mrb[32].mxu0 %vm1375_vm1, %v5122_v55 }
  0x47   :  { %9 = vsyncpa [#allocation3], 0  ;;  %4875 = vmatprep.mubr.msk.bf16.mxu0 %vm1375_vm1, %v5123_v56  ;;  %v185_v59 = vld [vmem:[%s8781_s1 + $0x120] sm:$0xff]  ;;  %v188_v60 = vld [vmem:[%s8781_s1 + $0x138] sm:$0xff] }
  0x48   :  { %450 = vperm.xlu0 %5102, %v183_v57   ;;  %v5124_v61 = vld [vmem:[%s8780_s0 + $0x98] sm:$0xff]   ;;  %v5125_v62 = vld [vmem:[%s8780_s0 + $0xa0] sm:$0xff]   ;;  %v187_v63 = vld [vmem:[%s8781_s1 + $0x130] sm:$0xff] }
  0x49   :  { %v190_v0 = vld [vmem:[%s8781_s1 + $0x148] sm:$0xff]  ;;  %v189_v1 = vld [vmem:[%s8781_s1 + $0x140] sm:$0xff]  ;;  %v192_v2 = vld [vmem:[%s8781_s1 + $0x158] sm:$0xff] }
  0x4a   :  { %465 = vperm.xlu1 %5103, %v186_v58   ;;  %v5126_v3 = vld [vmem:[%s8780_s0 + $0xa8] sm:$0xff]   ;;  %v5127_v4 = vld [vmem:[%s8780_s0 + $0xb0] sm:$0xff]   ;;  %v193_v7 = vld [vmem:[%s8781_s1 + $0x160] sm:$0xff] }
  0x4b   :  { %v191_v5 = vld [vmem:[%s8781_s1 + $0x150] sm:$0xff]  ;;  %v194_v6 = vld [vmem:[%s8781_s1 + $0x168] sm:$0xff]  ;;  %v196_v8 = vld [vmem:[%s8781_s1 + $0x178] sm:$0xff] }
  0x4c   :  { %460 = vperm.xlu0 %5102, %v185_v59   ;;  %v5128_v9 = vld [vmem:[%s8780_s0 + $0xb8] sm:$0xff]   ;;  %v5129_v10 = vld [vmem:[%s8780_s0 + $0xc0] sm:$0xff]   ;;  %v195_v11 = vld [vmem:[%s8781_s1 + $0x170] sm:$0xff] }
  0x4d   :  { %v198_v12 = vld [vmem:[%s8781_s1 + $0x188] sm:$0xff]  ;;  %v197_v13 = vld [vmem:[%s8781_s1 + $0x180] sm:$0xff]  ;;  %v200_v14 = vld [vmem:[%s8781_s1 + $0x198] sm:$0xff] }
  0x4e   :  { %475 = vperm.xlu1 %5103, %v188_v60   ;;  %4876 = vmatmul.mubr.msk.bf16.gmra.mrb[36].mxu0 %vm1375_vm1, %v5124_v61  ;;  %v5130_v15 = vld [vmem:[%s8780_s0 + $0xc8] sm:$0xff]   ;;  %v5131_v16 = vld [vmem:[%s8780_s0 + $0xd0] sm:$0xff]   ;;  %v201_v18 = vld [vmem:[%s8781_s1 + $0x1a0] sm:$0xff] }
  0x4f   :  { %4879 = vmatprep.mubr.msk.bf16.mxu0 %vm1375_vm1, %v5125_v62  ;;  %v199_v17 = vld [vmem:[%s8781_s1 + $0x190] sm:$0xff]  ;;  %v5132_v19 = vld [vmem:[%s8780_s0 + $0xd8] sm:$0xff]   ;;  %v5133_v20 = vld [vmem:[%s8780_s0 + $0xe0] sm:$0xff]  }
  0x50   :  { %470 = vperm.xlu0 %5102, %v187_v63   ;;  %v5134_v21 = vld [vmem:[%s8780_s0 + $0xe8] sm:$0xff]   ;;  %v5135_v22 = vld [vmem:[%s8780_s0 + $0xf0] sm:$0xff]   ;;  %v5136_v23 = vld [vmem:[%s8780_s0 + $0xf8] sm:$0xff]  }
  0x51   :  { %v5137_v24 = vld [vmem:[%s8780_s0 + $0x100] sm:$0xff]   ;;  %v5138_v25 = vld [vmem:[%s8780_s0 + $0x108] sm:$0xff]   ;;  %v5139_v27 = vld [vmem:[%s8780_s0 + $0x110] sm:$0xff]  }
  0x52   :  { %485 = vperm.xlu1 %5103, %v190_v0   ;;  %v5140_v29 = vld [vmem:[%s8780_s0 + $0x118] sm:$0xff]   ;;  %v5141_v32 = vld [vmem:[%s8780_s0 + $0x120] sm:$0xff]   ;;  %v5142_v33 = vld [vmem:[%s8780_s0 + $0x128] sm:$0xff]  }
  0x53   :  { %v5143_v36 = vld [vmem:[%s8780_s0 + $0x130] sm:$0xff]   ;;  %v5145_v39 = vld [vmem:[%s8780_s0 + $0x138] sm:$0xff]   ;;  %v5147_v43 = vld [vmem:[%s8780_s0 + $0x140] sm:$0xff]  }
  0x54   :  { %480 = vperm.xlu0 %5102, %v189_v1   ;;  %v5144_v37 = vld [vmem:[%s8780_s0 + $0x170] sm:$0xff]   ;;  %v5146_v40 = vld [vmem:[%s8780_s0 + $0x178] sm:$0xff]   ;;  %v5148_v44 = vld [vmem:[%s8780_s0 + $0x180] sm:$0xff]  }
  0x55   :  { %4931 = vmatprep.mubr.msk.bf16.mxu1 %vm1375_vm1, %v5144_v37  ;;  %v5149_v46 = vld [vmem:[%s8780_s0 + $0x148] sm:$0xff]   ;;  %v5151_v50 = vld [vmem:[%s8780_s0 + $0x150] sm:$0xff]   ;;  %v5153_v52 = vld [vmem:[%s8780_s0 + $0x158] sm:$0xff]  }
  0x56   :  { %495 = vperm.xlu1 %5103, %v192_v2   ;;  %4880 = vmatmul.mubr.msk.bf16.gmra.mrb[40].mxu0 %vm1375_vm1, %v5126_v3  ;;  %v5150_v47 = vld [vmem:[%s8780_s0 + $0x188] sm:$0xff]   ;;  %v5152_v51 = vld [vmem:[%s8780_s0 + $0x190] sm:$0xff]   ;;  %v5154_v53 = vld [vmem:[%s8780_s0 + $0x198] sm:$0xff]  }
  0x57   :  { %4883 = vmatprep.mubr.msk.bf16.mxu0 %vm1375_vm1, %v5127_v4  ;;  %4932 = vmatmul.mubr.msk.bf16.vlgmr.msra.gmra.mrb[0].mxu1 %vm1375_vm1, %v5146_v40  ;;  %v5155_v56 = vld [vmem:[%s8780_s0 + $0x160] sm:$0xff]   ;;  %v5157_v58 = vld [vmem:[%s8780_s0 + $0x168] sm:$0xff]   ;;  %v5159_v62 = vld [vmem:[%s8780_s0 + $0x1b0] sm:$0xff]  }
  0x58   :  { %490 = vperm.xlu0 %5102, %v191_v5   ;;  %4935 = vmatprep.mubr.msk.bf16.mxu1 %vm1375_vm1, %v5148_v44  ;;  %v5156_v57 = vld [vmem:[%s8780_s0 + $0x1a0] sm:$0xff]   ;;  %v5158_v59 = vld [vmem:[%s8780_s0 + $0x1a8] sm:$0xff]   ;;  %v5160_v0 = vld [vmem:[%s8780_s0 + $0x1b8] sm:$0xff]  }
  0x59   :  { %v5645_v2 = vld [vmem:[%s8783_s3] ss:$0 sm:$0xff] }
  0x5a   :  { %505 = vperm.xlu1 %5103, %v194_v6  }
  0x5c   :  { %500 = vperm.xlu0 %5102, %v193_v7  }
  0x5e   :  { %515 = vperm.xlu1 %5103, %v196_v8   ;;  %4884 = vmatmul.mubr.msk.bf16.gmra.mrb[44].mxu0 %vm1375_vm1, %v5128_v9  ;;  %v5161_v8 = vld [vmem:[%s8780_s0 + $0x1c0] sm:$0xff]   ;;  %v5162_v9 = vld [vmem:[%s8780_s0 + $0x1c8] sm:$0xff]  }
  0x5f   :  { %4887 = vmatprep.mubr.msk.bf16.mxu0 %vm1375_vm1, %v5129_v10  ;;  %4936 = vmatmul.mubr.msk.bf16.gmra.mrb[4].mxu1 %vm1375_vm1, %v5150_v47 }
  0x60   :  { %510 = vperm.xlu0 %5102, %v195_v11   ;;  %4939 = vmatprep.mubr.msk.bf16.mxu1 %vm1375_vm1, %v5152_v51  ;;  %v5665_v11 = vld [vmem:[%s8783_s3 + $0x1] ss:$0 sm:$0xff] }
  0x62   :  { %525 = vperm.xlu1 %5103, %v198_v12  }
  0x64   :  { %520 = vperm.xlu0 %5102, %v197_v13  }
  0x66   :  { %535 = vperm.xlu1 %5103, %v200_v14   ;;  %4888 = vmatmul.mubr.msk.bf16.gmra.mrb[48].mxu0 %vm1375_vm1, %v5130_v15 }
  0x67   :  { %4891 = vmatprep.mubr.msk.bf16.mxu0 %vm1375_vm1, %v5131_v16  ;;  %4940 = vmatmul.mubr.msk.bf16.gmra.mrb[8].mxu1 %vm1375_vm1, %v5154_v53 }
  0x68   :  { %530 = vperm.xlu0 %5102, %v199_v17   ;;  %4943 = vmatprep.mubr.msk.bf16.mxu1 %vm1375_vm1, %v5156_v57 }
  0x6c   :  { %540 = vperm.xlu0 %5102, %v201_v18  }
  0x6e   :  { %4892 = vmatmul.mubr.msk.bf16.gmra.mrb[52].mxu0 %vm1375_vm1, %v5132_v19 }
  0x6f   :  { %4895 = vmatprep.mubr.msk.bf16.mxu0 %vm1375_vm1, %v5133_v20  ;;  %4944 = vmatmul.mubr.msk.bf16.gmra.mrb[12].mxu1 %vm1375_vm1, %v5158_v59 }
  0x70   :  { %4947 = vmatprep.mubr.msk.bf16.mxu1 %vm1375_vm1, %v5159_v62 }
  0x76   :  { %4896 = vmatmul.mubr.msk.bf16.gmra.mrb[56].mxu0 %vm1375_vm1, %v5134_v21 }
  0x77   :  { %4899 = vmatprep.mubr.msk.bf16.mxu0 %vm1375_vm1, %v5135_v22  ;;  %4948 = vmatmul.mubr.msk.bf16.gmra.mrb[16].mxu1 %vm1375_vm1, %v5160_v0 }
  0x78   :  { %4951 = vmatprep.mubr.msk.bf16.mxu1 %vm1375_vm1, %v5161_v8 }
  0x7e   :  { %4900 = vmatmul.mubr.msk.bf16.gmra.mrb[60].mxu0 %vm1375_vm1, %v5136_v23 }
  0x7f   :  { %4903 = vmatprep.mubr.msk.bf16.mxu0 %vm1375_vm1, %v5137_v24  ;;  %4952 = vmatmul.mubr.msk.bf16.gmra.mrb[20].mxu1 %vm1375_vm1, %v5162_v9 }
  0x81   :  { %v291_v28 = vpop.permute.xlu1 %290 }
  0x82   :  { %v924_v3 = vmul.f32 %v5645_v2, %v291_v28 }
  0x83   :  { %v5523_v26 = vpop.permute.xlu0 %280 }
  0x84   :  { %v922_v5 = vmul.f32 %v5645_v2, %v5523_v26 }
  0x85   :  { %v296_v31 = vpop.permute.xlu1 %295 }
  0x86   :  { %4904 = vmatmul.mubr.msk.bf16.gmra.mrb[64].mxu0 %vm1375_vm1, %v5138_v25  ;;  %v925_v6 = vmul.f32 %v5645_v2, %v296_v31 }
  0x87   :  { %4907 = vmatprep.mubr.msk.bf16.mxu0 %vm1375_vm1, %v5139_v27  ;;  %v5533_v30 = vpop.permute.xlu0 %285 }
  0x88   :  { %v923_v12 = vmul.f32 %v5645_v2, %v5533_v30 }
  0x89   :  { %v5545_v35 = vpop.permute.xlu1 %305 }
  0x8a   :  { %v927_v37 = vmul.f32 %v5645_v2, %v5545_v35 }
  0x8b   :  { %v5542_v34 = vpop.permute.xlu0 %300 }
  0x8c   :  { %v926_v27 = vmul.f32 %v5645_v2, %v5542_v34 }
  0x8d   :  { %v5563_v41 = vpop.permute.xlu1 %315 }
  0x8e   :  { %4908 = vmatmul.mubr.msk.bf16.gmra.mrb[68].mxu0 %vm1375_vm1, %v5140_v29  ;;  %v929_v40 = vmul.f32 %v5645_v2, %v5563_v41 }
  0x8f   :  { %4911 = vmatprep.mubr.msk.bf16.mxu0 %vm1375_vm1, %v5141_v32  ;;  %v5553_v38 = vpop.permute.xlu0 %310 }
  0x90   :  { %v928_v22 = vmul.f32 %v5645_v2, %v5553_v38 }
  0x91   :  { %v5575_v45 = vpop.permute.xlu1 %325 }
  0x93   :  { %v5567_v42 = vpop.permute.xlu0 %320 }
  0x94   :  { %v930_v53 = vmul.f32 %v5645_v2, %v5567_v42  ;;  %v5163_v42 = vld [vmem:[%s8780_s0 + $0x1d0] sm:$0xff]  }
  0x95   :  { %v5589_v49 = vpop.permute.xlu1 %335  ;;  %4955 = vmatprep.mubr.msk.bf16.mxu1 %vm1375_vm1, %v5163_v42 }
  0x96   :  { %4912 = vmatmul.mubr.msk.bf16.gmra.mrb[72].mxu0 %vm1375_vm1, %v5142_v33  ;;  %v933_v8 = vmul.f32 %v5645_v2, %v5589_v49 }
  0x97   :  { %4915 = vmatprep.mubr.msk.bf16.mxu0 %vm1375_vm1, %v5143_v36  ;;  %v5587_v48 = vpop.permute.xlu0 %330 }
  0x99   :  { %v5609_v55 = vpop.permute.xlu1 %345 }
  0x9b   :  { %v5605_v54 = vpop.permute.xlu0 %340 }
  0x9d   :  { %v5627_v61 = vpop.permute.xlu1 %355 }
  0x9e   :  { %4916 = vmatmul.mubr.msk.bf16.gmra.mrb[76].mxu0 %vm1375_vm1, %v5145_v39 }
  0x9f   :  { %4919 = vmatprep.mubr.msk.bf16.mxu0 %vm1375_vm1, %v5147_v43  ;;  %v5623_v60 = vpop.permute.xlu0 %350 }
  0xa1   :  { %v5640_v1 = vpop.permute.xlu1 %365 }
  0xa3   :  { %v5635_v63 = vpop.permute.xlu0 %360 }
  0xa5   :  { %v5654_v7 = vpop.permute.xlu1 %375 }
  0xa6   :  { %4920 = vmatmul.mubr.msk.bf16.gmra.mrb[80].mxu0 %vm1375_vm1, %v5149_v46  ;;  %v932_v46 = vmul.f32 %v5645_v2, %v5587_v48 }
  0xa7   :  { %4923 = vmatprep.mubr.msk.bf16.mxu0 %vm1375_vm1, %v5151_v50  ;;  %v5649_v4 = vpop.permute.xlu0 %370 }
  0xa9   :  { %v5677_v23 = vpop.permute.xlu1 %385 }
  0xab   :  { %v5670_v17 = vpop.permute.xlu0 %380 }
  0xad   :  { %v5689_v34 = vpop.permute.xlu1 %395 }
  0xae   :  { %4924 = vmatmul.mubr.msk.bf16.gmra.mrb[84].mxu0 %vm1375_vm1, %v5153_v52 }
  0xaf   :  { %4927 = vmatprep.mubr.msk.bf16.mxu0 %vm1375_vm1, %v5155_v56  ;;  %v5682_v30 = vpop.permute.xlu0 %390 }
  0xb1   :  { %v5700_v59 = vpop.permute.xlu1 %405 }
  0xb3   :  { %v5698_v56 = vpop.permute.xlu0 %400 }
  0xb6   :  { %4928 = vmatmul.mubr.msk.bf16.gmra.mrb[88].mxu0 %vm1375_vm1, %v5157_v58 }
  0xd9   :  { %v4841_v10 = vpop.f32.mrb[0].mxu0 }
  0xda   :  { %v1615_v13 = vadd.f32 %v4841_v10, %v924_v3  ;;  %v1606_v14 = vpop.f32.mrb[1].mxu0 }
  0xdb   :  { %v1607_v15 = vadd.f32 %v1606_v14, %v922_v5  ;;  %v4842_v16 = vpop.f32.mrb[2].mxu0  ;;  %v5715_v14 = vpop.permute.xlu0 %410 }
  0xdc   :  { %v1618_v18 = vadd.f32 %v4842_v16, %v925_v6  ;;  %v1609_v19 = vpop.f32.mrb[3].mxu0  ;;  %v2124_v20 = vadd.f32 %v5665_v11, %v1615_v13  ;;  %v936_v13 = vmul.f32 %v5645_v2, %v5623_v60  ;;  %v934_v60 = vmul.f32 %v5645_v2, %v5605_v54 }
  0xdd   :  { %v2122_v21 = vadd.f32 %v5665_v11, %v1607_v15  ;;  %v1610_v24 = vadd.f32 %v1609_v19, %v923_v12  ;;  %v5164_v12 = vld [vmem:[%s8780_s0 + $0x1d8] sm:$0xff]   ;;  %v931_v19 = vmul.f32 %v5645_v2, %v5575_v45 }
  0xde   :  { %v2252_v25 = vmax.f32 %v2124_v20, 0.0  ;;  %v2125_v26 = vadd.f32 %v5665_v11, %v1618_v18  ;;  %4956 = vmatmul.mubr.msk.bf16.gmra.mrb[24].mxu1 %vm1375_vm1, %v5164_v12  ;;  %v5721_v20 = vpop.permute.xlu1 %415 }
  0xdf   :  { %v2250_v28 = vmax.f32 %v2122_v21, 0.0  ;;  %v2123_v36 = vadd.f32 %v5665_v11, %v1610_v24  ;;  %v5728_v45 = vpop.permute.xlu0 %420 }
  0xe0   :  { %2382 = vadd.xlane.f32.xlu1 %v2252_v25  ;;  %v2253_v33 = vmax.f32 %v2125_v26, 0.0 }
  0xe1   :  { %v4845_v29 = vpop.f32.mrb[4].mxu0  ;;  %2378 = vadd.xlane.f32.xlu0 %v2250_v28  ;;  %v2251_v51 = vmax.f32 %v2123_v36, 0.0  ;;  %v937_v28 = vmul.f32 %v5645_v2, %v5627_v61  ;;  %v935_v61 = vmul.f32 %v5645_v2, %v5609_v55  ;;  %v939_v55 = vmul.f32 %v5645_v2, %v5640_v1  ;;  %v5166_v1 = vld [vmem:[%s8780_s0 + $0x1e8] sm:$0xff]  }
  0xe2   :  { %v1631_v31 = vadd.f32 %v4845_v29, %v928_v22  ;;  %v1622_v32 = vpop.f32.mrb[5].mxu0  ;;  %v5731_v54 = vpop.permute.xlu1 %425 }
  0xe3   :  { %v1623_v38 = vadd.f32 %v1622_v32, %v926_v27  ;;  %v4846_v39 = vpop.f32.mrb[6].mxu0 }
  0xe4   :  { %2384 = vadd.xlane.f32.xlu1 %v2253_v33  ;;  %v1625_v43 = vpop.f32.mrb[7].mxu0  ;;  %v2128_v44 = vadd.f32 %v5665_v11, %v1631_v31  ;;  %v1634_v50 = vadd.f32 %v4846_v39, %v929_v40 }
  0xe5   :  { %v1626_v47 = vadd.f32 %v1625_v43, %v927_v37  ;;  %v2126_v35 = vadd.f32 %v5665_v11, %v1623_v38  ;;  %v940_v43 = vmul.f32 %v5645_v2, %v5649_v4  ;;  %v5165_v4 = vld [vmem:[%s8780_s0 + $0x1e0] sm:$0xff]  }
  0xe6   :  { %v2256_v52 = vmax.f32 %v2128_v44, 0.0  ;;  %v2129_v3 = vadd.f32 %v5665_v11, %v1634_v50  ;;  %v941_v50 = vmul.f32 %v5645_v2, %v5654_v7  ;;  %4959 = vmatprep.mubr.msk.bf16.mxu1 %vm1375_vm1, %v5165_v4 }
  0xe7   :  { %v2127_v41 = vadd.f32 %v5665_v11, %v1626_v47  ;;  %v2254_v0 = vmax.f32 %v2126_v35, 0.0  ;;  %4960 = vmatmul.mubr.msk.bf16.gmra.mrb[28].mxu1 %vm1375_vm1, %v5166_v1 }
  0xe8   :  { %2380 = vadd.xlane.f32.xlu1 %v2251_v51  ;;  %2390 = vadd.xlane.f32.xlu0 %v2256_v52  ;;  %v2257_v16 = vmax.f32 %v2129_v3, 0.0  ;;  %v5742_v51 = vpop.permute.xlu0 %430 }
  0xe9   :  { %v4849_v57 = vpop.f32.mrb[8].mxu0  ;;  %v2255_v58 = vmax.f32 %v2127_v41, 0.0 }
  0xea   :  { %v1647_v48 = vadd.f32 %v4849_v57, %v932_v46  ;;  %v1638_v62 = vpop.f32.mrb[9].mxu0 }
  0xeb   :  { %v1639_v5 = vadd.f32 %v1638_v62, %v930_v53  ;;  %v4850_v6 = vpop.f32.mrb[10].mxu0 }
  0xec   :  { %v1641_v9 = vpop.f32.mrb[11].mxu0  ;;  %2386 = vadd.xlane.f32.xlu1 %v2254_v0  ;;  %2388 = vadd.xlane.f32.xlu0 %v2255_v58  ;;  %v2132_v10 = vadd.f32 %v5665_v11, %v1647_v48  ;;  %v1650_v15 = vadd.f32 %v4850_v6, %v933_v8  ;;  %v938_v58 = vmul.f32 %v5645_v2, %v5635_v63  ;;  %v5751_v48 = vpop.permute.xlu1 %435 }
  0xed   :  { %v2130_v49 = vadd.f32 %v5665_v11, %v1639_v5  ;;  %v1642_v22 = vadd.f32 %v1641_v9, %v931_v19  ;;  %v944_v9 = vmul.f32 %v5645_v2, %v5682_v30 }
  0xee   :  { %v2260_v18 = vmax.f32 %v2132_v10, 0.0  ;;  %v2133_v27 = vadd.f32 %v5665_v11, %v1650_v15  ;;  %v5763_v10 = vpop.permute.xlu0 %440 }
  0xef   :  { %v2258_v26 = vmax.f32 %v2130_v49, 0.0  ;;  %v2131_v40 = vadd.f32 %v5665_v11, %v1642_v22  ;;  %v942_v22 = vmul.f32 %v5645_v2, %v5670_v17 }
  0xf0   :  { %2392 = vadd.xlane.f32.xlu1 %v2257_v16  ;;  %2398 = vadd.xlane.f32.xlu0 %v2260_v18  ;;  %v2261_v38 = vmax.f32 %v2133_v27, 0.0  ;;  %v5765_v15 = vpop.permute.xlu1 %445 }
  0xf1   :  { %v4853_v21 = vpop.f32.mrb[12].mxu0  ;;  %v2259_v41 = vmax.f32 %v2131_v40, 0.0  ;;  %v943_v40 = vmul.f32 %v5645_v2, %v5677_v23  ;;  %v948_v23 = vmul.f32 %v5645_v2, %v5715_v14 }
  0xf2   :  { %v1663_v24 = vadd.f32 %v4853_v21, %v936_v13  ;;  %v1654_v25 = vpop.f32.mrb[13].mxu0 }
  0xf3   :  { %v1655_v29 = vadd.f32 %v1654_v25, %v934_v60  ;;  %v4854_v31 = vpop.f32.mrb[14].mxu0 }
  0xf4   :  { %v1657_v32 = vpop.f32.mrb[15].mxu0  ;;  %2394 = vadd.xlane.f32.xlu0 %v2258_v26  ;;  %v2136_v33 = vadd.f32 %v5665_v11, %v1663_v24  ;;  %v1666_v36 = vadd.f32 %v4854_v31, %v937_v28  ;;  %v451_v24 = vpop.permute.xlu0 %450 }
  0xf5   :  { %v2134_v39 = vadd.f32 %v5665_v11, %v1655_v29  ;;  %v1658_v44 = vadd.f32 %v1657_v32, %v935_v61  ;;  %v945_v29 = vmul.f32 %v5645_v2, %v5689_v34  ;;  %v5774_v31 = vpop.permute.xlu1 %455 }
  0xf6   :  { %v2264_v37 = vmax.f32 %v2136_v33, 0.0  ;;  %v2137_v47 = vadd.f32 %v5665_v11, %v1666_v36 }
  0xf7   :  { %v2262_v53 = vmax.f32 %v2134_v39, 0.0  ;;  %v2135_v5 = vadd.f32 %v5665_v11, %v1658_v44  ;;  %v5167_v39 = vld [vmem:[%s8780_s0 + $0x1f0] sm:$0xff]  }
  0xf8   :  { %2406 = vadd.xlane.f32.xlu1 %v2264_v37  ;;  %2400 = vadd.xlane.f32.xlu0 %v2261_v38  ;;  %v2265_v3 = vmax.f32 %v2137_v47, 0.0  ;;  %v5782_v61 = vpop.permute.xlu0 %460 }
  0xf9   :  { %v4857_v46 = vpop.f32.mrb[16].mxu0  ;;  %v2263_v13 = vmax.f32 %v2135_v5, 0.0  ;;  %4963 = vmatprep.mubr.msk.bf16.mxu1 %vm1375_vm1, %v5167_v39  ;;  %v5788_v44 = vpop.permute.xlu1 %465  ;;  %v956_v5 = vmul.f32 %v5645_v2, %v451_v24 }
  0xfa   :  { %v1679_v52 = vadd.f32 %v4857_v46, %v940_v43  ;;  %v1670_v35 = vpop.f32.mrb[17].mxu0  ;;  %v5168_v43 = vld [vmem:[%s8780_s0 + $0x1f8] sm:$0xff]  }
  0xfb   :  { %v4858_v57 = vpop.f32.mrb[18].mxu0  ;;  %v1671_v6 = vadd.f32 %v1670_v35, %v938_v58  ;;  %4964 = vmatmul.mubr.msk.bf16.gmra.mrb[32].mxu1 %vm1375_vm1, %v5168_v43  ;;  %v946_v58 = vmul.f32 %v5645_v2, %v5698_v56 }
  0xfc   :  { %v1682_v7 = vadd.f32 %v4858_v57, %v941_v50  ;;  %v1673_v62 = vpop.f32.mrb[19].mxu0  ;;  %2402 = vadd.xlane.f32.xlu1 %v2262_v53  ;;  %2396 = vadd.xlane.f32.xlu0 %v2259_v41  ;;  %v2140_v0 = vadd.f32 %v5665_v11, %v1679_v52  ;;  %v5794_v35 = vpop.permute.xlu0 %470 }
  0xfd   :  { %v1674_v42 = vadd.f32 %v1673_v62, %v939_v55  ;;  %v2138_v19 = vadd.f32 %v5665_v11, %v1671_v6 }
  0xfe   :  { %v2268_v63 = vmax.f32 %v2140_v0, 0.0  ;;  %v2141_v8 = vadd.f32 %v5665_v11, %v1682_v7  ;;  %v5801_v7 = vpop.permute.xlu1 %475 }
  0xff   :  { %v2139_v60 = vadd.f32 %v5665_v11, %v1674_v42  ;;  %v2266_v26 = vmax.f32 %v2138_v19, 0.0 }
 0x100   :  { %2408 = vadd.xlane.f32.xlu1 %v2265_v3  ;;  %2414 = vadd.xlane.f32.xlu0 %v2268_v63  ;;  %v2269_v49 = vmax.f32 %v2141_v8, 0.0  ;;  %v949_v3 = vmul.f32 %v5645_v2, %v5721_v20  ;;  %v5809_v6 = vpop.permute.xlu0 %480  ;;  %v947_v20 = vmul.f32 %v5645_v2, %v5700_v59 }
 0x101   :  { %v4861_v12 = vpop.f32.mrb[20].mxu0  ;;  %v2267_v27 = vmax.f32 %v2139_v60, 0.0 }
 0x102   :  { %v1695_v16 = vadd.f32 %v4861_v12, %v944_v9  ;;  %v1686_v18 = vpop.f32.mrb[21].mxu0  ;;  %v5811_v63 = vpop.permute.xlu1 %485 }
 0x103   :  { %v4862_v21 = vpop.f32.mrb[22].mxu0  ;;  %v1687_v25 = vadd.f32 %v1686_v18, %v942_v22 }
 0x104   :  { %v1689_v30 = vpop.f32.mrb[23].mxu0  ;;  %2404 = vadd.xlane.f32.xlu1 %v2263_v13  ;;  %2416 = vadd.xlane.f32.xlu0 %v2269_v49  ;;  %v2144_v28 = vadd.f32 %v5665_v11, %v1695_v16  ;;  %v1698_v33 = vadd.f32 %v4862_v21, %v945_v29  ;;  %v955_v16 = vmul.f32 %v5645_v2, %v5765_v15  ;;  %v5823_v21 = vpop.permute.xlu0 %490  ;;  %v2634_v15 = vlaneseq }
 0x105   :  { %v2142_v37 = vadd.f32 %v5665_v11, %v1687_v25  ;;  %v1690_v46 = vadd.f32 %v1689_v30, %v943_v40 }
 0x106   :  { %v2272_v17 = vmax.f32 %v2144_v28, 0.0  ;;  %v2145_v50 = vadd.f32 %v5665_v11, %v1698_v33  ;;  %v5829_v28 = vpop.permute.xlu1 %495  ;;  %v5840_v39 = vand.u32 127, %v2634_v15  ;;  %v5846_v43 = vshrl.u32 %v2634_v15, 7 }
 0x107   :  { %v2270_v47 = vmax.f32 %v2142_v37, 0.0  ;;  %v2143_v57 = vadd.f32 %v5665_v11, %v1690_v46  ;;  %v950_v37 = vmul.f32 %v5645_v2, %v5728_v45 }
 0x108   :  { %2410 = vadd.xlane.f32.xlu1 %v2266_v26  ;;  %2412 = vadd.xlane.f32.xlu0 %v2267_v27  ;;  %v2273_v55 = vmax.f32 %v2145_v50, 0.0  ;;  %v952_v27 = vmul.f32 %v5645_v2, %v5742_v51  ;;  %v5842_v51 = vpop.permute.xlu0 %500  ;;  %v2894_v46 = vadd.s32 1, %v5840_v39  ;;  %v2655_v15 = vadd.s32 160, %v5846_v43 }
 0x109   :  { %v4865_v32 = vpop.f32.mrb[24].mxu0  ;;  %v2271_v0 = vmax.f32 %v2143_v57, 0.0  ;;  %v2636_v57 = vadd.s32 8, %v5846_v43 }
 0x10a   :  { %v1702_v36 = vpop.f32.mrb[25].mxu0  ;;  %v1711_v53 = vadd.f32 %v4865_v32, %v948_v23  ;;  %v953_v23 = vmul.f32 %v5645_v2, %v5751_v48 }
 0x10b   :  { %v4866_v38 = vpop.f32.mrb[26].mxu0  ;;  %v1703_v14 = vadd.f32 %v1702_v36, %v946_v58  ;;  %v951_v58 = vmul.f32 %v5645_v2, %v5731_v54 }
 0x10c   :  { %v1705_v34 = vpop.f32.mrb[27].mxu0  ;;  %2422 = vadd.xlane.f32.xlu0 %v2272_v17  ;;  %v2148_v1 = vadd.f32 %v5665_v11, %v1711_v53  ;;  %v1714_v56 = vadd.f32 %v4866_v38, %v949_v3  ;;  %v2652_v53 = vadd.s32 136, %v5846_v43 }
 0x10d   :  { %v2146_v13 = vadd.f32 %v5665_v11, %v1703_v14  ;;  %v1706_v22 = vadd.f32 %v1705_v34, %v947_v20  ;;  %v2663_v20 = vadd.s32 224, %v5846_v43 }
 0x10e   :  { %v2276_v12 = vmax.f32 %v2148_v1, 0.0  ;;  %v2149_v25 = vadd.f32 %v5665_v11, %v1714_v56  ;;  %v5868_v1 = vpop.permute.xlu0 %510 }
 0x10f   :  { %v2274_v24 = vmax.f32 %v2146_v13, 0.0  ;;  %v2147_v17 = vadd.f32 %v5665_v11, %v1706_v22  ;;  %8883 = vst [vmem:[#allocation8_spill] sm:$0xff] %v5868_v1  ;;  %v3433_v1 = vadd.s32 4294967264, %v5840_v39 }
 0x110   :  { %2418 = vadd.xlane.f32.xlu0 %v2270_v47  ;;  %v2277_v36 = vmax.f32 %v2149_v25, 0.0  ;;  %v5849_v47 = vpop.permute.xlu1 %505 }
 0x111   :  { %v4869_v52 = vpop.f32.mrb[28].mxu0  ;;  %8880 = vst [vmem:[#allocation5_spill] sm:$0xff] %v5849_v47  ;;  %v2275_v50 = vmax.f32 %v2147_v17, 0.0  ;;  %v2639_v17 = vadd.s32 32, %v5846_v43 }
 0x112   :  { %v1718_v41 = vpop.f32.mrb[29].mxu0  ;;  %v1727_v32 = vadd.f32 %v4869_v52, %v952_v27  ;;  %v2651_v52 = vadd.s32 128, %v5846_v43  ;;  %v521_v22 = vpop.permute.xlu0 %520 }
 0x113   :  { %v5797_v4 = vpop.f32.mrb[30].mxu0  ;;  %v1719_v34 = vadd.f32 %v1718_v41, %v950_v37  ;;  %v5859_v41 = vmul.u32 8, %v2894_v46  ;;  %v970_v54 = vmul.f32 %v5645_v2, %v521_v22 }
 0x114   :  { %v5803_v62 = vpop.f32.mrb[31].mxu0  ;;  %2424 = vadd.xlane.f32.xlu0 %v2273_v55  ;;  %v2152_v45 = vadd.f32 %v5665_v11, %v1727_v32  ;;  %v5857_v55 = vmul.u32 8, %v5840_v39  ;;  %v1730_v14 = vadd.f32 %v5797_v4, %v953_v23  ;;  %v5884_v4 = vpop.permute.xlu1 %515 }
 0x115   :  { %8882 = vst [vmem:[#allocation7_spill] sm:$0xff] %v5859_v41  ;;  %v2150_v48 = vadd.f32 %v5665_v11, %v1719_v34  ;;  %vm2912_vm4 = vcmp.lt.s32.totalorder %v2651_v52, %v5859_v41  ;;  %vm2913_vm5 = vcmp.lt.s32.totalorder %v2652_v53, %v5859_v41  ;;  %8887 = vst [vmem:[#allocation10_spill] sm:$0xff] %v5884_v4  ;;  %v2640_v34 = vadd.s32 40, %v5846_v43 }
 0x116   :  { %8881 = vst [vmem:[#allocation6_spill] sm:$0xff] %v5857_v55  ;;  %vm2782_vm2 = vcmp.ge.s32.totalorder %v2651_v52, %v5857_v55  ;;  %vm2783_vm3 = vcmp.ge.s32.totalorder %v2652_v53, %v5857_v55  ;;  %vm2766_vm7 = vcmp.ge.s32.totalorder %v5846_v43, %v5857_v55  ;;  %v1722_v56 = vadd.f32 %v5803_v62, %v951_v58 }
 0x117   :  { %vm5878_vm6 = vmand %vm2782_vm2, %vm2912_vm4  ;;  %vm2767_vm9 = vcmp.ge.s32.totalorder %v2636_v57, %v5857_v55  ;;  %vm2896_vm10 = vcmp.lt.s32.totalorder %v5846_v43, %v5859_v41  ;;  %vm2897_vm12 = vcmp.lt.s32.totalorder %v2636_v57, %v5859_v41  ;;  %v2278_v13 = vmax.f32 %v2150_v48, 0.0 }
 0x118   :  { %2420 = vadd.xlane.f32.xlu0 %v2271_v0  ;;  %vm3041_vm8 = vmand %vm2783_vm3, %vm2913_vm5  ;;  %v8785_v62 = vmov 0.125|0.125   ;;  %v526_v27 = vpop.permute.xlu1 %525  ;;  %v2657_v53 = vadd.s32 176, %v5846_v43  ;;  %v2658_v58 = vadd.s32 184, %v5846_v43  ;;  %v957_v48 = vmul.f32 %v5645_v2, %v5774_v31 }
 0x119   :  { %v4873_v42 = vpop.f32.mrb[32].mxu0  ;;  %vm4967_vm11 = vmpackc.low %vm3041_vm8, %vm5878_vm6  ;;  %v2642_v31 = vadd.s32 56, %v5846_v43 }
 0x11a   :  { %v1743_v8 = vadd.f32 %v4873_v42, %v956_v5  ;;  %v5813_v9 = vpop.f32.mrb[33].mxu0  ;;  %v2280_v5 = vmax.f32 %v2152_v45, 0.0  ;;  %4968 = vmatprep.subr.msk.bf16.mxu1 %vm4967_vm11, %v8785_v62  ;;  %vm5901_vm13 = vmand %vm2766_vm7, %vm2896_vm10 }
 0x11b   :  { %v5818_v18 = vpop.f32.mrb[34].mxu0  ;;  %vm3025_vm14 = vmand %vm2767_vm9, %vm2897_vm12  ;;  %vm2786_vm12 = vcmp.ge.s32.totalorder %v2655_v15, %v5857_v55 }
 0x11c   :  { %v1737_v49 = vpop.f32.mrb[35].mxu0  ;;  %2430 = vadd.xlane.f32.xlu0 %v2276_v12  ;;  %v2156_v19 = vadd.f32 %v5665_v11, %v1743_v8  ;;  %v2653_v12 = vadd.s32 144, %v5846_v43  ;;  %vm4969_vm1 = vmpackc.low %vm3025_vm14, %vm5901_vm13  ;;  %vm2916_vm13 = vcmp.lt.s32.totalorder %v2655_v15, %v5859_v41  ;;  %v536_v57 = vpop.permute.xlu1 %535 }
 0x11d   :  { %v1738_v60 = vadd.f32 %v1737_v49, %v955_v16  ;;  %v2153_v16 = vadd.f32 %v5665_v11, %v1730_v14  ;;  %v2654_v49 = vadd.s32 152, %v5846_v43  ;;  %4970 = vmatpush3.bf16.msk.msra.mxu1 %vm4969_vm1, %v8785_v62  ;;  %v2641_v14 = vadd.s32 48, %v5846_v43 }
 0x11e   :  { %v2284_v30 = vmax.f32 %v2156_v19, 0.0  ;;  %v2637_v19 = vadd.s32 16, %v5846_v43  ;;  %vm2784_vm15 = vcmp.ge.s32.totalorder %v2653_v12, %v5857_v55  ;;  %vm2914_vm0 = vcmp.lt.s32.totalorder %v2653_v12, %v5859_v41 }
 0x11f   :  { %v2155_v26 = vadd.f32 %v5665_v11, %v1738_v60  ;;  %v954_v60 = vmul.f32 %v5645_v2, %v5763_v10  ;;  %vm2785_vm2 = vcmp.ge.s32.totalorder %v2654_v49, %v5857_v55  ;;  %vm2915_vm3 = vcmp.lt.s32.totalorder %v2654_v49, %v5859_v41  ;;  %vm5921_vm4 = vmand %vm2784_vm15, %vm2914_vm0 }
 0x120   :  { %2446 = vadd.xlane.f32.xlu1 %v2284_v30  ;;  %2426 = vadd.xlane.f32.xlu0 %v2274_v24  ;;  %v2151_v30 = vadd.f32 %v5665_v11, %v1722_v56  ;;  %v2638_v24 = vadd.s32 24, %v5846_v43  ;;  %vm2768_vm5 = vcmp.ge.s32.totalorder %v2637_v19, %v5857_v55  ;;  %vm2898_vm6 = vcmp.lt.s32.totalorder %v2637_v19, %v5859_v41  ;;  %vm3043_vm7 = vmand %vm2785_vm2, %vm2915_vm3 }
 0x121   :  { %v5831_v59 = vpop.f32.mrb[36].mxu0  ;;  %v2283_v29 = vmax.f32 %v2155_v26, 0.0  ;;  %v1735_v10 = vadd.f32 %v5813_v9, %v954_v60  ;;  %v2281_v32 = vmax.f32 %v2153_v16, 0.0  ;;  %v2656_v9 = vadd.s32 168, %v5846_v43  ;;  %vm4971_vm10 = vmpackc.low %vm3043_vm7, %vm5921_vm4 }
 0x122   :  { %v5833_v33 = vpop.f32.mrb[37].mxu0  ;;  %vm2769_vm8 = vcmp.ge.s32.totalorder %v2638_v24, %v5857_v55  ;;  %vm2899_vm9 = vcmp.lt.s32.totalorder %v2638_v24, %v5859_v41  ;;  %4972 = vmatprep.subr.msk.bf16.mxu1 %vm4971_vm10, %v8785_v62  ;;  %vm3026_vm11 = vmand %vm2768_vm5, %vm2898_vm6  ;;  %v2279_v45 = vmax.f32 %v2151_v30, 0.0  ;;  %vm2770_vm3 = vcmp.ge.s32.totalorder %v2639_v17, %v5857_v55 }
 0x123   :  { %v5838_v38 = vpop.f32.mrb[38].mxu0  ;;  %v2154_v46 = vadd.f32 %v5665_v11, %v1735_v10  ;;  %vm3027_vm14 = vmand %vm2769_vm8, %vm2899_vm9  ;;  %vm2787_vm15 = vcmp.ge.s32.totalorder %v2656_v9, %v5857_v55  ;;  %vm2917_vm0 = vcmp.lt.s32.totalorder %v2656_v9, %v5859_v41  ;;  %vm2900_vm4 = vcmp.lt.s32.totalorder %v2639_v17, %v5859_v41 }
 0x124   :  { %v5844_v40 = vpop.f32.mrb[39].mxu0  ;;  %2444 = vadd.xlane.f32.xlu1 %v2283_v29  ;;  %2432 = vadd.xlane.f32.xlu0 %v2277_v36  ;;  %vm4973_vm1 = vmpackc.low %vm3027_vm14, %vm3026_vm11  ;;  %vm2771_vm6 = vcmp.ge.s32.totalorder %v2640_v34, %v5857_v55  ;;  %vm2901_vm7 = vcmp.lt.s32.totalorder %v2640_v34, %v5859_v41  ;;  %vm2788_vm10 = vcmp.ge.s32.totalorder %v2657_v53, %v5857_v55  ;;  %v2659_v26 = vadd.s32 192, %v5846_v43 }
 0x125   :  { %4974 = vmatpush3.bf16.msk.msra.mxu1 %vm4973_vm1, %v8785_v62  ;;  %vm5953_vm2 = vmand %vm2786_vm12, %vm2916_vm13  ;;  %v2282_v56 = vmax.f32 %v2154_v46, 0.0  ;;  %vm2918_vm11 = vcmp.lt.s32.totalorder %v2657_v53, %v5859_v41  ;;  %v973_v49 = vmul.f32 %v5645_v2, %v536_v57  ;;  %vm2789_vm13 = vcmp.ge.s32.totalorder %v2658_v58, %v5857_v55 }
 0x126   :  { %vm3045_vm5 = vmand %vm2787_vm15, %vm2917_vm0  ;;  %vm2919_vm14 = vcmp.lt.s32.totalorder %v2658_v58, %v5859_v41  ;;  %v1746_v30 = vadd.f32 %v5818_v18, %v957_v48  ;;  %vm2772_vm0 = vcmp.ge.s32.totalorder %v2641_v14, %v5857_v55  ;;  %v2660_v18 = vadd.s32 200, %v5846_v43 }
 0x127   :  { %vm4975_vm8 = vmpackc.low %vm3045_vm5, %vm5953_vm2  ;;  %vm2902_vm2 = vcmp.lt.s32.totalorder %v2641_v14, %v5859_v41  ;;  %vm2903_vm5 = vcmp.lt.s32.totalorder %v2642_v31, %v5859_v41  ;;  %v2643_v46 = vadd.s32 64, %v5846_v43  ;;  %v2661_v14 = vadd.s32 208, %v5846_v43 }
 0x128   :  { %2428 = vadd.xlane.f32.xlu0 %v2275_v50  ;;  %v531_v50 = vpop.permute.xlu0 %530  ;;  %4976 = vmatprep.subr.msk.bf16.mxu1 %vm4975_vm8, %v8785_v62  ;;  %vm5975_vm9 = vmand %vm2770_vm3, %vm2900_vm4  ;;  %vm2773_vm4 = vcmp.ge.s32.totalorder %v2642_v31, %v5857_v55  ;;  %vm2790_vm8 = vcmp.ge.s32.totalorder %v2659_v26, %v5857_v55 }
 0x129   :  { %v5865_v0 = vpop.f32.mrb[40].mxu0  ;;  %v972_v23 = vmul.f32 %v5645_v2, %v531_v50  ;;  %vm3029_vm12 = vmand %vm2771_vm6, %vm2901_vm7  ;;  %v2157_v50 = vadd.f32 %v5665_v11, %v1746_v30  ;;  %v2649_v30 = vadd.s32 112, %v5846_v43 }
 0x12a   :  { %v5870_v3 = vpop.f32.mrb[41].mxu0  ;;  %vm4977_vm15 = vmpackc.low %vm3029_vm12, %vm5975_vm9  ;;  %vm2920_vm9 = vcmp.lt.s32.totalorder %v2659_v26, %v5859_v41  ;;  %vm2921_vm12 = vcmp.lt.s32.totalorder %v2660_v18, %v5859_v41  ;;  %v202_v26 = vld [vmem:[%s8781_s1 + $0x1a8] sm:$0xff] }
 0x12b   :  { %v5875_v42 = vpop.f32.mrb[42].mxu0  ;;  %4978 = vmatpush3.bf16.msk.msra.mxu1 %vm4977_vm15, %v8785_v62  ;;  %vm3046_vm1 = vmand %vm2788_vm10, %vm2918_vm11  ;;  %vm2791_vm11 = vcmp.ge.s32.totalorder %v2660_v18, %v5857_v55  ;;  %vm2774_vm15 = vcmp.ge.s32.totalorder %v2643_v46, %v5857_v55  ;;  %v206_v18 = vld [vmem:[%s8781_s1 + $0x1c8] sm:$0xff] }
 0x12c   :  { %8884 = vst [vmem:[#allocation9_spill] sm:$0xff] %v5875_v42  ;;  %v5887_v8 = vpop.f32.mrb[43].mxu0  ;;  %2438 = vadd.xlane.f32.xlu0 %v2280_v5  ;;  %v971_v5 = vmul.f32 %v5645_v2, %v526_v27  ;;  %v541_v22 = vpop.permute.xlu0 %540  ;;  %vm3047_vm3 = vmand %vm2789_vm13, %vm2919_vm14 }
 0x12d   :  { %v974_v17 = vmul.f32 %v5645_v2, %v541_v22  ;;  %vm4979_vm6 = vmpackc.low %vm3047_vm3, %vm3046_vm1  ;;  %v2644_v2 = vadd.s32 72, %v5846_v43  ;;  %v2666_v22 = vadd.s32 248, %v5846_v43 }
 0x12e   :  { %4980 = vmatprep.subr.msk.bf16.mxu1 %vm4979_vm6, %v8785_v62  ;;  %vm6016_vm7 = vmand %vm2772_vm0, %vm2902_vm2  ;;  %vm2904_vm0 = vcmp.lt.s32.totalorder %v2643_v46, %v5859_v41  ;;  %vm2792_vm6 = vcmp.ge.s32.totalorder %v2661_v14, %v5857_v55 }
 0x12f   :  { %vm3031_vm10 = vmand %vm2773_vm4, %vm2903_vm5  ;;  %vm2775_vm2 = vcmp.ge.s32.totalorder %v2644_v2, %v5857_v55  ;;  %vm2905_vm3 = vcmp.lt.s32.totalorder %v2644_v2, %v5859_v41 }
 0x130   :  { %2434 = vadd.xlane.f32.xlu0 %v2278_v13  ;;  %vm4981_vm13 = vmpackc.low %vm3031_vm10, %vm6016_vm7  ;;  %vm2922_vm7 = vcmp.lt.s32.totalorder %v2661_v14, %v5859_v41 }
 0x131   :  { %v5918_v25 = vpop.f32.mrb[44].mxu0  ;;  %4982 = vmatpush3.bf16.msk.msra.mxu1 %vm4981_vm13, %v8785_v62  ;;  %vm3048_vm14 = vmand %vm2790_vm8, %vm2920_vm9 }
 0x132   :  { %8890 = vst [vmem:[#allocation11_spill] sm:$0xff] %v5918_v25  ;;  %v5928_v29 = vpop.f32.mrb[45].mxu0  ;;  %vm3049_vm1 = vmand %vm2791_vm11, %vm2921_vm12 }
 0x133   :  { %8893 = vst [vmem:[#allocation12_spill] sm:$0xff] %v5928_v29  ;;  %v5933_v36 = vpop.f32.mrb[46].mxu0  ;;  %vm4983_vm4 = vmpackc.low %vm3049_vm1, %vm3048_vm14 }
 0x134   :  { %8894 = vst [vmem:[#allocation13_spill] sm:$0xff] %v5933_v36  ;;  %v5938_v37 = vpop.f32.mrb[47].mxu0  ;;  %2440 = vadd.xlane.f32.xlu0 %v2281_v32  ;;  %4984 = vmatprep.subr.msk.bf16.mxu1 %vm4983_vm4, %v8785_v62  ;;  %vm3032_vm5 = vmand %vm2774_vm15, %vm2904_vm0  ;;  %vm2794_vm4 = vcmp.ge.s32.totalorder %v2663_v20, %v5857_v55 }
 0x135   :  { %8895 = vst [vmem:[#allocation14_spill] sm:$0xff] %v5938_v37  ;;  %vm3033_vm8 = vmand %vm2775_vm2, %vm2905_vm3 }
 0x136   :  { %vm4985_vm11 = vmpackc.low %vm3033_vm8, %vm3032_vm5  ;;  %vm2924_vm5 = vcmp.lt.s32.totalorder %v2663_v20, %v5859_v41  ;;  %v218_v20 = vld [vmem:[%s8781_s1 + $0x228] sm:$0xff] }
 0x137   :  { %4986 = vmatpush3.bf16.msk.msra.mxu1 %vm4985_vm11, %v8785_v62  ;;  %vm3050_vm12 = vmand %vm2792_vm6, %vm2922_vm7 }
 0x138   :  { %2436 = vadd.xlane.f32.xlu0 %v2279_v45 }
 0x139   :  { %v4889_v12 = vpop.f32.mrb[48].mxu0 }
 0x13a   :  { %v1807_v13 = vadd.f32 %v4889_v12, %v972_v23  ;;  %v1798_v16 = vpop.f32.mrb[49].mxu0  ;;  %v2645_v12 = vadd.s32 80, %v5846_v43 }
 0x13b   :  { %v1799_v19 = vadd.f32 %v1798_v16, %v970_v54  ;;  %v4890_v60 = vpop.f32.mrb[50].mxu0  ;;  %v2646_v16 = vadd.s32 88, %v5846_v43 }
 0x13c   :  { %v2172_v24 = vadd.f32 %v5665_v11, %v1807_v13  ;;  %v1801_v10 = vpop.f32.mrb[51].mxu0  ;;  %2442 = vadd.xlane.f32.xlu0 %v2282_v56  ;;  %v1810_v15 = vadd.f32 %v4890_v60, %v973_v49  ;;  %v2285_v56 = vmax.f32 %v2157_v50, 0.0  ;;  %vm2776_vm13 = vcmp.ge.s32.totalorder %v2645_v12, %v5857_v55  ;;  %v210_v50 = vld [vmem:[%s8781_s1 + $0x1e8] sm:$0xff] }
 0x13d   :  { %v1802_v27 = vadd.f32 %v1801_v10, %v971_v5  ;;  %v2170_v9 = vadd.f32 %v5665_v11, %v1799_v19  ;;  %v2662_v5 = vadd.s32 216, %v5846_v43  ;;  %vm2906_vm14 = vcmp.lt.s32.totalorder %v2645_v12, %v5859_v41 }
 0x13e   :  { %v2300_v32 = vmax.f32 %v2172_v24, 0.0  ;;  %v2173_v23 = vadd.f32 %v5665_v11, %v1810_v15  ;;  %vm2777_vm0 = vcmp.ge.s32.totalorder %v2646_v16, %v5857_v55  ;;  %vm2907_vm1 = vcmp.lt.s32.totalorder %v2646_v16, %v5859_v41  ;;  %vm3034_vm3 = vmand %vm2776_vm13, %vm2906_vm14 }
 0x13f   :  { %v2171_v34 = vadd.f32 %v5665_v11, %v1802_v27  ;;  %v2298_v57 = vmax.f32 %v2170_v9, 0.0  ;;  %vm2793_vm9 = vcmp.ge.s32.totalorder %v2662_v5, %v5857_v55  ;;  %vm2923_vm10 = vcmp.lt.s32.totalorder %v2662_v5, %v5859_v41  ;;  %vm3035_vm6 = vmand %vm2777_vm0, %vm2907_vm1  ;;  %v204_v27 = vld [vmem:[%s8781_s1 + $0x1b8] sm:$0xff] }
 0x140   :  { %2478 = vadd.xlane.f32.xlu0 %v2300_v32  ;;  %v2301_v54 = vmax.f32 %v2173_v23, 0.0  ;;  %vm3051_vm15 = vmand %vm2793_vm9, %vm2923_vm10  ;;  %v2647_v49 = vadd.s32 96, %v5846_v43  ;;  %v2648_v19 = vadd.s32 104, %v5846_v43  ;;  %v2665_v60 = vadd.s32 240, %v5846_v43  ;;  %v212_v23 = vld [vmem:[%s8781_s1 + $0x1f8] sm:$0xff] }
 0x141   :  { %v6024_v52 = vpop.f32.mrb[52].mxu0  ;;  %v2299_v53 = vmax.f32 %v2171_v34, 0.0  ;;  %vm4987_vm2 = vmpackc.low %vm3051_vm15, %vm3050_vm12  ;;  %v2650_v24 = vadd.s32 120, %v5846_v43 }
 0x142   :  { %v1814_v58 = vpop.f32.mrb[53].mxu0  ;;  %4988 = vmatprep.subr.msk.bf16.mxu1 %vm4987_vm2, %v8785_v62  ;;  %vm4989_vm9 = vmpackc.low %vm3035_vm6, %vm3034_vm3  ;;  %vm2778_vm11 = vcmp.ge.s32.totalorder %v2647_v49, %v5857_v55  ;;  %vm2908_vm12 = vcmp.lt.s32.totalorder %v2647_v49, %v5859_v41  ;;  %vm2779_vm14 = vcmp.ge.s32.totalorder %v2648_v19, %v5857_v55  ;;  %vm2909_vm15 = vcmp.lt.s32.totalorder %v2648_v19, %v5859_v41 }
 0x143   :  { %v1815_v48 = vadd.f32 %v1814_v58, %v974_v17  ;;  %2476 = vadd.xlane.f32.xlu1 %v2299_v53  ;;  %4990 = vmatpush3.bf16.msk.msra.mxu1 %vm4989_vm9, %v8785_v62  ;;  %vm3052_vm10 = vmand %vm2794_vm4, %vm2924_vm5  ;;  %vm2796_vm2 = vcmp.ge.s32.totalorder %v2665_v60, %v5857_v55  ;;  %vm2926_vm3 = vcmp.lt.s32.totalorder %v2665_v60, %v5859_v41  ;;  %v6081_v10 = vpop.f32.mrb[54].mxu0  ;;  %v208_v17 = vld [vmem:[%s8781_s1 + $0x1d8] sm:$0xff]  ;;  %v214_v58 = vld [vmem:[%s8781_s1 + $0x208] sm:$0xff] }
 0x144   :  { %2474 = vadd.xlane.f32.xlu0 %v2298_v57  ;;  %vm3036_vm1 = vmand %vm2778_vm11, %vm2908_vm12  ;;  %vm2797_vm5 = vcmp.ge.s32.totalorder %v2666_v22, %v5857_v55  ;;  %vm2927_vm6 = vcmp.lt.s32.totalorder %v2666_v22, %v5859_v41  ;;  %vm2780_vm9 = vcmp.ge.s32.totalorder %v2649_v30, %v5857_v55  ;;  %v6089_v15 = vpop.f32.mrb[55].mxu0  ;;  %vm2781_vm12 = vcmp.ge.s32.totalorder %v2650_v24, %v5857_v55  ;;  %v220_v60 = vld [vmem:[%s8781_s1 + $0x238] sm:$0xff] }
 0x145   :  { %v2174_v13 = vadd.f32 %v5665_v11, %v1815_v48  ;;  %v2664_v11 = vadd.s32 232, %v5846_v43  ;;  %vm3037_vm4 = vmand %vm2779_vm14, %vm2909_vm15 }
 0x146   :  { %vm3055_vm11 = vmand %vm2797_vm5, %vm2927_vm6  ;;  %vm8834_vm5 = vcmask 326912   ;;  %vm8833_vm6 = vcmask 392512  }
 0x147   :  { %2448 = vadd.xlane.f32.xlu1 %v2285_v56  ;;  %v2302_v31 = vmax.f32 %v2174_v13, 0.0  ;;  %vm2795_vm7 = vcmp.ge.s32.totalorder %v2664_v11, %v5857_v55  ;;  %vm2925_vm8 = vcmp.lt.s32.totalorder %v2664_v11, %v5859_v41  ;;  %v216_v56 = vld [vmem:[%s8781_s1 + $0x218] sm:$0xff] }
 0x148   :  { %2480 = vadd.xlane.f32.xlu0 %v2301_v54  ;;  %vm3053_vm13 = vmand %vm2795_vm7, %vm2925_vm8 }
 0x149   :  { %vm4991_vm0 = vmpackc.low %vm3053_vm13, %vm3052_vm10  ;;  %vm2910_vm10 = vcmp.lt.s32.totalorder %v2649_v30, %v5859_v41  ;;  %vm2911_vm13 = vcmp.lt.s32.totalorder %v2650_v24, %v5859_v41  ;;  %v6101_v32 = vpop.f32.mrb[56].mxu0  ;;  %v6249_v41 = vpop.f32.mrb[0].mxu1 }
 0x14a   :  { %4992 = vmatprep.subr.msk.bf16.mxu1 %vm4991_vm0, %v8785_v62  ;;  %vm4993_vm7 = vmpackc.low %vm3037_vm4, %vm3036_vm1  ;;  %v6103_v9 = vpop.f32.mrb[57].mxu0  ;;  %8931 = vst [vmem:[#allocation44_spill] sm:$0xff] %v6249_v41  ;;  %v3419_v41 = vadd.s32 4294967280, %v5840_v39  ;;  %vm8835_vm4 = vcmask 261312  }
 0x14b   :  { %4994 = vmatpush3.bf16.msk.msra.mxu1 %vm4993_vm7, %v8785_v62  ;;  %vm3054_vm8 = vmand %vm2796_vm2, %vm2926_vm3  ;;  %8902 = vst [vmem:[#allocation15_spill] sm:$0xff] %v6103_v9  ;;  %v6108_v34 = vpop.f32.mrb[58].mxu0  ;;  %vm8837_vm2 = vcmask 130112   ;;  %vm8836_vm3 = vcmask 195712   ;;  %v6323_v9 = vsub.s32 %v3433_v1, %v5846_v43  ;;  %vm8832_vm7 = vcmask 458112  }
 0x14c   :  { %2482 = vadd.xlane.f32.xlu0 %v2302_v31  ;;  %vm4995_vm14 = vmpackc.low %vm3055_vm11, %vm3054_vm8  ;;  %8903 = vst [vmem:[#allocation16_spill] sm:$0xff] %v6108_v34  ;;  %v6110_v46 = vpop.f32.mrb[59].mxu0  ;;  %v6297_v37 = vsub.s32 %v3419_v41, %v5846_v43  ;;  %vm8831_vm8 = vcmask 523712   ;;  %vm8828_vm11 = vcmask 720512  }
 0x14d   :  { %4996 = vmatprep.subr.msk.bf16.mxu1 %vm4995_vm14, %v8785_v62  ;;  %vm3038_vm15 = vmand %vm2780_vm9, %vm2910_vm10  ;;  %8951 = vst [vmem:[#allocation64_spill] sm:$0xff] %v6323_v9  ;;  %vm8830_vm9 = vcmask 589312   ;;  %vm8829_vm10 = vcmask 654912   ;;  %vm8825_vm14 = vcmask 917312  }
 0x14e   :  { %vm3039_vm0 = vmand %vm2781_vm12, %vm2911_vm13  ;;  %8945 = vst [vmem:[#allocation58_spill] sm:$0xff] %v6297_v37  ;;  %vm8827_vm12 = vcmask 786112   ;;  %vm8826_vm13 = vcmask 851712  }
 0x14f   :  { %vm4997_vm1 = vmpackc.low %vm3039_vm0, %vm3038_vm15  ;;  %vm8824_vm15 = vcmask 982912   ;;  %vm8823_vm0 = vcmask 1048512  }
 0x150   :  { %4998 = vmatpush3.bf16.msk.msra.mxu1 %vm4997_vm1, %v8785_v62 }
 0x151   :  { %v6115_v45 = vpop.f32.mrb[60].mxu0 }
 0x152   :  { %8904 = vst [vmem:[#allocation17_spill] sm:$0xff] %v6115_v45  ;;  %v6117_v2 = vpop.f32.mrb[61].mxu0  ;;  %v3412_v45 = vadd.s32 4294967288, %v5840_v39 }
 0x153   :  { %8905 = vst [vmem:[#allocation18_spill] sm:$0xff] %v6117_v2  ;;  %v6122_v53 = vpop.f32.mrb[62].mxu0 }
 0x154   :  { %8906 = vst [vmem:[#allocation19_spill] sm:$0xff] %v6122_v53  ;;  %v6124_v57 = vpop.f32.mrb[63].mxu0 }
 0x155   :  { %8907 = vst [vmem:[#allocation20_spill] sm:$0xff] %v6124_v57 }
 0x158   :  { %545 = vperm.xlu1 %5103, %v202_v26  }
 0x159   :  { %v6129_v14 = vpop.f32.mrb[64].mxu0 }
 0x15a   :  { %8908 = vst [vmem:[#allocation21_spill] sm:$0xff] %v6129_v14  ;;  %v6133_v5 = vpop.f32.mrb[65].mxu0 }
 0x15b   :  { %8909 = vst [vmem:[#allocation22_spill] sm:$0xff] %v6133_v5  ;;  %v6140_v12 = vpop.f32.mrb[66].mxu0 }
 0x15c   :  { %555 = vperm.xlu1 %5103, %v204_v27   ;;  %8910 = vst [vmem:[#allocation23_spill] sm:$0xff] %v6140_v12  ;;  %v6142_v13 = vpop.f32.mrb[67].mxu0  ;;  %v222_v27 = vld [vmem:[%s8781_s1 + $0x248] sm:$0xff] }
 0x15d   :  { %8911 = vst [vmem:[#allocation24_spill] sm:$0xff] %v6142_v13 }
 0x160   :  { %565 = vperm.xlu1 %5103, %v206_v18  }
 0x161   :  { %v6151_v31 = vpop.f32.mrb[68].mxu0 }
 0x162   :  { %8912 = vst [vmem:[#allocation25_spill] sm:$0xff] %v6151_v31  ;;  %v6153_v49 = vpop.f32.mrb[69].mxu0 }
 0x163   :  { %8913 = vst [vmem:[#allocation26_spill] sm:$0xff] %v6153_v49  ;;  %v6160_v22 = vpop.f32.mrb[70].mxu0 }
 0x164   :  { %575 = vperm.xlu1 %5103, %v208_v17   ;;  %8914 = vst [vmem:[#allocation27_spill] sm:$0xff] %v6160_v22  ;;  %v6162_v30 = vpop.f32.mrb[71].mxu0 }
 0x165   :  { %8915 = vst [vmem:[#allocation28_spill] sm:$0xff] %v6162_v30 }
 0x168   :  { %585 = vperm.xlu1 %5103, %v210_v50  }
 0x169   :  { %v6171_v18 = vpop.f32.mrb[72].mxu0 }
 0x16a   :  { %8916 = vst [vmem:[#allocation29_spill] sm:$0xff] %v6171_v18  ;;  %v6173_v17 = vpop.f32.mrb[73].mxu0 }
 0x16b   :  { %8917 = vst [vmem:[#allocation30_spill] sm:$0xff] %v6173_v17 }
 0x16c   :  { %595 = vperm.xlu1 %5103, %v212_v23   ;;  %v224_v23 = vld [vmem:[%s8781_s1 + $0x258] sm:$0xff] }
 0x16d   :  { %v6131_v48 = vpop.xlane.xlu1 %2382 }
 0x16e   :  { %v6135_v54 = vpop.xlane.xlu0 %2378 }
 0x170   :  { %605 = vperm.xlu1 %5103, %v214_v58   ;;  %v6180_v58 = vpop.f32.mrb[74].mxu0 }
 0x171   :  { %v6149_v11 = vpop.xlane.xlu1 %2384  ;;  %8918 = vst [vmem:[#allocation31_spill] sm:$0xff] %v6180_v58  ;;  %v228_v58 = vld [vmem:[%s8781_s1 + $0x278] sm:$0xff] }
 0x174   :  { %615 = vperm.xlu1 %5103, %v216_v56  }
 0x175   :  { %v6144_v16 = vpop.xlane.xlu0 %2390  ;;  %v6164_v24 = vpop.xlane.xlu1 %2380 }
 0x178   :  { %625 = vperm.xlu1 %5103, %v218_v20   ;;  %v6184_v20 = vpop.f32.mrb[75].mxu0 }
 0x179   :  { %v6155_v19 = vpop.xlane.xlu0 %2388  ;;  %v6182_v56 = vpop.xlane.xlu1 %2386 }
 0x17a   :  { %v6191_v62 = vpop.f32.mrb[76].mxu0  ;;  %v3437_v42 = vrot.slane %v6182_v56, %v6323_v9  ;;  %v3461_v56 = vadd.s32 4294967232, %v5840_v39 }
 0x17b   :  { %8919 = vst [vmem:[#allocation32_spill] sm:$0xff] %v6191_v62  ;;  %v6195_v17 = vpop.f32.mrb[77].mxu0 }
 0x17c   :  { %635 = vperm.xlu1 %5103, %v220_v60   ;;  %8920 = vst [vmem:[#allocation33_spill] sm:$0xff] %v6195_v17 }
 0x17d   :  { %v6166_v26 = vpop.xlane.xlu0 %2398  ;;  %v6193_v18 = vpop.xlane.xlu1 %2392 }
 0x180   :  { %645 = vperm.xlu1 %5103, %v222_v27   ;;  %v226_v27 = vld [vmem:[%s8781_s1 + $0x268] sm:$0xff] }
 0x181   :  { %v6175_v50 = vpop.xlane.xlu0 %2394 }
 0x184   :  { %655 = vperm.xlu1 %5103, %v224_v23   ;;  %v6202_v23 = vpop.f32.mrb[78].mxu0 }
 0x185   :  { %v6186_v60 = vpop.xlane.xlu0 %2400  ;;  %8921 = vst [vmem:[#allocation34_spill] sm:$0xff] %v6202_v23  ;;  %v6204_v31 = vpop.f32.mrb[79].mxu0  ;;  %v232_v23 = vld [vmem:[%s8781_s1 + $0x298] sm:$0xff] }
 0x186   :  { %8922 = vst [vmem:[#allocation35_spill] sm:$0xff] %v6204_v31  ;;  %v6206_v30 = vpop.xlane.xlu1 %2406  ;;  %v6213_v62 = vpop.f32.mrb[80].mxu0 }
 0x187   :  { %8923 = vst [vmem:[#allocation36_spill] sm:$0xff] %v6213_v62  ;;  %v6215_v17 = vpop.f32.mrb[81].mxu0 }
 0x188   :  { %665 = vperm.xlu1 %5103, %v226_v27   ;;  %v230_v27 = vld [vmem:[%s8781_s1 + $0x288] sm:$0xff]  ;;  %8924 = vst [vmem:[#allocation37_spill] sm:$0xff] %v6215_v17 }
 0x189   :  { %v6197_v22 = vpop.xlane.xlu0 %2396 }
 0x18a   :  { %v6222_v31 = vpop.xlane.xlu1 %2402 }
 0x18c   :  { %675 = vperm.xlu1 %5103, %v228_v58   ;;  %v6224_v58 = vpop.f32.mrb[82].mxu0 }
 0x18d   :  { %v6208_v49 = vpop.xlane.xlu0 %2414  ;;  %8925 = vst [vmem:[#allocation38_spill] sm:$0xff] %v6224_v58  ;;  %v6226_v14 = vpop.f32.mrb[83].mxu0  ;;  %v236_v58 = vld [vmem:[%s8781_s1 + $0x2b8] sm:$0xff] }
 0x18e   :  { %8926 = vst [vmem:[#allocation39_spill] sm:$0xff] %v6226_v14  ;;  %v6233_v62 = vpop.f32.mrb[84].mxu0  ;;  %v6235_v17 = vpop.xlane.xlu1 %2408 }
 0x18f   :  { %8927 = vst [vmem:[#allocation40_spill] sm:$0xff] %v6233_v62  ;;  %v6237_v13 = vpop.f32.mrb[85].mxu0  ;;  %v6251_v62 = vpop.f32.mrb[1].mxu1 }
 0x190   :  { %685 = vperm.xlu1 %5103, %v230_v27   ;;  %v234_v27 = vld [vmem:[%s8781_s1 + $0x2a8] sm:$0xff]  ;;  %8928 = vst [vmem:[#allocation41_spill] sm:$0xff] %v6237_v13  ;;  %8932 = vst [vmem:[#allocation45_spill] sm:$0xff] %v6251_v62  ;;  %v6258_v55 = vpop.f32.mrb[2].mxu1 }
 0x191   :  { %v6217_v12 = vpop.xlane.xlu0 %2416  ;;  %v238_v13 = vld [vmem:[%s8781_s1 + $0x2c8] sm:$0xff]  ;;  %8933 = vst [vmem:[#allocation46_spill] sm:$0xff] %v6258_v55  ;;  %v6278_v55 = vsub.s32 %v5840_v39, %v5846_v43 }
 0x192   :  { %v6260_v36 = vpop.xlane.xlu1 %2404 }
 0x193   :  { %8940 = vst [vmem:[#allocation53_spill] sm:$0xff] %v6278_v55 }
 0x194   :  { %695 = vperm.xlu1 %5103, %v232_v23   ;;  %v6244_v23 = vpop.f32.mrb[86].mxu0 }
 0x195   :  { %v6228_v5 = vpop.xlane.xlu0 %2412  ;;  %8929 = vst [vmem:[#allocation42_spill] sm:$0xff] %v6244_v23  ;;  %v6246_v14 = vpop.f32.mrb[87].mxu0 }
 0x196   :  { %8930 = vst [vmem:[#allocation43_spill] sm:$0xff] %v6246_v14  ;;  %v6262_v23 = vpop.f32.mrb[3].mxu1  ;;  %v6265_v14 = vsub.s32 %v3412_v45, %v5846_v43  ;;  %v6267_v25 = vpop.f32.mrb[88].mxu0  ;;  %v240_v45 = vld [vmem:[%s8781_s1 + $0x2d8] sm:$0xff] }
 0x197   :  { %8934 = vst [vmem:[#allocation47_spill] sm:$0xff] %v6262_v23  ;;  %8936 = vst [vmem:[#allocation49_spill] sm:$0xff] %v6267_v25  ;;  %v6272_v62 = vpop.f32.mrb[89].mxu0  ;;  %v2411_v29 = vpop.xlane.xlu1 %2410 }
 0x198   :  { %705 = vperm.xlu1 %5103, %v234_v27   ;;  %8935 = vst [vmem:[#allocation48_spill] sm:$0xff] %v6265_v14  ;;  %8938 = vst [vmem:[#allocation51_spill] sm:$0xff] %v6272_v62  ;;  %v6285_v23 = vpop.f32.mrb[90].mxu0 }
 0x199   :  { %v6239_v53 = vpop.xlane.xlu0 %2422  ;;  %8941 = vst [vmem:[#allocation54_spill] sm:$0xff] %v6285_v23  ;;  %v6289_v25 = vpop.f32.mrb[91].mxu0 }
 0x19a   :  { %8943 = vst [vmem:[#allocation56_spill] sm:$0xff] %v6289_v25 }
 0x19c   :  { %715 = vperm.xlu1 %5103, %v236_v58   ;;  %v6269_v58 = vpop.f32.mrb[4].mxu1 }
 0x19d   :  { %v6253_v27 = vpop.xlane.xlu0 %2418  ;;  %8937 = vst [vmem:[#allocation50_spill] sm:$0xff] %v6269_v58  ;;  %v6274_v2 = vpop.f32.mrb[5].mxu1 }
 0x19e   :  { %8939 = vst [vmem:[#allocation52_spill] sm:$0xff] %v6274_v2  ;;  %v6287_v58 = vpop.f32.mrb[6].mxu1  ;;  %v3416_v2 = vrot.slane %v6164_v24, %v6265_v14  ;;  %v242_v24 = vld [vmem:[%s8781_s1 + $0x2e8] sm:$0xff] }
 0x19f   :  { %8942 = vst [vmem:[#allocation55_spill] sm:$0xff] %v6287_v58  ;;  %v6294_v62 = vpop.f32.mrb[7].mxu1  ;;  %v3411_v58 = vrot.slane %v6135_v54, %v6278_v55  ;;  %v3423_v54 = vrot.slane %v6131_v48, %v6297_v37 }
 0x1a0   :  { %725 = vperm.xlu1 %5103, %v238_v13   ;;  %v3426_v13 = vadd.s32 4294967272, %v5840_v39  ;;  %8944 = vst [vmem:[#allocation57_spill] sm:$0xff] %v6294_v62  ;;  %v6300_v4 = vpop.f32.mrb[8].mxu1 }
 0x1a1   :  { %v6280_v57 = vpop.xlane.xlu0 %2424  ;;  %8946 = vst [vmem:[#allocation59_spill] sm:$0xff] %v6300_v4  ;;  %v6309_v25 = vpop.f32.mrb[9].mxu1  ;;  %v3440_v4 = vadd.s32 4294967256, %v5840_v39 }
 0x1a2   :  { %8947 = vst [vmem:[#allocation60_spill] sm:$0xff] %v6309_v25  ;;  %v6311_v62 = vpop.f32.mrb[10].mxu1  ;;  %v6314_v41 = vsub.s32 %v3426_v13, %v5846_v43 }
 0x1a3   :  { %8948 = vst [vmem:[#allocation61_spill] sm:$0xff] %v6311_v62  ;;  %v6318_v47 = vpop.f32.mrb[11].mxu1  ;;  %v6340_v48 = vsub.s32 %v3440_v4, %v5846_v43  ;;  %v3454_v4 = vadd.s32 4294967240, %v5840_v39 }
 0x1a4   :  { %735 = vperm.xlu1 %5103, %v240_v45   ;;  %8949 = vst [vmem:[#allocation62_spill] sm:$0xff] %v6314_v41  ;;  %v3418_v45 = vsel %vm8837_vm2, %v3416_v2, %v3411_v58  ;;  %8950 = vst [vmem:[#allocation63_spill] sm:$0xff] %v6318_v47  ;;  %v6325_v25 = vpop.f32.mrb[12].mxu1  ;;  %v244_v2 = vld [vmem:[%s8781_s1 + $0x2f8] sm:$0xff]  ;;  %v3430_v1 = vrot.slane %v6149_v11, %v6314_v41 }
 0x1a5   :  { %v6304_v23 = vpop.xlane.xlu0 %2420  ;;  %8952 = vst [vmem:[#allocation65_spill] sm:$0xff] %v6325_v25  ;;  %v6332_v58 = vpop.f32.mrb[13].mxu1  ;;  %v3425_v13 = vsel %vm8836_vm3, %v3423_v54, %v3418_v45  ;;  %8955 = vst [vmem:[#allocation68_spill] sm:$0xff] %v6340_v48  ;;  %v3447_v25 = vadd.s32 4294967248, %v5840_v39  ;;  %v3524_v45 = vrot.slane %v6228_v5, %v6265_v14  ;;  %v3444_v5 = vrot.slane %v6155_v19, %v6340_v48 }
 0x1a6   :  { %8953 = vst [vmem:[#allocation66_spill] sm:$0xff] %v6332_v58  ;;  %v6335_v47 = vpop.f32.mrb[14].mxu1  ;;  %v3520_v58 = vrot.slane %v2411_v29, %v6278_v55  ;;  %v3432_v11 = vsel %vm8835_vm4, %v3430_v1, %v3425_v13  ;;  %v3529_v19 = vrot.slane %v6208_v49, %v6297_v37  ;;  %v3539_v49 = vrot.slane %v6253_v27, %v6323_v9 }
 0x1a7   :  { %8954 = vst [vmem:[#allocation67_spill] sm:$0xff] %v6335_v47  ;;  %v6368_v13 = vsub.s32 %v3447_v25, %v5846_v43  ;;  %v3439_v1 = vsel %vm8834_vm5, %v3437_v42, %v3432_v11  ;;  %v245_v25 = vld [vmem:[%s8781_s1 + $0x300] sm:$0xff]  ;;  %v6385_v42 = vsub.s32 %v3461_v56, %v5846_v43  ;;  %v3475_v56 = vadd.s32 4294967216, %v5840_v39 }
 0x1a8   :  { %745 = vperm.xlu1 %5103, %v242_v24   ;;  %v6342_v24 = vpop.f32.mrb[15].mxu1  ;;  %v3525_v55 = vsel %vm8837_vm2, %v3524_v45, %v3520_v58  ;;  %v3534_v37 = vrot.slane %v6217_v12, %v6314_v41 }
 0x1a9   :  { %v6327_v62 = vpop.xlane.xlu0 %2430  ;;  %8956 = vst [vmem:[#allocation69_spill] sm:$0xff] %v6342_v24  ;;  %v6350_v54 = vpop.f32.mrb[16].mxu1  ;;  %v262_v24 = vld [vmem:[%s8781_s1 + $0x388] sm:$0xff]  ;;  %8960 = vst [vmem:[#allocation73_spill] sm:$0xff] %v6368_v13  ;;  %v3530_v11 = vsel %vm8836_vm3, %v3529_v19, %v3525_v55  ;;  %v3465_v12 = vrot.slane %v6175_v50, %v6385_v42  ;;  %v6423_v9 = vsub.s32 %v3475_v56, %v5846_v43  ;;  %v3496_v50 = vadd.s32 4294967192, %v5840_v39 }
 0x1aa   :  { %8957 = vst [vmem:[#allocation70_spill] sm:$0xff] %v6350_v54  ;;  %v6360_v29 = vpop.f32.mrb[17].mxu1  ;;  %8963 = vst [vmem:[#allocation76_spill] sm:$0xff] %v6385_v42 }
 0x1ab   :  { %8958 = vst [vmem:[#allocation71_spill] sm:$0xff] %v6360_v29  ;;  %v6365_v54 = vpop.f32.mrb[18].mxu1  ;;  %v6375_v29 = vsub.s32 %v3454_v4, %v5846_v43  ;;  %8965 = vst [vmem:[#allocation78_spill] sm:$0xff] %v6423_v9 }
 0x1ac   :  { %755 = vperm.xlu1 %5103, %v244_v2   ;;  %v3468_v2 = vadd.s32 4294967224, %v5840_v39  ;;  %8959 = vst [vmem:[#allocation72_spill] sm:$0xff] %v6365_v54  ;;  %v6372_v14 = vpop.f32.mrb[19].mxu1  ;;  %v3451_v54 = vrot.slane %v6144_v16, %v6368_v13  ;;  %v263_v16 = vld [vmem:[%s8781_s1 + $0x390] sm:$0xff] }
 0x1ad   :  { %v6354_v47 = vpop.xlane.xlu0 %2426  ;;  %8961 = vst [vmem:[#allocation74_spill] sm:$0xff] %v6372_v14  ;;  %8962 = vst [vmem:[#allocation75_spill] sm:$0xff] %v6375_v29  ;;  %v6387_v58 = vpop.f32.mrb[20].mxu1  ;;  %v3458_v55 = vrot.slane %v6193_v18, %v6375_v29 }
 0x1ae   :  { %v6391_v45 = vsub.s32 %v3468_v2, %v5846_v43  ;;  %v6396_v4 = vpop.f32.mrb[21].mxu1 }
 0x1af   :  { %v6405_v2 = vpop.f32.mrb[22].mxu1 }
 0x1b0   :  { %845 = vperm.xlu1 %5103, %v262_v24   ;;  %v3446_v24 = vsel %vm8833_vm6, %v3444_v5, %v3439_v1  ;;  %8964 = vst [vmem:[#allocation77_spill] sm:$0xff] %v6391_v45  ;;  %v3544_v5 = vrot.slane %v6304_v23, %v6340_v48  ;;  %v6412_v1 = vpop.f32.mrb[23].mxu1  ;;  %v3482_v23 = vadd.s32 4294967208, %v5840_v39  ;;  %v3472_v18 = vrot.slane %v6197_v22, %v6391_v45  ;;  %v264_v22 = vld [vmem:[%s8781_s1 + $0x398] sm:$0xff] }
 0x1b1   :  { %v6379_v34 = vpop.xlane.xlu0 %2432  ;;  %v3453_v19 = vsel %vm8832_vm7, %v3451_v54, %v3446_v24 }
 0x1b2   :  { %v3460_v54 = vsel %vm8831_vm8, %v3458_v55, %v3453_v19  ;;  %v3479_v55 = vrot.slane %v6166_v26, %v6423_v9 }
 0x1b4   :  { %760 = vperm.xlu1 %5103, %v245_v25   ;;  %v3535_v25 = vsel %vm8835_vm4, %v3534_v37, %v3530_v11  ;;  %v3549_v37 = vrot.slane %v6239_v53, %v6368_v13  ;;  %v3467_v11 = vsel %vm8830_vm9, %v3465_v12, %v3460_v54  ;;  %v3559_v53 = vrot.slane %v6354_v47, %v6385_v42 }
 0x1b5   :  { %v2429_v27 = vpop.xlane.xlu0 %2428  ;;  %v3540_v48 = vsel %vm8834_vm5, %v3539_v49, %v3535_v25  ;;  %v6437_v49 = vsub.s32 %v3482_v23, %v5846_v43  ;;  %v3474_v56 = vsel %vm8829_vm10, %v3472_v18, %v3467_v11  ;;  %v3503_v12 = vadd.s32 4294967184, %v5840_v39 }
 0x1b6   :  { %v3545_v41 = vsel %vm8833_vm6, %v3544_v5, %v3540_v48  ;;  %v3489_v48 = vadd.s32 4294967200, %v5840_v39  ;;  %v3564_v19 = vrot.slane %v2429_v27, %v6391_v45  ;;  %v6451_v23 = vsub.s32 %v3496_v50, %v5846_v43  ;;  %v211_v45 = vld [vmem:[%s8781_s1 + $0x1f0] sm:$0xff] }
 0x1b7   :  { %8966 = vst [vmem:[#allocation79_spill] sm:$0xff] %v6437_v49  ;;  %v3550_v5 = vsel %vm8832_vm7, %v3549_v37, %v3545_v41  ;;  %v265_v41 = vld [vmem:[%s8781_s1 + $0x3a0] sm:$0xff]  ;;  %v3481_v26 = vsel %vm8828_vm11, %v3479_v55, %v3474_v56  ;;  %v3486_v27 = vrot.slane %v6186_v60, %v6437_v49  ;;  %v3510_v54 = vadd.s32 4294967176, %v5840_v39  ;;  %v266_v60 = vld [vmem:[%s8781_s1 + $0x3a8] sm:$0xff]  ;;  %v6474_v56 = vpop.f32.mrb[24].mxu1 }
 0x1b8   :  { %850 = vperm.xlu1 %5103, %v263_v16   ;;  %v3554_v16 = vrot.slane %v6280_v57, %v6375_v29  ;;  %8967 = vst [vmem:[#allocation80_spill] sm:$0xff] %v6451_v23  ;;  %v6457_v47 = vsub.s32 %v3489_v48, %v5846_v43  ;;  %v3569_v11 = vrot.slane %v6327_v62, %v6423_v9 }
 0x1b9   :  { %v6430_v24 = vpop.xlane.xlu0 %2438  ;;  %v3488_v37 = vsel %vm8827_vm12, %v3486_v27, %v3481_v26  ;;  %v6477_v39 = vsub.s32 %v3503_v12, %v5846_v43 }
 0x1ba   :  { %8968 = vst [vmem:[#allocation81_spill] sm:$0xff] %v6457_v47  ;;  %v3555_v57 = vsel %vm8831_vm8, %v3554_v16, %v3550_v5  ;;  %v3493_v5 = vrot.slane %v6222_v31, %v6457_v47  ;;  %v3574_v16 = vrot.slane %v6379_v34, %v6437_v49  ;;  %v267_v31 = vld [vmem:[%s8781_s1 + $0x3b0] sm:$0xff]  ;;  %v209_v49 = vld [vmem:[%s8781_s1 + $0x1e0] sm:$0xff] }
 0x1bb   :  { %v3560_v18 = vsel %vm8830_vm9, %v3559_v53, %v3555_v57  ;;  %8969 = vst [vmem:[#allocation82_spill] sm:$0xff] %v6477_v39  ;;  %v6481_v53 = vpop.f32.mrb[25].mxu1  ;;  %v6499_v57 = vpop.xlane.xlu1 %2446 }
 0x1bc   :  { %855 = vperm.xlu1 %5103, %v264_v22   ;;  %v3565_v50 = vsel %vm8829_vm10, %v3564_v19, %v3560_v18  ;;  %v3500_v22 = vrot.slane %v6260_v36, %v6451_v23  ;;  %v3495_v55 = vsel %vm8826_vm13, %v3493_v5, %v3488_v37  ;;  %v6489_v19 = vsub.s32 %v3510_v54, %v5846_v43  ;;  %v6495_v26 = vpop.f32.mrb[26].mxu1  ;;  %v268_v5 = vld [vmem:[%s8781_s1 + $0x3b8] sm:$0xff] }
 0x1bd   :  { %v2435_v25 = vpop.xlane.xlu0 %2434  ;;  %v3570_v36 = vsel %vm8828_vm11, %v3569_v11, %v3565_v50  ;;  %8971 = vst [vmem:[#allocation84_spill] sm:$0xff] %v6499_v57  ;;  %v6503_v18 = vpop.f32.mrb[27].mxu1  ;;  %v3589_v54 = vrot.slane %v6430_v24, %v6477_v39 }
 0x1be   :  { %v3579_v62 = vrot.slane %v2435_v25, %v6457_v47  ;;  %8970 = vst [vmem:[#allocation83_spill] sm:$0xff] %v6489_v19  ;;  %v3502_v12 = vsel %vm8825_vm14, %v3500_v22, %v3495_v55  ;;  %v3507_v25 = vrot.slane %v6206_v30, %v6477_v39  ;;  %v3575_v34 = vsel %vm8827_vm12, %v3574_v16, %v3570_v36  ;;  %v270_v55 = vld [vmem:[%s8781_s1 + $0x3c8] sm:$0xff]  ;;  %v6529_v16 = vpop.f32.mrb[28].mxu1 }
 0x1bf   :  { %v3514_v11 = vrot.slane %v6235_v17, %v6489_v19  ;;  %v6519_v36 = vpop.xlane.xlu1 %2444  ;;  %8974 = vst [vmem:[#allocation87_spill] sm:$0xff] %v6529_v16  ;;  %v8999_v16 = vld [vmem:[#allocation13_spill] sm:$0xff] }
 0x1c0   :  { %860 = vperm.xlu1 %5103, %v265_v41   ;;  %v3580_v50 = vsel %vm8826_vm13, %v3579_v62, %v3575_v34  ;;  %v3509_v30 = vsel %vm8824_vm15, %v3507_v25, %v3502_v12  ;;  %8972 = vst [vmem:[#allocation85_spill] sm:$0xff] %v6519_v36  ;;  %v269_v62 = vld [vmem:[%s8781_s1 + $0x3c0] sm:$0xff]  ;;  %v6531_v12 = vpop.f32.mrb[29].mxu1 }
 0x1c1   :  { %v2441_v48 = vpop.xlane.xlu0 %2440  ;;  %v6538_v25 = vpop.f32.mrb[30].mxu1 }
 0x1c2   :  { %v3594_v37 = vrot.slane %v2441_v48, %v6489_v19  ;;  %v3516_v48 = vsel %vm8823_vm0, %v3514_v11, %v3509_v30  ;;  %8976 = vst [vmem:[#allocation89_spill] sm:$0xff] %v6538_v25  ;;  %v6540_v34 = vpop.f32.mrb[31].mxu1  ;;  %v273_v11 = vld [vmem:[%s8781_s1 + $0x3e0] sm:$0xff]  ;;  %v203_v19 = vld [vmem:[%s8781_s1 + $0x1b0] sm:$0xff] }
 0x1c4   :  { %865 = vperm.xlu1 %5103, %v266_v60  }
 0x1c5   :  { %v2437_v41 = vpop.xlane.xlu0 %2436 }
 0x1c6   :  { %v3584_v27 = vrot.slane %v2437_v41, %v6451_v23 }
 0x1c8   :  { %870 = vperm.xlu1 %5103, %v267_v31   ;;  %v3585_v22 = vsel %vm8825_vm14, %v3584_v27, %v3580_v50  ;;  %v271_v31 = vld [vmem:[%s8781_s1 + $0x3d0] sm:$0xff] }
 0x1c9   :  { %v3590_v60 = vsel %vm8824_vm15, %v3589_v54, %v3585_v22  ;;  %v6545_v54 = vld [vmem:[%s8783_s3] ss:$0 sm:$0xff] }
 0x1ca   :  { %v3595_v24 = vsel %vm8823_vm0, %v3594_v37, %v3590_v60  ;;  %v272_v37 = vld [vmem:[%s8781_s1 + $0x3d8] sm:$0xff]  ;;  %v6560_v60 = vld [vmem:[%s8783_s3 + $0x1] ss:$0 sm:$0xff]  ;;  %v959_v42 = vmul.f32 %v6545_v54, %v5788_v44 }
 0x1cb   :  { %4142 = vmatprep.mubr.f32.mxu1 %v3595_v24  ;;  %v217_v44 = vld [vmem:[%s8781_s1 + $0x220] sm:$0xff] }
 0x1cc   :  { %875 = vperm.xlu1 %5103, %v268_v5   ;;  %4143 = vmatmul.mubr.f32.vlgmr.msra.gmra.mrb[36].mxu1 %v3516_v48 }
 0x1d0   :  { %880 = vperm.xlu1 %5103, %v269_v62   ;;  %v6524_v17 = vpop.xlane.xlu1 %2476  ;;  %v6568_v62 = vpop.f32.mrb[32].mxu1 }
 0x1d1   :  { %8973 = vst [vmem:[#allocation86_spill] sm:$0xff] %v6524_v17  ;;  %8977 = vst [vmem:[#allocation90_spill] sm:$0xff] %v6568_v62 }
 0x1d4   :  { %885 = vperm.xlu1 %5103, %v270_v55   ;;  %v6533_v41 = vpop.xlane.xlu1 %2448  ;;  %v6570_v55 = vpop.f32.mrb[33].mxu1 }
 0x1d5   :  { %8975 = vst [vmem:[#allocation88_spill] sm:$0xff] %v6533_v41  ;;  %8978 = vst [vmem:[#allocation91_spill] sm:$0xff] %v6570_v55  ;;  %v8998_v55 = vld [vmem:[#allocation11_spill] sm:$0xff] }
 0x1d8   :  { %890 = vperm.xlu1 %5103, %v271_v31   ;;  %v546_v27 = vpop.permute.xlu1 %545 }
 0x1d9   :  { %v975_v50 = vmul.f32 %v6545_v54, %v546_v27  ;;  %v275_v27 = vld [vmem:[%s8781_s1 + $0x3f0] sm:$0xff] }
 0x1db   :  { %v1818_v22 = vadd.f32 %v6089_v15, %v975_v50  ;;  %v274_v15 = vld [vmem:[%s8781_s1 + $0x3e8] sm:$0xff]  ;;  %v6577_v50 = vpop.f32.mrb[34].mxu1 }
 0x1dc   :  { %895 = vperm.xlu1 %5103, %v272_v37   ;;  %v6552_v30 = vpop.permute.xlu1 %555  ;;  %8979 = vst [vmem:[#allocation92_spill] sm:$0xff] %v6577_v50  ;;  %v6579_v37 = vpop.f32.mrb[35].mxu1 }
 0x1dd   :  { %v2175_v5 = vadd.f32 %v6560_v60, %v1818_v22  ;;  %8980 = vst [vmem:[#allocation93_spill] sm:$0xff] %v6579_v37  ;;  %v8996_v37 = vld [vmem:[#allocation18_spill] sm:$0xff] }
 0x1df   :  { %v2303_v24 = vmax.f32 %v2175_v5, 0.0 }
 0x1e0   :  { %900 = vperm.xlu1 %5103, %v273_v11   ;;  %v6563_v48 = vpop.permute.xlu1 %565  ;;  %v276_v11 = vld [vmem:[%s8781_s1 + $0x3f8] sm:$0xff] }
 0x1e1   :  { %2484 = vadd.xlane.f32.xlu0 %v2303_v24 }
 0x1e4   :  { %905 = vperm.xlu1 %5103, %v274_v15   ;;  %v6572_v31 = vpop.permute.xlu1 %575 }
 0x1e8   :  { %910 = vperm.xlu1 %5103, %v275_v27   ;;  %v6581_v22 = vpop.permute.xlu1 %585  ;;  %v205_v27 = vld [vmem:[%s8781_s1 + $0x1c0] sm:$0xff] }
 0x1ec   :  { %915 = vperm.xlu1 %5103, %v276_v11   ;;  %v6586_v5 = vpop.permute.xlu1 %595  ;;  %v207_v11 = vld [vmem:[%s8781_s1 + $0x1d0] sm:$0xff] }
 0x1f0   :  { %v6588_v24 = vpop.permute.xlu1 %605 }
 0x1f4   :  { %v6590_v15 = vpop.permute.xlu1 %615 }
 0x1f7   :  { %550 = vperm.xlu0 %5102, %v203_v19  }
 0x1f8   :  { %v6595_v39 = vpop.permute.xlu1 %625 }
 0x1fb   :  { %560 = vperm.xlu0 %5102, %v205_v27   ;;  %v958_v27 = vmul.f32 %v6545_v54, %v5782_v61  ;;  %v215_v61 = vld [vmem:[%s8781_s1 + $0x210] sm:$0xff] }
 0x1fc   :  { %v6600_v23 = vpop.permute.xlu1 %635 }
 0x1ff   :  { %570 = vperm.xlu0 %5102, %v207_v11   ;;  %v1751_v11 = vadd.f32 %v5833_v33, %v958_v27  ;;  %v223_v27 = vld [vmem:[%s8781_s1 + $0x250] sm:$0xff] }
 0x200   :  { %v646_v47 = vpop.permute.xlu1 %645 }
 0x201   :  { %v995_v19 = vmul.f32 %v6545_v54, %v646_v47  ;;  %v213_v47 = vld [vmem:[%s8781_s1 + $0x200] sm:$0xff] }
 0x203   :  { %v6610_v9 = vadd.f32 %v6184_v20, %v995_v19  ;;  %580 = vperm.xlu0 %5102, %v209_v49   ;;  %v2158_v20 = vadd.f32 %v6560_v60, %v1751_v11  ;;  %v1754_v49 = vadd.f32 %v5844_v40, %v959_v42  ;;  %v219_v40 = vld [vmem:[%s8781_s1 + $0x230] sm:$0xff]  ;;  %v221_v42 = vld [vmem:[%s8781_s1 + $0x240] sm:$0xff] }
 0x204   :  { %v225_v11 = vld [vmem:[%s8781_s1 + $0x260] sm:$0xff] }
 0x205   :  { %v2286_v19 = vmax.f32 %v2158_v20, 0.0  ;;  %v2159_v33 = vadd.f32 %v6560_v60, %v1754_v49  ;;  %v229_v20 = vld [vmem:[%s8781_s1 + $0x280] sm:$0xff]  ;;  %v231_v49 = vld [vmem:[%s8781_s1 + $0x290] sm:$0xff] }
 0x207   :  { %590 = vperm.xlu0 %5102, %v211_v45   ;;  %v2287_v45 = vmax.f32 %v2159_v33, 0.0  ;;  %v237_v33 = vld [vmem:[%s8781_s1 + $0x2c0] sm:$0xff] }
 0x20b   :  { %600 = vperm.xlu0 %5102, %v213_v47   ;;  %v227_v47 = vld [vmem:[%s8781_s1 + $0x270] sm:$0xff] }
 0x20f   :  { %610 = vperm.xlu0 %5102, %v215_v61   ;;  %v233_v61 = vld [vmem:[%s8781_s1 + $0x2a0] sm:$0xff] }
 0x210   :  { %2450 = vadd.xlane.f32.xlu1 %v2286_v19  ;;  %v235_v19 = vld [vmem:[%s8781_s1 + $0x2b0] sm:$0xff] }
 0x213   :  { %620 = vperm.xlu0 %5102, %v217_v44   ;;  %v239_v44 = vld [vmem:[%s8781_s1 + $0x2d0] sm:$0xff] }
 0x214   :  { %2452 = vadd.xlane.f32.xlu1 %v2287_v45  ;;  %v241_v45 = vld [vmem:[%s8781_s1 + $0x2e0] sm:$0xff] }
 0x217   :  { %630 = vperm.xlu0 %5102, %v219_v40   ;;  %v243_v40 = vld [vmem:[%s8781_s1 + $0x2f0] sm:$0xff] }
 0x21b   :  { %640 = vperm.xlu0 %5102, %v221_v42   ;;  %v261_v42 = vld [vmem:[%s8781_s1 + $0x380] sm:$0xff] }
 0x21f   :  { %650 = vperm.xlu0 %5102, %v223_v27   ;;  %v246_v27 = vld [vmem:[%s8781_s1 + $0x308] sm:$0xff] }
 0x223   :  { %660 = vperm.xlu0 %5102, %v225_v11   ;;  %v247_v11 = vld [vmem:[%s8781_s1 + $0x310] sm:$0xff] }
 0x227   :  { %670 = vperm.xlu0 %5102, %v227_v47   ;;  %v248_v47 = vld [vmem:[%s8781_s1 + $0x318] sm:$0xff] }
 0x22b   :  { %680 = vperm.xlu0 %5102, %v229_v20   ;;  %v6683_v20 = vpop.xlane.xlu0 %2442 }
 0x22c   :  { %8981 = vst [vmem:[#allocation94_spill] sm:$0xff] %v6683_v20  ;;  %v8991_v20 = vld [vmem:[#allocation5_spill] sm:$0xff] }
 0x22f   :  { %690 = vperm.xlu0 %5102, %v231_v49   ;;  %v249_v49 = vld [vmem:[%s8781_s1 + $0x320] sm:$0xff] }
 0x233   :  { %700 = vperm.xlu0 %5102, %v233_v61   ;;  %v6688_v61 = vpop.xlane.xlu0 %2478 }
 0x234   :  { %8982 = vst [vmem:[#allocation95_spill] sm:$0xff] %v6688_v61 }
 0x237   :  { %710 = vperm.xlu0 %5102, %v235_v19   ;;  %v250_v19 = vld [vmem:[%s8781_s1 + $0x328] sm:$0xff] }
 0x23b   :  { %720 = vperm.xlu0 %5102, %v237_v33   ;;  %v251_v33 = vld [vmem:[%s8781_s1 + $0x330] sm:$0xff] }
 0x23f   :  { %730 = vperm.xlu0 %5102, %v239_v44   ;;  %v6696_v44 = vpop.xlane.xlu0 %2474 }
 0x240   :  { %8983 = vst [vmem:[#allocation96_spill] sm:$0xff] %v6696_v44 }
 0x243   :  { %740 = vperm.xlu0 %5102, %v241_v45   ;;  %v6698_v45 = vpop.permute.xlu1 %655 }
 0x247   :  { %750 = vperm.xlu0 %5102, %v243_v40   ;;  %v252_v40 = vld [vmem:[%s8781_s1 + $0x338] sm:$0xff] }
 0x24b   :  { %840 = vperm.xlu0 %5102, %v261_v42   ;;  %v6703_v42 = vpop.xlane.xlu0 %2480 }
 0x24c   :  { %8984 = vst [vmem:[#allocation97_spill] sm:$0xff] %v6703_v42 }
 0x24f   :  { %765 = vperm.xlu0 %5102, %v246_v27   ;;  %v6705_v27 = vpop.permute.xlu1 %665 }
 0x253   :  { %770 = vperm.xlu0 %5102, %v247_v11   ;;  %v253_v11 = vld [vmem:[%s8781_s1 + $0x340] sm:$0xff] }
 0x257   :  { %775 = vperm.xlu0 %5102, %v248_v47   ;;  %v254_v47 = vld [vmem:[%s8781_s1 + $0x348] sm:$0xff] }
 0x25b   :  { %780 = vperm.xlu0 %5102, %v249_v49   ;;  %v6713_v49 = vpop.xlane.xlu0 %2482 }
 0x25c   :  { %8985 = vst [vmem:[#allocation98_spill] sm:$0xff] %v6713_v49  ;;  %v960_v49 = vmul.f32 %v6545_v54, %v5794_v35 }
 0x25f   :  { %785 = vperm.xlu0 %5102, %v250_v19   ;;  %v6715_v19 = vpop.permute.xlu1 %675 }
 0x263   :  { %790 = vperm.xlu0 %5102, %v251_v33   ;;  %v255_v33 = vld [vmem:[%s8781_s1 + $0x350] sm:$0xff]  ;;  %v6722_v29 = vpop.permute.xlu1 %685 }
 0x267   :  { %795 = vperm.xlu0 %5102, %v252_v40   ;;  %v6737_v57 = vpop.permute.xlu1 %695 }
 0x26b   :  { %800 = vperm.xlu0 %5102, %v253_v11   ;;  %v256_v11 = vld [vmem:[%s8781_s1 + $0x358] sm:$0xff] }
 0x26e   :  { %v6720_v40 = vpop.xlane.xlu0 %2484 }
 0x26f   :  { %805 = vperm.xlu0 %5102, %v254_v47   ;;  %8986 = vst [vmem:[#allocation99_spill] sm:$0xff] %v6720_v40  ;;  %v257_v47 = vld [vmem:[%s8781_s1 + $0x360] sm:$0xff]  ;;  %v1759_v40 = vadd.f32 %v5831_v59, %v960_v49 }
 0x273   :  { %810 = vperm.xlu0 %5102, %v255_v33   ;;  %v977_v33 = vmul.f32 %v6545_v54, %v6552_v30  ;;  %v961_v30 = vmul.f32 %v6545_v54, %v5801_v7  ;;  %v260_v7 = vld [vmem:[%s8781_s1 + $0x378] sm:$0xff] }
 0x275   :  { %v1826_v61 = vadd.f32 %v6081_v10, %v977_v33  ;;  %v962_v10 = vmul.f32 %v6545_v54, %v5809_v6 }
 0x276   :  { %v551_v13 = vpop.permute.xlu0 %550 }
 0x277   :  { %v976_v41 = vmul.f32 %v6545_v54, %v551_v13  ;;  %815 = vperm.xlu0 %5102, %v256_v11   ;;  %v258_v13 = vld [vmem:[%s8781_s1 + $0x368] sm:$0xff]  ;;  %v2160_v11 = vadd.f32 %v6560_v60, %v1759_v40  ;;  %v2177_v40 = vadd.f32 %v6560_v60, %v1826_v61 }
 0x279   :  { %v1823_v42 = vadd.f32 %v6024_v52, %v976_v41  ;;  %v6747_v52 = vpop.permute.xlu1 %705  ;;  %v259_v41 = vld [vmem:[%s8781_s1 + $0x370] sm:$0xff] }
 0x27a   :  { %v561_v50 = vpop.permute.xlu0 %560 }
 0x27b   :  { %820 = vperm.xlu0 %5102, %v257_v47   ;;  %v2176_v35 = vadd.f32 %v6560_v60, %v1823_v42  ;;  %v2288_v42 = vmax.f32 %v2160_v11, 0.0  ;;  %v1762_v47 = vadd.f32 %v5838_v38, %v961_v30  ;;  %v2305_v38 = vmax.f32 %v2177_v40, 0.0 }
 0x27d   :  { %v2304_v59 = vmax.f32 %v2176_v35, 0.0  ;;  %v2161_v33 = vadd.f32 %v6560_v60, %v1762_v47  ;;  %v1767_v35 = vadd.f32 %v5870_v3, %v962_v10  ;;  %v6763_v11 = vpop.permute.xlu1 %715  ;;  %v963_v3 = vmul.f32 %v6545_v54, %v5811_v63 }
 0x27e   :  { %v571_v49 = vpop.permute.xlu0 %570 }
 0x27f   :  { %825 = vperm.xlu0 %5102, %v258_v13   ;;  %2486 = vadd.xlane.f32.xlu1 %v2304_v59  ;;  %v979_v13 = vmul.f32 %v6545_v54, %v6563_v48  ;;  %v2289_v6 = vmax.f32 %v2161_v33, 0.0  ;;  %v2162_v59 = vadd.f32 %v6560_v60, %v1767_v35  ;;  %v1770_v47 = vadd.f32 %v5887_v8, %v963_v3 }
 0x280   :  { %v980_v10 = vmul.f32 %v6545_v54, %v571_v49  ;;  %v981_v49 = vmul.f32 %v6545_v54, %v6572_v31 }
 0x281   :  { %v1834_v30 = vadd.f32 %v6110_v46, %v979_v13  ;;  %v2290_v48 = vmax.f32 %v2162_v59, 0.0  ;;  %v2163_v46 = vadd.f32 %v6560_v60, %v1770_v47  ;;  %v8987_v47 = vld [vmem:[#allocation16_spill] sm:$0xff] }
 0x282   :  { %v581_v62 = vpop.permute.xlu0 %580  ;;  %v1839_v35 = vadd.f32 %v6101_v32, %v980_v10  ;;  %v965_v32 = vmul.f32 %v6545_v54, %v5829_v28  ;;  %v8988_v10 = vld [vmem:[#allocation9_spill] sm:$0xff]  ;;  %v8990_v28 = vld [vmem:[#allocation15_spill] sm:$0xff] }
 0x283   :  { %830 = vperm.xlu0 %5102, %v259_v41   ;;  %2454 = vadd.xlane.f32.xlu1 %v2288_v42  ;;  %v6773_v42 = vpop.permute.xlu1 %725  ;;  %v2179_v40 = vadd.f32 %v6560_v60, %v1834_v30 }
 0x284   :  { %v2180_v59 = vadd.f32 %v6560_v60, %v1839_v35  ;;  %v8989_v35 = vld [vmem:[#allocation12_spill] sm:$0xff] }
 0x285   :  { %v2307_v33 = vmax.f32 %v2179_v40, 0.0  ;;  %v1842_v40 = vadd.f32 %v8987_v47, %v981_v49  ;;  %v967_v49 = vmul.f32 %v6545_v54, %v8991_v20 }
 0x286   :  { %v6765_v61 = vpop.permute.xlu0 %590  ;;  %v2308_v31 = vmax.f32 %v2180_v59, 0.0 }
 0x287   :  { %835 = vperm.xlu0 %5102, %v260_v7   ;;  %2488 = vadd.xlane.f32.xlu1 %v2305_v38  ;;  %v6782_v13 = vpop.permute.xlu1 %735  ;;  %v964_v38 = vmul.f32 %v6545_v54, %v5823_v21  ;;  %v966_v21 = vmul.f32 %v6545_v54, %v5842_v51  ;;  %v982_v51 = vmul.f32 %v6545_v54, %v581_v62 }
 0x289   :  { %v1775_v8 = vadd.f32 %v5865_v0, %v964_v38  ;;  %v1783_v38 = vadd.f32 %v8989_v35, %v966_v21  ;;  %v1847_v14 = vadd.f32 %v8996_v37, %v982_v51  ;;  %v2683_v51 = vadd.s32 384, %v5846_v43 }
 0x28a   :  { %v6769_v41 = vpop.permute.xlu0 %600 }
 0x28b   :  { %2456 = vadd.xlane.f32.xlu1 %v2289_v6  ;;  %v2291_v6 = vmax.f32 %v2163_v46, 0.0  ;;  %v6796_v3 = vpop.permute.xlu1 %745  ;;  %v2164_v0 = vadd.f32 %v6560_v60, %v1775_v8  ;;  %v1778_v46 = vadd.f32 %v8988_v10, %v965_v32  ;;  %v2181_v8 = vadd.f32 %v6560_v60, %v1842_v40  ;;  %v8994_v40 = vld [vmem:[#allocation14_spill] sm:$0xff] }
 0x28c   :  { %v2166_v21 = vadd.f32 %v6560_v60, %v1783_v38  ;;  %v1786_v10 = vadd.f32 %v8994_v40, %v967_v49  ;;  %v984_v49 = vmul.f32 %v6545_v54, %v6765_v61  ;;  %v9002_v40 = vld [vmem:[#allocation17_spill] sm:$0xff] }
 0x28d   :  { %v2292_v36 = vmax.f32 %v2164_v0, 0.0  ;;  %v2165_v59 = vadd.f32 %v6560_v60, %v1778_v46  ;;  %v8992_v0 = vld [vmem:[#allocation10_spill] sm:$0xff]  ;;  %v8995_v46 = vld [vmem:[#allocation20_spill] sm:$0xff]  ;;  %v2309_v38 = vmax.f32 %v2181_v8, 0.0  ;;  %v2684_v8 = vadd.s32 392, %v5846_v43 }
 0x28e   :  { %v6778_v7 = vpop.permute.xlu0 %610  ;;  %v2294_v25 = vmax.f32 %v2166_v21, 0.0  ;;  %v2667_v21 = vadd.s32 256, %v5846_v43 }
 0x28f   :  { %2458 = vadd.xlane.f32.xlu1 %v2290_v48  ;;  %v978_v48 = vmul.f32 %v6545_v54, %v561_v50  ;;  %v983_v50 = vmul.f32 %v6545_v54, %v6581_v22  ;;  %v6815_v32 = vpop.permute.xlu1 %755  ;;  %v969_v22 = vmul.f32 %v6545_v54, %v8992_v0  ;;  %v2293_v17 = vmax.f32 %v2165_v59, 0.0 }
 0x292   :  { %v6784_v63 = vpop.permute.xlu0 %620 }
 0x293   :  { %2492 = vadd.xlane.f32.xlu1 %v2307_v33 }
 0x296   :  { %v6792_v30 = vpop.permute.xlu0 %630 }
 0x297   :  { %2460 = vadd.xlane.f32.xlu1 %v2291_v6  ;;  %v1831_v6 = vadd.f32 %v8990_v28, %v978_v48  ;;  %v1850_v28 = vadd.f32 %v8995_v46, %v983_v50  ;;  %v6837_v50 = vpop.permute.xlu1 %845 }
 0x299   :  { %v2178_v20 = vadd.f32 %v6560_v60, %v1831_v6  ;;  %v2167_v6 = vadd.f32 %v6560_v60, %v1786_v10  ;;  %v2183_v59 = vadd.f32 %v6560_v60, %v1850_v28  ;;  %v2669_v28 = vadd.s32 272, %v5846_v43  ;;  %v9012_v10 = vld [vmem:[#allocation39_spill] sm:$0xff] }
 0x29a   :  { %v6804_v33 = vpop.permute.xlu0 %640 }
 0x29b   :  { %2494 = vadd.xlane.f32.xlu1 %v2308_v31  ;;  %v8993_v31 = vld [vmem:[#allocation8_spill] sm:$0xff]  ;;  %v2306_v37 = vmax.f32 %v2178_v20, 0.0 }
 0x29c   :  { %v968_v62 = vmul.f32 %v6545_v54, %v8993_v31  ;;  %v1794_v31 = vadd.f32 %v8999_v16, %v969_v22  ;;  %v2668_v16 = vadd.s32 264, %v5846_v43  ;;  %v9001_v22 = vld [vmem:[#allocation7_spill] sm:$0xff] }
 0x29d   :  { %vm2944_vm15 = vcmp.lt.s32.totalorder %v2683_v51, %v9001_v22  ;;  %vm2945_vm14 = vcmp.lt.s32.totalorder %v2684_v8, %v9001_v22  ;;  %vm2928_vm9 = vcmp.lt.s32.totalorder %v2667_v21, %v9001_v22 }
 0x29e   :  { %v6817_v47 = vpop.permute.xlu0 %650  ;;  %v1791_v0 = vadd.f32 %v8998_v55, %v968_v62  ;;  %v2182_v55 = vadd.f32 %v6560_v60, %v1847_v14  ;;  %v985_v62 = vmul.f32 %v6545_v54, %v6586_v5  ;;  %v1855_v14 = vadd.f32 %v9002_v40, %v984_v49  ;;  %v6872_v49 = vpop.permute.xlu1 %760 }
 0x29f   :  { %v4729_v48 = vpop.f32.mrb[36].mxu1  ;;  %2462 = vadd.xlane.f32.xlu1 %v2292_v36  ;;  %vm2929_vm8 = vcmp.lt.s32.totalorder %v2668_v16, %v9001_v22  ;;  %v2686_v5 = vadd.s32 408, %v5846_v43 }
 0x2a0   :  { %v4730_v35 = vpop.f32.mrb[37].mxu1  ;;  %v2168_v20 = vadd.f32 %v6560_v60, %v1791_v0  ;;  %v2310_v46 = vmax.f32 %v2182_v55, 0.0  ;;  %v9008_v55 = vld [vmem:[#allocation19_spill] sm:$0xff]  ;;  %v2184_v40 = vadd.f32 %v6560_v60, %v1855_v14  ;;  %v986_v0 = vmul.f32 %v6545_v54, %v6769_v41 }
 0x2a1   :  { %v6828_v44 = vadd.f32 %v4730_v35, %v4729_v48  ;;  %v9000_v48 = vld [vmem:[#allocation6_spill] sm:$0xff]  ;;  %v2685_v35 = vadd.s32 400, %v5846_v43  ;;  %v2672_v41 = vadd.s32 296, %v5846_v43 }
 0x2a2   :  { %v6830_v36 = vpop.permute.xlu0 %660  ;;  %vm2814_vm1 = vcmp.ge.s32.totalorder %v2683_v51, %v9000_v48  ;;  %vm2815_vm0 = vcmp.ge.s32.totalorder %v2684_v8, %v9000_v48  ;;  %vm2798_vm12 = vcmp.ge.s32.totalorder %v2667_v21, %v9000_v48  ;;  %vm2799_vm11 = vcmp.ge.s32.totalorder %v2668_v16, %v9000_v48 }
 0x2a3   :  { %8997 = vst [vmem:[#allocation16_spill] sm:$0xff] %v6828_v44  ;;  %2496 = vadd.xlane.f32.xlu1 %v2309_v38  ;;  %vm6854_vm13 = vmand %vm2814_vm1, %vm2944_vm15  ;;  %v1003_v38 = vmul.f32 %v6545_v54, %v6722_v29  ;;  %v9005_v51 = vmov 0.125|0.125   ;;  %v6885_v29 = vadd.f32 %v6560_v60, %v1794_v31  ;;  %v2295_v8 = vmax.f32 %v2167_v6, 0.0 }
 0x2a4   :  { %vm3073_vm10 = vmand %vm2815_vm0, %vm2945_vm14  ;;  %vm2816_vm0 = vcmp.ge.s32.totalorder %v2685_v35, %v9000_v48  ;;  %v1858_v21 = vadd.f32 %v9008_v55, %v985_v62  ;;  %v2687_v31 = vadd.s32 416, %v5846_v43  ;;  %v9011_v62 = vld [vmem:[#allocation24_spill] sm:$0xff]  ;;  %v2312_v55 = vmax.f32 %v2184_v40, 0.0  ;;  %v9016_v40 = vld [vmem:[#allocation22_spill] sm:$0xff] }
 0x2a5   :  { %vm4999_vm15 = vmpackc.low %vm3073_vm10, %vm6854_vm13  ;;  %vm2946_vm10 = vcmp.lt.s32.totalorder %v2685_v35, %v9001_v22  ;;  %v2296_v35 = vmax.f32 %v2168_v20, 0.0  ;;  %v9015_v20 = vld [vmem:[#allocation37_spill] sm:$0xff] }
 0x2a6   :  { %2490 = vadd.xlane.f32.xlu0 %v2306_v37  ;;  %v6845_v61 = vpop.permute.xlu0 %670  ;;  %5000 = vmatprep.subr.msk.bf16.mxu1 %vm4999_vm15, %v9005_v51  ;;  %vm6877_vm14 = vmand %vm2798_vm12, %vm2928_vm9  ;;  %vm2817_vm9 = vcmp.ge.s32.totalorder %v2686_v5, %v9000_v48  ;;  %vm2947_vm12 = vcmp.lt.s32.totalorder %v2686_v5, %v9001_v22  ;;  %vm2930_vm15 = vcmp.lt.s32.totalorder %v2669_v28, %v9001_v22 }
 0x2a7   :  { %2464 = vadd.xlane.f32.xlu1 %v2293_v17  ;;  %v987_v17 = vmul.f32 %v6545_v54, %v6588_v24  ;;  %v2670_v24 = vadd.s32 280, %v5846_v43  ;;  %vm3057_vm13 = vmand %vm2799_vm11, %vm2929_vm8  ;;  %vm2800_vm11 = vcmp.ge.s32.totalorder %v2669_v28, %v9000_v48  ;;  %v2297_v28 = vmax.f32 %v6885_v29, 0.0  ;;  %v9025_v29 = vld [vmem:[#allocation23_spill] sm:$0xff] }
 0x2a8   :  { %vm5001_vm1 = vmpackc.low %vm3057_vm13, %vm6877_vm14 }
 0x2a9   :  { %5002 = vmatpush3.bf16.msk.msra.mxu1 %vm5001_vm1, %v9005_v51  ;;  %vm6904_vm8 = vmand %vm2816_vm0, %vm2946_vm10  ;;  %v1866_v14 = vadd.f32 %v9011_v62, %v987_v17  ;;  %vm2801_vm0 = vcmp.ge.s32.totalorder %v2670_v24, %v9000_v48  ;;  %vm2931_vm10 = vcmp.lt.s32.totalorder %v2670_v24, %v9001_v22  ;;  %v2671_v17 = vadd.s32 288, %v5846_v43 }
 0x2aa   :  { %2466 = vadd.xlane.f32.xlu0 %v2294_v25  ;;  %v681_v37 = vpop.permute.xlu0 %680  ;;  %v2311_v25 = vmax.f32 %v2183_v59, 0.0  ;;  %v2688_v59 = vadd.s32 424, %v5846_v43  ;;  %vm3075_vm14 = vmand %vm2817_vm9, %vm2947_vm12  ;;  %vm2818_vm12 = vcmp.ge.s32.totalorder %v2687_v31, %v9000_v48  ;;  %vm2948_vm1 = vcmp.lt.s32.totalorder %v2687_v31, %v9001_v22 }
 0x2ab   :  { %2498 = vadd.xlane.f32.xlu1 %v2310_v46  ;;  %v1002_v6 = vmul.f32 %v6545_v54, %v681_v37  ;;  %v1930_v46 = vadd.f32 %v9012_v10, %v1003_v38  ;;  %vm5003_vm13 = vmpackc.low %vm3075_vm14, %vm6904_vm8  ;;  %v6924_v38 = vpop.permute.xlu1 %850  ;;  %v2689_v24 = vadd.s32 432, %v5846_v43  ;;  %v988_v10 = vmul.f32 %v6545_v54, %v6778_v7 }
 0x2ac   :  { %5004 = vmatprep.subr.msk.bf16.mxu1 %vm5003_vm13, %v9005_v51  ;;  %vm6932_vm9 = vmand %vm2800_vm11, %vm2930_vm15  ;;  %vm2819_vm14 = vcmp.ge.s32.totalorder %v2688_v59, %v9000_v48  ;;  %vm2949_vm11 = vcmp.lt.s32.totalorder %v2688_v59, %v9001_v22  ;;  %vm2932_vm13 = vcmp.lt.s32.totalorder %v2671_v17, %v9001_v22  ;;  %v989_v31 = vmul.f32 %v6545_v54, %v6590_v15 }
 0x2ad   :  { %vm3059_vm8 = vmand %vm2801_vm0, %vm2931_vm10  ;;  %v2203_v16 = vadd.f32 %v6560_v60, %v1930_v46  ;;  %vm2802_vm10 = vcmp.ge.s32.totalorder %v2671_v17, %v9000_v48  ;;  %v2673_v7 = vadd.s32 304, %v5846_v43 }
 0x2ae   :  { %2468 = vadd.xlane.f32.xlu0 %v2295_v8  ;;  %v691_v37 = vpop.permute.xlu0 %690  ;;  %v2185_v8 = vadd.f32 %v6560_v60, %v1858_v21  ;;  %v6948_v21 = vadd.f32 %v6560_v60, %v1866_v14  ;;  %vm5005_vm15 = vmpackc.low %vm3059_vm8, %vm6932_vm9  ;;  %v2690_v14 = vadd.s32 440, %v5846_v43 }
 0x2af   :  { %2500 = vadd.xlane.f32.xlu1 %v2311_v25  ;;  %v1927_v25 = vadd.f32 %v9015_v20, %v1002_v6  ;;  %v1863_v6 = vadd.f32 %v9016_v40, %v986_v0  ;;  %5006 = vmatpush3.bf16.msk.msra.mxu1 %vm5005_vm15, %v9005_v51  ;;  %vm6962_vm0 = vmand %vm2818_vm12, %vm2948_vm1  ;;  %v1004_v46 = vmul.f32 %v6545_v54, %v691_v37  ;;  %v6985_v5 = vpop.permute.xlu1 %855  ;;  %v2331_v17 = vmax.f32 %v2203_v16, 0.0 }
 0x2b0   :  { %vm3077_vm9 = vmand %vm2819_vm14, %vm2949_vm11  ;;  %vm2803_vm12 = vcmp.ge.s32.totalorder %v2672_v41, %v9000_v48  ;;  %vm2933_vm1 = vcmp.lt.s32.totalorder %v2672_v41, %v9001_v22  ;;  %v2315_v37 = vmax.f32 %v6948_v21, 0.0  ;;  %vm2820_vm11 = vcmp.ge.s32.totalorder %v2689_v24, %v9000_v48  ;;  %v9022_v21 = vld [vmem:[#allocation36_spill] sm:$0xff] }
 0x2b1   :  { %v2202_v0 = vadd.f32 %v6560_v60, %v1927_v25  ;;  %vm5007_vm8 = vmpackc.low %vm3077_vm9, %vm6962_vm0  ;;  %vm2950_vm15 = vcmp.lt.s32.totalorder %v2689_v24, %v9001_v22  ;;  %v1005_v20 = vmul.f32 %v6545_v54, %v6737_v57  ;;  %v2186_v25 = vadd.f32 %v6560_v60, %v1863_v6  ;;  %v9026_v24 = vld [vmem:[#allocation38_spill] sm:$0xff] }
 0x2b2   :  { %2470 = vadd.xlane.f32.xlu0 %v2296_v35  ;;  %v6951_v62 = vpop.permute.xlu0 %700  ;;  %v2313_v35 = vmax.f32 %v2185_v8, 0.0  ;;  %5008 = vmatprep.subr.msk.bf16.mxu1 %vm5007_vm8, %v9005_v51  ;;  %vm6994_vm14 = vmand %vm2802_vm10, %vm2932_vm13  ;;  %v2674_v8 = vadd.s32 312, %v5846_v43  ;;  %vm2821_vm10 = vcmp.ge.s32.totalorder %v2690_v14, %v9000_v48  ;;  %vm2951_vm13 = vcmp.lt.s32.totalorder %v2690_v14, %v9001_v22 }
 0x2b3   :  { %2502 = vadd.xlane.f32.xlu1 %v2312_v55  ;;  %vm3061_vm0 = vmand %vm2803_vm12, %vm2933_vm1  ;;  %v9021_v55 = vld [vmem:[#allocation21_spill] sm:$0xff]  ;;  %v1935_v40 = vadd.f32 %v9022_v21, %v1004_v46  ;;  %v2691_v57 = vadd.s32 448, %v5846_v43  ;;  %v2330_v6 = vmax.f32 %v2202_v0, 0.0  ;;  %vm2804_vm1 = vcmp.ge.s32.totalorder %v2673_v7, %v9000_v48 }
 0x2b4   :  { %vm5009_vm9 = vmpackc.low %vm3061_vm0, %vm6994_vm14  ;;  %vm2934_vm8 = vcmp.lt.s32.totalorder %v2673_v7, %v9001_v22  ;;  %v2692_v16 = vadd.s32 456, %v5846_v43  ;;  %v991_v46 = vmul.f32 %v6545_v54, %v6595_v39  ;;  %v1938_v0 = vadd.f32 %v9026_v24, %v1005_v20 }
 0x2b5   :  { %5010 = vmatpush3.bf16.msk.msra.mxu1 %vm5009_vm9, %v9005_v51  ;;  %vm7020_vm12 = vmand %vm2820_vm11, %vm2950_vm15  ;;  %vm2805_vm11 = vcmp.ge.s32.totalorder %v2674_v8, %v9000_v48  ;;  %vm2935_vm15 = vcmp.lt.s32.totalorder %v2674_v8, %v9001_v22  ;;  %v2314_v15 = vmax.f32 %v2186_v25, 0.0  ;;  %v2675_v39 = vadd.s32 320, %v5846_v43 }
 0x2b6   :  { %2472 = vadd.xlane.f32.xlu0 %v2297_v28  ;;  %v6987_v59 = vpop.permute.xlu0 %710  ;;  %v1871_v28 = vadd.f32 %v9021_v55, %v988_v10  ;;  %v1874_v10 = vadd.f32 %v9025_v29, %v989_v31  ;;  %vm3079_vm14 = vmand %vm2821_vm10, %vm2951_vm13  ;;  %v990_v31 = vmul.f32 %v6545_v54, %v6784_v63  ;;  %vm2822_vm13 = vcmp.ge.s32.totalorder %v2691_v57, %v9000_v48 }
 0x2b7   :  { %2504 = vadd.xlane.f32.xlu1 %v2313_v35  ;;  %vm5011_vm0 = vmpackc.low %vm3079_vm14, %vm7020_vm12  ;;  %vm2952_vm9 = vcmp.lt.s32.totalorder %v2691_v57, %v9001_v22  ;;  %v2676_v63 = vadd.s32 328, %v5846_v43  ;;  %v1006_v25 = vmul.f32 %v6545_v54, %v6951_v62  ;;  %v2204_v55 = vadd.f32 %v6560_v60, %v1935_v40  ;;  %v9031_v40 = vld [vmem:[#allocation26_spill] sm:$0xff]  ;;  %v9032_v57 = vld [vmem:[#allocation28_spill] sm:$0xff] }
 0x2b8   :  { %v2188_v14 = vadd.f32 %v6560_v60, %v1871_v28  ;;  %5012 = vmatprep.subr.msk.bf16.mxu1 %vm5011_vm0, %v9005_v51  ;;  %vm7052_vm10 = vmand %vm2804_vm1, %vm2934_vm8  ;;  %vm2823_vm1 = vcmp.ge.s32.totalorder %v2692_v16, %v9000_v48  ;;  %vm2953_vm8 = vcmp.lt.s32.totalorder %v2692_v16, %v9001_v22  ;;  %v1007_v7 = vmul.f32 %v6545_v54, %v6747_v52 }
 0x2b9   :  { %vm3063_vm12 = vmand %vm2805_vm11, %vm2935_vm15  ;;  %v2189_v21 = vadd.f32 %v6560_v60, %v1874_v10  ;;  %v2693_v62 = vadd.s32 464, %v5846_v43  ;;  %v2205_v8 = vadd.f32 %v6560_v60, %v1938_v0  ;;  %vm2806_vm15 = vcmp.ge.s32.totalorder %v2675_v39, %v9000_v48  ;;  %v9033_v10 = vld [vmem:[#allocation41_spill] sm:$0xff] }
 0x2ba   :  { %2540 = vadd.xlane.f32.xlu0 %v2331_v17  ;;  %v7030_v35 = vpop.permute.xlu0 %720  ;;  %v7044_v17 = vpop.permute.xlu1 %860  ;;  %vm5013_vm14 = vmpackc.low %vm3063_vm12, %vm7052_vm10  ;;  %vm2936_vm0 = vcmp.lt.s32.totalorder %v2675_v39, %v9001_v22  ;;  %v2316_v41 = vmax.f32 %v2188_v14, 0.0  ;;  %vm2807_vm12 = vcmp.ge.s32.totalorder %v2676_v63, %v9000_v48  ;;  %v1882_v29 = vadd.f32 %v9032_v57, %v991_v46 }
 0x2bb   :  { %2538 = vadd.xlane.f32.xlu1 %v2330_v6  ;;  %5014 = vmatpush3.bf16.msk.msra.mxu1 %vm5013_vm14, %v9005_v51  ;;  %vm7082_vm11 = vmand %vm2822_vm13, %vm2952_vm9  ;;  %v1879_v6 = vadd.f32 %v9031_v40, %v990_v31  ;;  %vm2937_vm13 = vcmp.lt.s32.totalorder %v2676_v63, %v9001_v22  ;;  %v1943_v24 = vadd.f32 %v9033_v10, %v1006_v25  ;;  %v2332_v0 = vmax.f32 %v2204_v55, 0.0  ;;  %v9036_v25 = vld [vmem:[#allocation43_spill] sm:$0xff] }
 0x2bc   :  { %vm3081_vm10 = vmand %vm2823_vm1, %vm2953_vm8  ;;  %v2677_v31 = vadd.s32 336, %v5846_v43  ;;  %v2317_v16 = vmax.f32 %v2189_v21, 0.0  ;;  %vm2824_vm8 = vcmp.ge.s32.totalorder %v2693_v62, %v9000_v48  ;;  %vm2954_vm14 = vcmp.lt.s32.totalorder %v2693_v62, %v9001_v22 }
 0x2bd   :  { %vm5015_vm9 = vmpackc.low %vm3081_vm10, %vm7082_vm11  ;;  %v2678_v20 = vadd.s32 344, %v5846_v43  ;;  %v1946_v55 = vadd.f32 %v9036_v25, %v1007_v7  ;;  %v992_v21 = vmul.f32 %v6545_v54, %v6792_v30  ;;  %v1008_v39 = vmul.f32 %v6545_v54, %v6987_v59 }
 0x2be   :  { %2508 = vadd.xlane.f32.xlu0 %v2315_v37  ;;  %v7070_v28 = vpop.permute.xlu0 %730  ;;  %v2694_v37 = vadd.s32 472, %v5846_v43  ;;  %5016 = vmatprep.subr.msk.bf16.mxu1 %vm5015_vm9, %v9005_v51  ;;  %vm7110_vm1 = vmand %vm2806_vm15, %vm2936_vm0  ;;  %v2333_v52 = vmax.f32 %v2205_v8, 0.0  ;;  %v2190_v40 = vadd.f32 %v6560_v60, %v1879_v6  ;;  %v2695_v30 = vadd.s32 480, %v5846_v43 }
 0x2bf   :  { %2506 = vadd.xlane.f32.xlu1 %v2314_v15  ;;  %v7101_v15 = vpop.permute.xlu1 %865  ;;  %vm3065_vm11 = vmand %vm2807_vm12, %vm2937_vm13  ;;  %v2206_v7 = vadd.f32 %v6560_v60, %v1943_v24  ;;  %vm2808_vm13 = vcmp.ge.s32.totalorder %v2677_v31, %v9000_v48  ;;  %vm2938_vm9 = vcmp.lt.s32.totalorder %v2677_v31, %v9001_v22  ;;  %v2696_v59 = vadd.s32 488, %v5846_v43 }
 0x2c0   :  { %vm2825_vm15 = vcmp.ge.s32.totalorder %v2694_v37, %v9000_v48  ;;  %vm2955_vm0 = vcmp.lt.s32.totalorder %v2694_v37, %v9001_v22  ;;  %vm5017_vm10 = vmpackc.low %vm3065_vm11, %vm7110_vm1  ;;  %v2191_v8 = vadd.f32 %v6560_v60, %v1882_v29  ;;  %v993_v6 = vmul.f32 %v6545_v54, %v6600_v23  ;;  %v9039_v29 = vld [vmem:[#allocation25_spill] sm:$0xff] }
 0x2c1   :  { %5018 = vmatpush3.bf16.msk.msra.mxu1 %vm5017_vm10, %v9005_v51  ;;  %vm7138_vm12 = vmand %vm2824_vm8, %vm2954_vm14  ;;  %vm2809_vm8 = vcmp.ge.s32.totalorder %v2678_v20, %v9000_v48  ;;  %vm2939_vm14 = vcmp.lt.s32.totalorder %v2678_v20, %v9001_v22  ;;  %v2207_v62 = vadd.f32 %v6560_v60, %v1946_v55  ;;  %v1009_v57 = vmul.f32 %v6545_v54, %v6763_v11  ;;  %v9043_v55 = vld [vmem:[#allocation27_spill] sm:$0xff] }
 0x2c2   :  { %2510 = vadd.xlane.f32.xlu0 %v2316_v41  ;;  %v7103_v14 = vpop.permute.xlu0 %740  ;;  %vm3083_vm1 = vmand %vm2825_vm15, %vm2955_vm0  ;;  %v1887_v10 = vadd.f32 %v9039_v29, %v992_v21  ;;  %v2679_v23 = vadd.s32 352, %v5846_v43  ;;  %v2318_v37 = vmax.f32 %v2190_v40, 0.0  ;;  %vm2826_vm0 = vcmp.ge.s32.totalorder %v2695_v30, %v9000_v48 }
 0x2c3   :  { %2542 = vadd.xlane.f32.xlu1 %v2332_v0  ;;  %vm5019_vm11 = vmpackc.low %vm3083_vm1, %vm7138_vm12  ;;  %v7163_v24 = vpop.permute.xlu1 %870  ;;  %vm2956_vm10 = vcmp.lt.s32.totalorder %v2695_v30, %v9001_v22  ;;  %v2680_v11 = vadd.s32 360, %v5846_v43  ;;  %v2334_v25 = vmax.f32 %v2206_v7, 0.0  ;;  %vm2827_vm1 = vcmp.ge.s32.totalorder %v2696_v59, %v9000_v48 }
 0x2c4   :  { %5020 = vmatprep.subr.msk.bf16.mxu1 %vm5019_vm11, %v9005_v51  ;;  %vm7170_vm15 = vmand %vm2808_vm13, %vm2938_vm9  ;;  %vm2957_vm13 = vcmp.lt.s32.totalorder %v2696_v59, %v9001_v22  ;;  %v2319_v31 = vmax.f32 %v2191_v8, 0.0  ;;  %v1890_v21 = vadd.f32 %v9043_v55, %v993_v6  ;;  %vm2940_vm11 = vcmp.lt.s32.totalorder %v2679_v23, %v9001_v22 }
 0x2c5   :  { %vm3067_vm12 = vmand %vm2809_vm8, %vm2939_vm14  ;;  %vm2810_vm14 = vcmp.ge.s32.totalorder %v2679_v23, %v9000_v48  ;;  %v2698_v63 = vadd.s32 504, %v5846_v43  ;;  %v994_v8 = vmul.f32 %v6545_v54, %v6804_v33  ;;  %v2192_v6 = vadd.f32 %v6560_v60, %v1887_v10 }
 0x2c6   :  { %2512 = vadd.xlane.f32.xlu0 %v2317_v16  ;;  %v7148_v41 = vpop.permute.xlu0 %750  ;;  %v9042_v16 = vld [vmem:[#allocation40_spill] sm:$0xff]  ;;  %vm5021_vm9 = vmpackc.low %vm3067_vm12, %vm7170_vm15  ;;  %v2335_v30 = vmax.f32 %v2207_v62, 0.0  ;;  %v2681_v33 = vadd.s32 368, %v5846_v43  ;;  %v2193_v62 = vadd.f32 %v6560_v60, %v1890_v21  ;;  %v1011_v23 = vmul.f32 %v6545_v54, %v6773_v42 }
 0x2c7   :  { %2544 = vadd.xlane.f32.xlu1 %v2333_v52  ;;  %v1951_v46 = vadd.f32 %v9042_v16, %v1008_v39  ;;  %v2697_v52 = vadd.s32 496, %v5846_v43  ;;  %v9044_v39 = vld [vmem:[#allocation42_spill] sm:$0xff]  ;;  %5022 = vmatpush3.bf16.msk.msra.mxu1 %vm5021_vm9, %v9005_v51  ;;  %vm7196_vm8 = vmand %vm2826_vm0, %vm2956_vm10  ;;  %vm2811_vm0 = vcmp.ge.s32.totalorder %v2680_v11, %v9000_v48  ;;  %vm2941_vm10 = vcmp.lt.s32.totalorder %v2680_v11, %v9001_v22  ;;  %v7218_v10 = vpop.permute.xlu1 %875 }
 0x2c8   :  { %v1954_v40 = vadd.f32 %v9044_v39, %v1009_v57  ;;  %vm3085_vm15 = vmand %vm2827_vm1, %vm2957_vm13  ;;  %v1010_v57 = vmul.f32 %v6545_v54, %v7030_v35  ;;  %v2682_v35 = vadd.s32 376, %v5846_v43  ;;  %v2320_v16 = vmax.f32 %v2192_v6, 0.0 }
 0x2c9   :  { %v2208_v29 = vadd.f32 %v6560_v60, %v1951_v46  ;;  %vm5023_vm12 = vmpackc.low %vm3085_vm15, %vm7196_vm8  ;;  %vm2828_vm13 = vcmp.ge.s32.totalorder %v2697_v52, %v9000_v48  ;;  %vm2958_vm9 = vcmp.lt.s32.totalorder %v2697_v52, %v9001_v22  ;;  %vm2829_vm15 = vcmp.ge.s32.totalorder %v2698_v63, %v9000_v48 }
 0x2ca   :  { %2514 = vadd.xlane.f32.xlu0 %v2318_v37  ;;  %v7189_v7 = vpop.permute.xlu0 %840  ;;  %5024 = vmatprep.subr.msk.bf16.mxu1 %vm5023_vm12, %v9005_v51  ;;  %vm7225_vm1 = vmand %vm2810_vm14, %vm2940_vm11  ;;  %vm2959_vm14 = vcmp.lt.s32.totalorder %v2698_v63, %v9001_v22  ;;  %v9049_v37 = vld [vmem:[#allocation30_spill] sm:$0xff]  ;;  %v2209_v46 = vadd.f32 %v6560_v60, %v1954_v40  ;;  %vm2942_vm12 = vcmp.lt.s32.totalorder %v2681_v33, %v9001_v22  ;;  %v2321_v52 = vmax.f32 %v2193_v62, 0.0  ;;  %v9051_v40 = vld [vmem:[#allocation56_spill] sm:$0xff] }
 0x2cb   :  { %2546 = vadd.xlane.f32.xlu1 %v2334_v25  ;;  %vm3069_vm8 = vmand %vm2811_vm0, %vm2941_vm10  ;;  %v1895_v0 = vadd.f32 %v9049_v37, %v994_v8  ;;  %v9050_v25 = vld [vmem:[#allocation51_spill] sm:$0xff]  ;;  %v2336_v11 = vmax.f32 %v2208_v29, 0.0  ;;  %vm2812_vm10 = vcmp.ge.s32.totalorder %v2681_v33, %v9000_v48  ;;  %vm2943_vm7 = vcmp.lt.s32.totalorder %v2682_v35, %v9001_v22  ;;  %v7259_v42 = vpop.permute.xlu1 %880 }
 0x2cc   :  { %vm5025_vm11 = vmpackc.low %vm3069_vm8, %vm7225_vm1  ;;  %vm2813_vm8 = vcmp.ge.s32.totalorder %v2682_v35, %v9000_v48  ;;  %v996_v21 = vmul.f32 %v6545_v54, %v6817_v47  ;;  %v1962_v20 = vadd.f32 %v9051_v40, %v1011_v23  ;;  %v1012_v63 = vmul.f32 %v6545_v54, %v7070_v28  ;;  %v7272_v47 = vld [vmem:[%s8783_s3] ss:$0 sm:$0xff]  ;;  %v7282_v54 = vld [vmem:[%s8783_s3 + $0x1] ss:$0 sm:$0xff]  ;;  %s5199_s3 = smov [#allocation2]  }
 0x2cd   :  { %5026 = vmatpush3.bf16.msk.msra.mxu1 %vm5025_vm11, %v9005_v51  ;;  %vm3086_vm0 = vmand %vm2828_vm13, %vm2958_vm9  ;;  %v2194_v39 = vadd.f32 %v6560_v60, %v1895_v0  ;;  %v2337_v8 = vmax.f32 %v2209_v46, 0.0  ;;  %v9052_v28 = vld [vmem:[#allocation29_spill] sm:$0xff]  ;;  %v9054_v0 = vld [vmem:[#allocation31_spill] sm:$0xff]  ;;  %v999_v40 = vmul.f32 %v7272_v47, %v6705_v27  ;;  %s4365_s27 = sshll.u32 %s5199_s3, 4  ;;  %s4366_s27 = int_to_ptr.vmem [resolvable:$true] %s4365_s27 }
 0x2ce   :  { %2516 = vadd.xlane.f32.xlu0 %v2319_v31  ;;  %v1959_v31 = vadd.f32 %v9050_v25, %v1010_v57  ;;  %v7246_v55 = vpop.permute.xlu0 %765  ;;  %vm3087_vm1 = vmand %vm2829_vm15, %vm2959_vm14  ;;  %v1903_v29 = vadd.f32 %v9052_v28, %v996_v21  ;;  %v2211_v59 = vadd.f32 %v7282_v54, %v1962_v20  ;;  %v9053_v35 = vld [vmem:[#allocation49_spill] sm:$0xff]  ;;  %s5173_s28 = scalar_lea.vmem %s4366_s27, 16  ;;  %s5177_s29 = scalar_lea.vmem %s4366_s27, 32 }
 0x2cf   :  { %2548 = vadd.xlane.f32.xlu1 %v2335_v30  ;;  %vm5027_vm6 = vmpackc.low %vm3087_vm1, %vm3086_vm0  ;;  %v997_v30 = vmul.f32 %v7272_v47, %v6698_v45  ;;  %v2322_v33 = vmax.f32 %v2194_v39, 0.0  ;;  %v1013_v45 = vmul.f32 %v7272_v47, %v6782_v13  ;;  %v1967_v62 = vadd.f32 %v9053_v35, %v1012_v63  ;;  %v7291_v37 = vpop.permute.xlu1 %885  ;;  %v9056_v63 = vld [vmem:[#allocation33_spill] sm:$0xff]  ;;  %p5174_p0 = scmp.ne.s32.totalorder %s4366_s27, %s5173_s28  ;;  %p5178_p1 = scmp.lt.s32.totalorder %s4366_s27, %s4366_s27 }
 0x2d0   :  { %5028 = vmatprep.subr.msk.bf16.mxu1 %vm5027_vm6, %v9005_v51  ;;  %vm3070_vm13 = vmand %vm2812_vm10, %vm2942_vm12  ;;  %v2210_v6 = vadd.f32 %v6560_v60, %v1959_v31  ;;  %v2195_v60 = vadd.f32 %v7282_v54, %v6610_v9  ;;  %v998_v9 = vmul.f32 %v7272_v47, %v6830_v36  ;;  %v2196_v25 = vadd.f32 %v7282_v54, %v1903_v29  ;;  %p5179_p2 = scmp.lt.s32.totalorder %s5177_s29, %s5173_s28 }
 0x2d1   :  { %vm3071_vm9 = vmand %vm2813_vm8, %vm2943_vm7  ;;  %v2339_v31 = vmax.f32 %v2211_v59, 0.0  ;;  %v1014_v13 = vmul.f32 %v7272_v47, %v7103_v14  ;;  %v2212_v39 = vadd.f32 %v7282_v54, %v1967_v62  ;;  %v9057_v14 = vld [vmem:[#allocation45_spill] sm:$0xff]  ;;  %v1000_v35 = vmul.f32 %v7272_v47, %v6845_v61 }
 0x2d2   :  { %2518 = vadd.xlane.f32.xlu0 %v2320_v16  ;;  %vm5029_vm15 = vmpackc.low %vm3071_vm9, %vm3070_vm13  ;;  %v7276_v57 = vpop.permute.xlu0 %770  ;;  %v2338_v23 = vmax.f32 %v2210_v6, 0.0  ;;  %v1906_v16 = vadd.f32 %v9054_v0, %v997_v30  ;;  %v2323_v46 = vmax.f32 %v2195_v60, 0.0  ;;  %v2324_v6 = vmax.f32 %v2196_v25, 0.0  ;;  %v9059_v0 = vld [vmem:[#allocation47_spill] sm:$0xff]  ;;  %p5180_p3 = por %p5179_p2, %p5178_p1 }
 0x2d3   :  { %2550 = vadd.xlane.f32.xlu1 %v2336_v11  ;;  %5030 = vmatpush3.bf16.msk.msra.mxu1 %vm5029_vm15, %v9005_v51  ;;  %v9055_v11 = vld [vmem:[#allocation54_spill] sm:$0xff]  ;;  %v7306_v36 = vpop.permute.xlu1 %890  ;;  %v1015_v30 = vmul.f32 %v7272_v47, %v6796_v3  ;;  %v1975_v60 = vadd.f32 %v9057_v14, %v1014_v13  ;;  %v2340_v28 = vmax.f32 %v2212_v39, 0.0  ;;  %v2716_v3 = vadd.s32 648, %v5846_v43 }
 0x2d4   :  { %v1970_v21 = vadd.f32 %v9055_v11, %v1013_v45  ;;  %v2197_v20 = vadd.f32 %v7282_v54, %v1906_v16  ;;  %v9060_v11 = vld [vmem:[#allocation32_spill] sm:$0xff]  ;;  %v1017_v39 = vmul.f32 %v7272_v47, %v6815_v32  ;;  %vm9102_vm1 = vcmask 392512   ;;  %p5181_p4 = pnand %p5180_p3, %p5174_p0 }
 0x2d5   :  { %v1978_v16 = vadd.f32 %v9059_v0, %v1015_v30  ;;  %v2214_v25 = vadd.f32 %v7282_v54, %v1975_v60  ;;  %vm2847_vm7 = vcmp.ge.s32.totalorder %v2716_v3, %v9000_v48  ;;  %vm2977_vm11 = vcmp.lt.s32.totalorder %v2716_v3, %v9001_v22  ;;  %v9062_v30 = vld [vmem:[#allocation34_spill] sm:$0xff]  ;;  %vm9103_vm8 = vmmov %vm9102_vm1 }
 0x2d6   :  { %2520 = vadd.xlane.f32.xlu0 %v2321_v52  ;;  %v7300_v52 = vpop.permute.xlu0 %775  ;;  %v2213_v29 = vadd.f32 %v7282_v54, %v1970_v21  ;;  %v2325_v45 = vmax.f32 %v2197_v20, 0.0  ;;  %v1919_v21 = vadd.f32 %v9060_v11, %v1000_v35  ;;  %vm3105_vm10 = vmand %vm2847_vm7, %vm2977_vm11  ;;  %v1035_v60 = vmul.f32 %v7272_v47, %v6837_v50 }
 0x2d7   :  { %2552 = vadd.xlane.f32.xlu1 %v2337_v8  ;;  %v1911_v8 = vadd.f32 %v9056_v63, %v998_v9  ;;  %v1019_v50 = vmul.f32 %v7272_v47, %v7246_v55  ;;  %v1020_v55 = vmul.f32 %v7272_v47, %v7276_v57  ;;  %v1021_v57 = vmul.f32 %v7272_v47, %v7300_v52 }
 0x2d8   :  { %v2341_v9 = vmax.f32 %v2213_v29, 0.0  ;;  %v2200_v32 = vadd.f32 %v7282_v54, %v1919_v21  ;;  %v9063_v29 = vld [vmem:[#allocation46_spill] sm:$0xff]  ;;  %v9065_v21 = vld [vmem:[#allocation52_spill] sm:$0xff] }
 0x2d9   :  { %v2198_v62 = vadd.f32 %v7282_v54, %v1911_v8  ;;  %v2342_v8 = vmax.f32 %v2214_v25, 0.0 }
 0x2da   :  { %2522 = vadd.xlane.f32.xlu0 %v2322_v33  ;;  %v9058_v33 = vld [vmem:[#allocation35_spill] sm:$0xff]  ;;  %v7314_v27 = vpop.permute.xlu0 %780  ;;  %v2328_v3 = vmax.f32 %v2200_v32, 0.0 }
 0x2db   :  { %2554 = vadd.xlane.f32.xlu1 %v2338_v23  ;;  %v1914_v59 = vadd.f32 %v9058_v33, %v999_v40  ;;  %v2715_v23 = vadd.s32 640, %v5846_v43  ;;  %v2326_v13 = vmax.f32 %v2198_v62, 0.0  ;;  %v9061_v40 = vld [vmem:[#allocation44_spill] sm:$0xff]  ;;  %v1986_v33 = vadd.f32 %v9063_v29, %v1017_v39 }
 0x2dd   :  { %vm2846_vm6 = vcmp.ge.s32.totalorder %v2715_v23, %v9000_v48  ;;  %vm2976_vm14 = vcmp.lt.s32.totalorder %v2715_v23, %v9001_v22  ;;  %v2199_v61 = vadd.f32 %v7282_v54, %v1914_v59  ;;  %v1034_v59 = vmul.f32 %v7272_v47, %v7189_v7 }
 0x2de   :  { %2524 = vadd.xlane.f32.xlu0 %v2323_v46  ;;  %v1016_v46 = vmul.f32 %v7272_v47, %v7148_v41  ;;  %vm3104_vm0 = vmand %vm2846_vm6, %vm2976_vm14  ;;  %v1001_v41 = vmul.f32 %v7272_v47, %v6715_v19  ;;  %v7338_v63 = vpop.permute.xlu0 %785  ;;  %v2058_v23 = vadd.f32 %v6412_v1, %v1035_v60 }
 0x2df   :  { %2556 = vadd.xlane.f32.xlu1 %v2339_v31  ;;  %v7325_v31 = vpop.permute.xlu1 %895  ;;  %vm5031_vm12 = vmpackc.low %vm3105_vm10, %vm3104_vm0  ;;  %v2327_v19 = vmax.f32 %v2199_v61, 0.0  ;;  %v9064_v61 = vld [vmem:[#allocation57_spill] sm:$0xff]  ;;  %vm9107_vm10 = vcmask 458112  }
 0x2e0   :  { %v1983_v20 = vadd.f32 %v9061_v40, %v1016_v46  ;;  %5032 = vmatprep.subr.msk.bf16.mxu1 %vm5031_vm12, %v9005_v51  ;;  %v1922_v14 = vadd.f32 %v9062_v30, %v1001_v41  ;;  %v2055_v46 = vadd.f32 %v6396_v4, %v1034_v59  ;;  %v2235_v1 = vadd.f32 %v7282_v54, %v2058_v23 }
 0x2e1   :  { %v1994_v41 = vadd.f32 %v9064_v61, %v1019_v50  ;;  %v1036_v4 = vmul.f32 %v7272_v47, %v6924_v38  ;;  %v1037_v38 = vmul.f32 %v7272_v47, %v6985_v5 }
 0x2e2   :  { %2526 = vadd.xlane.f32.xlu0 %v2324_v6  ;;  %v2215_v6 = vadd.f32 %v7282_v54, %v1978_v16  ;;  %v2216_v35 = vadd.f32 %v7282_v54, %v1983_v20  ;;  %v791_v62 = vpop.permute.xlu0 %790  ;;  %v2201_v0 = vadd.f32 %v7282_v54, %v1922_v14  ;;  %v1018_v16 = vmul.f32 %v7272_v47, %v6872_v49 }
 0x2e3   :  { %2558 = vadd.xlane.f32.xlu1 %v2340_v28  ;;  %v7345_v28 = vpop.permute.xlu1 %900  ;;  %v2234_v40 = vadd.f32 %v7282_v54, %v2055_v46  ;;  %v2363_v20 = vmax.f32 %v2235_v1, 0.0  ;;  %v2219_v30 = vadd.f32 %v7282_v54, %v1994_v41  ;;  %v2063_v14 = vadd.f32 %v6387_v58, %v1036_v4 }
 0x2e4   :  { %v2344_v7 = vmax.f32 %v2216_v35, 0.0  ;;  %v2329_v11 = vmax.f32 %v2201_v0, 0.0  ;;  %v2066_v23 = vadd.f32 %v6405_v2, %v1037_v38  ;;  %v1038_v58 = vmul.f32 %v7272_v47, %v7044_v17  ;;  %v9068_v0 = vld [vmem:[#allocation60_spill] sm:$0xff] }
 0x2e5   :  { %v2362_v60 = vmax.f32 %v2234_v40, 0.0  ;;  %v2347_v35 = vmax.f32 %v2219_v30, 0.0  ;;  %v2236_v50 = vadd.f32 %v7282_v54, %v2063_v14  ;;  %v1039_v17 = vmul.f32 %v7272_v47, %v7101_v15 }
 0x2e6   :  { %2528 = vadd.xlane.f32.xlu0 %v2325_v45  ;;  %v2343_v45 = vmax.f32 %v2215_v6, 0.0  ;;  %v796_v49 = vpop.permute.xlu0 %795  ;;  %v9066_v6 = vld [vmem:[#allocation50_spill] sm:$0xff]  ;;  %v2071_v2 = vadd.f32 %v6481_v53, %v1038_v58  ;;  %v2237_v61 = vadd.f32 %v7282_v54, %v2066_v23  ;;  %v1040_v15 = vmul.f32 %v7272_v47, %v7163_v24 }
 0x2e7   :  { %2560 = vadd.xlane.f32.xlu1 %v2341_v9  ;;  %v2217_v9 = vadd.f32 %v7282_v54, %v1986_v33  ;;  %v7360_v25 = vpop.permute.xlu1 %905  ;;  %v9067_v33 = vld [vmem:[#allocation55_spill] sm:$0xff]  ;;  %v2364_v1 = vmax.f32 %v2236_v50, 0.0  ;;  %v2074_v4 = vadd.f32 %v6503_v18, %v1039_v17  ;;  %v1041_v24 = vmul.f32 %v7272_v47, %v7218_v10  ;;  %v9072_v58 = vld [vmem:[#allocation66_spill] sm:$0xff] }
 0x2e8   :  { %v2002_v59 = vadd.f32 %v9067_v33, %v1021_v57  ;;  %v2238_v53 = vadd.f32 %v7282_v54, %v2071_v2  ;;  %v2079_v18 = vadd.f32 %v6474_v56, %v1040_v15  ;;  %v1042_v56 = vmul.f32 %v7272_v47, %v7259_v42  ;;  %v9073_v2 = vld [vmem:[#allocation69_spill] sm:$0xff] }
 0x2e9   :  { %v2345_v39 = vmax.f32 %v2217_v9, 0.0  ;;  %v2239_v38 = vadd.f32 %v7282_v54, %v2074_v4 }
 0x2ea   :  { %2530 = vadd.xlane.f32.xlu0 %v2326_v13  ;;  %v1991_v13 = vadd.f32 %v9065_v21, %v1018_v16  ;;  %v801_v29 = vpop.permute.xlu0 %800  ;;  %v2366_v14 = vmax.f32 %v2238_v53, 0.0  ;;  %v2240_v10 = vadd.f32 %v7282_v54, %v2079_v18 }
 0x2eb   :  { %2562 = vadd.xlane.f32.xlu1 %v2342_v8  ;;  %v7370_v8 = vpop.permute.xlu1 %910  ;;  %v1026_v33 = vmul.f32 %v7272_v47, %v801_v29 }
 0x2ec   :  { %v2218_v32 = vadd.f32 %v7282_v54, %v1991_v13  ;;  %v2368_v42 = vmax.f32 %v2240_v10, 0.0 }
 0x2ee   :  { %2532 = vadd.xlane.f32.xlu0 %v2327_v19  ;;  %v1999_v19 = vadd.f32 %v9066_v6, %v1020_v55  ;;  %v2346_v5 = vmax.f32 %v2218_v32, 0.0  ;;  %v806_v9 = vpop.permute.xlu0 %805  ;;  %v9069_v55 = vld [vmem:[#allocation63_spill] sm:$0xff] }
 0x2ef   :  { %2564 = vadd.xlane.f32.xlu1 %v2343_v45  ;;  %v1022_v45 = vmul.f32 %v7272_v47, %v7314_v27  ;;  %v1023_v27 = vmul.f32 %v7272_v47, %v7338_v63  ;;  %v1024_v63 = vmul.f32 %v7272_v47, %v791_v62  ;;  %v9070_v6 = vld [vmem:[#allocation59_spill] sm:$0xff]  ;;  %v1025_v62 = vmul.f32 %v7272_v47, %v796_v49 }
 0x2f0   :  { %v2220_v52 = vadd.f32 %v7282_v54, %v1999_v19  ;;  %v1027_v29 = vmul.f32 %v7272_v47, %v806_v9 }
 0x2f1   :  { %v2007_v16 = vadd.f32 %v9068_v0, %v1022_v45  ;;  %v2015_v19 = vadd.f32 %v9070_v6, %v1024_v63 }
 0x2f2   :  { %2534 = vadd.xlane.f32.xlu0 %v2328_v3  ;;  %v7388_v3 = vpop.permute.xlu1 %915  ;;  %v2348_v46 = vmax.f32 %v2220_v52, 0.0  ;;  %v811_v40 = vpop.permute.xlu0 %810  ;;  %v2082_v52 = vadd.f32 %v6495_v26, %v1041_v24  ;;  %v1043_v26 = vmul.f32 %v7272_v47, %v7291_v37  ;;  %v2026_v17 = vadd.f32 %v9073_v2, %v1027_v29 }
 0x2f3   :  { %2566 = vadd.xlane.f32.xlu1 %v2344_v7  ;;  %v2221_v7 = vadd.f32 %v7282_v54, %v2002_v59  ;;  %v2222_v13 = vadd.f32 %v7282_v54, %v2007_v16  ;;  %v2224_v45 = vadd.f32 %v7282_v54, %v2015_v19  ;;  %v1028_v9 = vmul.f32 %v7272_v47, %v811_v40  ;;  %v9075_v19 = vld [vmem:[#allocation87_spill] sm:$0xff] }
 0x2f4   :  { %v1044_v37 = vmul.f32 %v7272_v47, %v7306_v36  ;;  %v1045_v36 = vmul.f32 %v7272_v47, %v7325_v31 }
 0x2f5   :  { %v2349_v21 = vmax.f32 %v2221_v7, 0.0  ;;  %v2350_v57 = vmax.f32 %v2222_v13, 0.0  ;;  %v2352_v0 = vmax.f32 %v2224_v45, 0.0 }
 0x2f6   :  { %2536 = vadd.xlane.f32.xlu0 %v2329_v11  ;;  %v7398_v41 = vpop.xlane.xlu1 %2450  ;;  %v2010_v11 = vadd.f32 %v9069_v55, %v1023_v27  ;;  %v816_v23 = vpop.permute.xlu0 %815  ;;  %v2087_v27 = vadd.f32 %v6531_v12, %v1042_v56 }
 0x2f7   :  { %2568 = vadd.xlane.f32.xlu1 %v2345_v39  ;;  %v2365_v39 = vmax.f32 %v2237_v61, 0.0  ;;  %v1029_v53 = vmul.f32 %v7272_v47, %v816_v23 }
 0x2f8   :  { %v2223_v30 = vadd.f32 %v7282_v54, %v2010_v11  ;;  %v2242_v12 = vadd.f32 %v7282_v54, %v2087_v27  ;;  %v2090_v11 = vadd.f32 %v6540_v34, %v1043_v26  ;;  %v2095_v34 = vadd.f32 %v9075_v19, %v1044_v37  ;;  %v9080_v27 = vld [vmem:[#allocation48_spill] sm:$0xff]  ;;  %v9081_v26 = vld [vmem:[#allocation86_spill] sm:$0xff] }
 0x2fa   :  { %2604 = vadd.xlane.f32.xlu0 %v2363_v20  ;;  %v7407_v20 = vpop.xlane.xlu1 %2452  ;;  %v2351_v49 = vmax.f32 %v2223_v30, 0.0  ;;  %v821_v7 = vpop.permute.xlu0 %820  ;;  %v2370_v40 = vmax.f32 %v2242_v12, 0.0  ;;  %v2243_v6 = vadd.f32 %v7282_v54, %v2090_v11  ;;  %v2244_v31 = vadd.f32 %v7282_v54, %v2095_v34  ;;  %v9088_v34 = vld [vmem:[#allocation90_spill] sm:$0xff] }
 0x2fb   :  { %2602 = vadd.xlane.f32.xlu1 %v2362_v60  ;;  %v9071_v60 = vld [vmem:[#allocation61_spill] sm:$0xff] }
 0x2fc   :  { %v2018_v32 = vadd.f32 %v9071_v60, %v1025_v62  ;;  %v2371_v60 = vmax.f32 %v2243_v6, 0.0 }
 0x2fe   :  { %2572 = vadd.xlane.f32.xlu0 %v2347_v35  ;;  %v2367_v35 = vmax.f32 %v2239_v38, 0.0  ;;  %v2225_v16 = vadd.f32 %v7282_v54, %v2018_v32  ;;  %v826_v62 = vpop.permute.xlu0 %825  ;;  %v9077_v32 = vld [vmem:[#allocation89_spill] sm:$0xff] }
 0x2ff   :  { %2570 = vadd.xlane.f32.xlu1 %v2346_v5  ;;  %v2023_v5 = vadd.f32 %v9072_v58, %v1026_v33  ;;  %v2098_v33 = vadd.f32 %v9077_v32, %v1045_v36  ;;  %v1031_v56 = vmul.f32 %v7272_v47, %v826_v62  ;;  %v9089_v62 = vld [vmem:[#allocation70_spill] sm:$0xff] }
 0x300   :  { %v2353_v61 = vmax.f32 %v2225_v16, 0.0 }
 0x301   :  { %v2226_v55 = vadd.f32 %v7282_v54, %v2023_v5  ;;  %v9079_v5 = vld [vmem:[#allocation91_spill] sm:$0xff]  ;;  %v2245_v16 = vadd.f32 %v7282_v54, %v2098_v33 }
 0x302   :  { %2574 = vadd.xlane.f32.xlu0 %v2348_v46  ;;  %v2241_v46 = vadd.f32 %v7282_v54, %v2082_v52  ;;  %v831_v45 = vpop.permute.xlu0 %830 }
 0x303   :  { %2606 = vadd.xlane.f32.xlu1 %v2364_v1  ;;  %v2354_v15 = vmax.f32 %v2226_v55, 0.0  ;;  %v1032_v55 = vmul.f32 %v7272_v47, %v831_v45 }
 0x304   :  { %v2369_v63 = vmax.f32 %v2241_v46, 0.0  ;;  %v9082_v46 = vld [vmem:[#allocation53_spill] sm:$0xff] }
 0x306   :  { %2576 = vadd.xlane.f32.xlu0 %v2349_v21  ;;  %v9074_v21 = vld [vmem:[#allocation65_spill] sm:$0xff] }
 0x307   :  { %2608 = vadd.xlane.f32.xlu1 %v2365_v39  ;;  %v2031_v13 = vadd.f32 %v9074_v21, %v1028_v9  ;;  %v2227_v39 = vadd.f32 %v7282_v54, %v2026_v17  ;;  %v1048_v17 = vmul.f32 %v7272_v47, %v7370_v8  ;;  %v9084_v9 = vld [vmem:[#allocation74_spill] sm:$0xff] }
 0x308   :  { %v9086_v8 = vld [vmem:[#allocation94_spill] sm:$0xff] }
 0x309   :  { %v2355_v18 = vmax.f32 %v2227_v39, 0.0  ;;  %v2228_v24 = vadd.f32 %v7282_v54, %v2031_v13  ;;  %v1049_v13 = vmul.f32 %v7272_v47, %v7388_v3  ;;  %v3599_v39 = vrot.slane %v9086_v8, %v9082_v46 }
 0x30a   :  { %2578 = vadd.xlane.f32.xlu0 %v2350_v57  ;;  %v9076_v57 = vld [vmem:[#allocation67_spill] sm:$0xff]  ;;  %v2111_v36 = vadd.f32 %v9088_v34, %v1048_v17  ;;  %v2700_v8 = vadd.s32 520, %v5846_v43 }
 0x30b   :  { %2610 = vadd.xlane.f32.xlu1 %v2366_v14  ;;  %v2034_v30 = vadd.f32 %v9076_v57, %v1029_v53  ;;  %v1030_v14 = vmul.f32 %v7272_v47, %v821_v7  ;;  %v2356_v10 = vmax.f32 %v2228_v24, 0.0  ;;  %v9083_v7 = vld [vmem:[#allocation96_spill] sm:$0xff]  ;;  %v836_v53 = vpop.permute.xlu0 %835  ;;  %v2047_v57 = vadd.f32 %v9089_v62, %v1032_v55  ;;  %v9090_v24 = vld [vmem:[#allocation58_spill] sm:$0xff] }
 0x30c   :  { %v7418_v59 = vpop.xlane.xlu1 %2486  ;;  %v3678_v2 = vrot.slane %v9083_v7, %v9082_v46  ;;  %v2717_v62 = vadd.s32 656, %v5846_v43  ;;  %vm2831_vm9 = vcmp.ge.s32.totalorder %v2700_v8, %v9000_v48  ;;  %vm2961_vm6 = vcmp.lt.s32.totalorder %v2700_v8, %v9001_v22 }
 0x30d   :  { %v2229_v58 = vadd.f32 %v7282_v54, %v2034_v30  ;;  %v1033_v30 = vmul.f32 %v7272_v47, %v836_v53  ;;  %v2232_v55 = vadd.f32 %v7282_v54, %v2047_v57  ;;  %v9117_v8 = vmov 0 }
 0x30e   :  { %2580 = vadd.xlane.f32.xlu0 %v2351_v49  ;;  %v1046_v49 = vmul.f32 %v7272_v47, %v7345_v28  ;;  %v2372_v28 = vmax.f32 %v2244_v31, 0.0  ;;  %v9092_v31 = vld [vmem:[#allocation92_spill] sm:$0xff]  ;;  %vm2848_vm7 = vcmp.ge.s32.totalorder %v2717_v62, %v9000_v48  ;;  %vm2978_vm11 = vcmp.lt.s32.totalorder %v2717_v62, %v9001_v22 }
 0x30f   :  { %2612 = vadd.xlane.f32.xlu1 %v2367_v35  ;;  %v9078_v35 = vld [vmem:[#allocation71_spill] sm:$0xff]  ;;  %v2114_v45 = vadd.f32 %v9092_v31, %v1049_v13  ;;  %v2360_v34 = vmax.f32 %v2232_v55, 0.0  ;;  %v7593_v55 = vadd.s32 560, %v5846_v43  ;;  %v9127_v62 = vmov 0 }
 0x310   :  { %v7427_v50 = vpop.xlane.xlu1 %2454  ;;  %v2039_v52 = vadd.f32 %v9078_v35, %v1030_v14  ;;  %v2103_v29 = vadd.f32 %v9079_v5, %v1046_v49  ;;  %v9093_v35 = vld [vmem:[#allocation84_spill] sm:$0xff] }
 0x311   :  { %v9096_v5 = vld [vmem:[#allocation88_spill] sm:$0xff]  ;;  %v2249_v13 = vadd.f32 %v7282_v54, %v2114_v45  ;;  %v2702_v45 = vadd.s32 536, %v5846_v43 }
 0x312   :  { %2582 = vadd.xlane.f32.xlu0 %v2352_v0  ;;  %v1047_v0 = vmul.f32 %v7272_v47, %v7360_v25  ;;  %v2357_v25 = vmax.f32 %v2229_v58, 0.0  ;;  %v2230_v11 = vadd.f32 %v7282_v54, %v2039_v52  ;;  %v2246_v37 = vadd.f32 %v7282_v54, %v2103_v29  ;;  %v9095_v47 = vld [vmem:[#allocation97_spill] sm:$0xff] }
 0x313   :  { %2614 = vadd.xlane.f32.xlu1 %v2368_v42  ;;  %v3682_v42 = vrot.slane %v9081_v26, %v9080_v27  ;;  %v3608_v52 = vrot.slane %v9093_v35, %v9090_v24  ;;  %v9106_v35 = vld [vmem:[#allocation76_spill] sm:$0xff] }
 0x314   :  { %v7436_v1 = vpop.xlane.xlu1 %2488  ;;  %v2358_v3 = vmax.f32 %v2230_v11, 0.0  ;;  %v2374_v33 = vmax.f32 %v2246_v37, 0.0  ;;  %v9100_v11 = vld [vmem:[#allocation68_spill] sm:$0xff]  ;;  %v9101_v37 = vld [vmem:[#allocation99_spill] sm:$0xff] }
 0x315   :  { %v3683_v19 = vsel %vm8837_vm2, %v3682_v42, %v3678_v2  ;;  %v2248_v42 = vadd.f32 %v7282_v54, %v2111_v36  ;;  %v9099_v2 = vld [vmem:[#allocation72_spill] sm:$0xff] }
 0x316   :  { %2584 = vadd.xlane.f32.xlu0 %v2353_v61  ;;  %v2042_v61 = vadd.f32 %v9084_v9, %v1031_v56  ;;  %v2050_v17 = vadd.f32 %v9099_v2, %v1033_v30  ;;  %v7584_v2 = vadd.s32 696, %v5846_v43 }
 0x317   :  { %2616 = vadd.xlane.f32.xlu1 %v2369_v63  ;;  %v9085_v63 = vld [vmem:[#allocation93_spill] sm:$0xff] }
 0x318   :  { %v7445_v4 = vpop.xlane.xlu1 %2456  ;;  %v2106_v21 = vadd.f32 %v9085_v63, %v1047_v0  ;;  %v3702_v63 = vrot.slane %v9101_v37, %v9100_v11  ;;  %v2233_v36 = vadd.f32 %v7282_v54, %v2050_v17  ;;  %v9110_v17 = vld [vmem:[#allocation77_spill] sm:$0xff] }
 0x31a   :  { %2586 = vadd.xlane.f32.xlu0 %v2354_v15  ;;  %v2373_v15 = vmax.f32 %v2245_v16, 0.0  ;;  %v2247_v49 = vadd.f32 %v7282_v54, %v2106_v21  ;;  %v9098_v16 = vld [vmem:[#allocation98_spill] sm:$0xff]  ;;  %v3623_v21 = vrot.slane %v7407_v20, %v9100_v11 }
 0x31b   :  { %2618 = vadd.xlane.f32.xlu1 %v2370_v40  ;;  %v9087_v40 = vld [vmem:[#allocation85_spill] sm:$0xff] }
 0x31c   :  { %v7454_v38 = vpop.xlane.xlu1 %2458  ;;  %v3603_v6 = vrot.slane %v9087_v40, %v9080_v27 }
 0x31e   :  { %2588 = vadd.xlane.f32.xlu0 %v2355_v18  ;;  %v2231_v18 = vadd.f32 %v7282_v54, %v2042_v61  ;;  %v3604_v56 = vsel %vm8837_vm2, %v3603_v6, %v3599_v39  ;;  %v2376_v6 = vmax.f32 %v2248_v42, 0.0  ;;  %v2701_v54 = vadd.s32 528, %v5846_v43 }
 0x31f   :  { %2620 = vadd.xlane.f32.xlu1 %v2371_v60  ;;  %v9091_v60 = vld [vmem:[#allocation95_spill] sm:$0xff]  ;;  %v3609_v53 = vsel %vm8836_vm3, %v3608_v52, %v3604_v56  ;;  %v2361_v56 = vmax.f32 %v2233_v36, 0.0 }
 0x320   :  { %v7463_v23 = vpop.xlane.xlu1 %2492  ;;  %v3687_v32 = vrot.slane %v9091_v60, %v9090_v24  ;;  %v2359_v61 = vmax.f32 %v2231_v18, 0.0  ;;  %v2718_v18 = vadd.s32 664, %v5846_v43  ;;  %v9104_v60 = vld [vmem:[#allocation73_spill] sm:$0xff]  ;;  %vm2832_vm12 = vcmp.ge.s32.totalorder %v2701_v54, %v9000_v48 }
 0x321   :  { %v3628_v37 = vrot.slane %v7427_v50, %v9104_v60 }
 0x322   :  { %2590 = vadd.xlane.f32.xlu0 %v2356_v10  ;;  %v9094_v10 = vld [vmem:[#allocation62_spill] sm:$0xff]  ;;  %v3688_v0 = vsel %vm8836_vm3, %v3687_v32, %v3683_v19  ;;  %v3707_v32 = vrot.slane %v7418_v59, %v9104_v60  ;;  %vm2849_vm14 = vcmp.ge.s32.totalorder %v2718_v18, %v9000_v48  ;;  %vm2979_vm0 = vcmp.lt.s32.totalorder %v2718_v18, %v9001_v22 }
 0x323   :  { %2622 = vadd.xlane.f32.xlu1 %v2372_v28  ;;  %v3692_v58 = vrot.slane %v9095_v47, %v9094_v10  ;;  %v3613_v29 = vrot.slane %v9096_v5, %v9094_v10  ;;  %v9097_v28 = vld [vmem:[#allocation64_spill] sm:$0xff]  ;;  %v7553_v47 = vadd.s32 672, %v5846_v43  ;;  %v7564_v5 = vadd.s32 544, %v5846_v43 }
 0x324   :  { %v7478_v12 = vpop.xlane.xlu1 %2460  ;;  %v3697_v26 = vrot.slane %v9098_v16, %v9097_v28  ;;  %v3618_v7 = vrot.slane %v7398_v41, %v9097_v28  ;;  %v9133_v18 = vmov 0 }
 0x325   :  { %v3693_v41 = vsel %vm8835_vm4, %v3692_v58, %v3688_v0  ;;  %v3614_v39 = vsel %vm8835_vm4, %v3613_v29, %v3609_v53  ;;  %v7567_v29 = vadd.s32 552, %v5846_v43  ;;  %vm9109_vm4 = vcmask 589312   ;;  %v9116_v53 = vld [vmem:[#allocation78_spill] sm:$0xff] }
 0x326   :  { %2592 = vadd.xlane.f32.xlu0 %v2357_v25  ;;  %v2375_v25 = vmax.f32 %v2247_v49, 0.0  ;;  %v3698_v40 = vsel %vm8834_vm5, %v3697_v26, %v3693_v41  ;;  %v3619_v19 = vsel %vm8834_vm5, %v3618_v7, %v3614_v39  ;;  %vm2962_vm5 = vcmp.lt.s32.totalorder %v2701_v54, %v9001_v22 }
 0x327   :  { %2624 = vadd.xlane.f32.xlu1 %v2373_v15  ;;  %v2699_v15 = vadd.s32 512, %v5846_v43  ;;  %v3703_v57 = vsel %vm9102_vm1, %v3702_v63, %v3698_v40  ;;  %v7535_v30 = vsel %vm9103_vm8, %v3623_v21, %v3619_v19  ;;  %vm9108_vm1 = vcmask 523712   ;;  %v9125_v19 = vld [vmem:[#allocation79_spill] sm:$0xff] }
 0x328   :  { %v7493_v14 = vpop.xlane.xlu1 %2494  ;;  %v3708_v58 = vsel %vm9107_vm10, %v3707_v32, %v3703_v57  ;;  %vm2963_vm10 = vcmp.lt.s32.totalorder %v2702_v45, %v9001_v22  ;;  %v7581_v7 = vadd.s32 688, %v5846_v43  ;;  %vm9113_vm8 = vcmask 654912   ;;  %v9130_v57 = vld [vmem:[#allocation81_spill] sm:$0xff] }
 0x329   :  { %vm2830_vm13 = vcmp.ge.s32.totalorder %v2699_v15, %v9000_v48  ;;  %vm2960_vm15 = vcmp.lt.s32.totalorder %v2699_v15, %v9001_v22  ;;  %v3727_v41 = vrot.slane %v7493_v14, %v9116_v53  ;;  %v9122_v40 = vmov 0 }
 0x32a   :  { %2594 = vadd.xlane.f32.xlu0 %v2358_v3  ;;  %v2377_v3 = vmax.f32 %v2249_v13, 0.0  ;;  %vm7599_vm2 = vmand %vm2830_vm13, %vm2960_vm15  ;;  %vm2964_vm15 = vcmp.lt.s32.totalorder %v7564_v5, %v9001_v22  ;;  %v2723_v32 = vadd.s32 704, %v5846_v43  ;;  %v9184_v13 = vmov 0 }
 0x32b   :  { %2626 = vadd.xlane.f32.xlu1 %v2374_v33  ;;  %v9105_v33 = vld [vmem:[#allocation75_spill] sm:$0xff]  ;;  %vm7621_vm13 = vmand %vm2831_vm9, %vm2961_vm6  ;;  %vm9121_vm6 = vcmask 720512   ;;  %v9191_v14 = vmov 0 }
 0x32c   :  { %v7514_v9 = vpop.xlane.xlu1 %2462  ;;  %v3712_v49 = vrot.slane %v7436_v1, %v9105_v33  ;;  %v7559_v1 = vadd.s32 680, %v5846_v43  ;;  %v3633_v50 = vrot.slane %v7445_v4, %v9105_v33  ;;  %vm7637_vm9 = vmand %vm2848_vm7, %vm2978_vm11  ;;  %v3638_v4 = vrot.slane %v7454_v38, %v9106_v35 }
 0x32d   :  { %v9118_v8 = vsel %vm7637_vm9, 4294967295, %v9117_v8  ;;  %vm2982_vm7 = vcmp.lt.s32.totalorder %v7581_v7, %v9001_v22  ;;  %v3643_v38 = vrot.slane %v7478_v12, %v9110_v17  ;;  %v3648_v12 = vrot.slane %v7514_v9, %v9116_v53 }
 0x32e   :  { %2596 = vadd.xlane.f32.xlu0 %v2359_v61  ;;  %v3713_v0 = vsel %vm9108_vm1, %v3712_v49, %v3708_v58  ;;  %v3722_v61 = vrot.slane %v7463_v23, %v9110_v17  ;;  %vm2981_vm3 = vcmp.lt.s32.totalorder %v7559_v1, %v9001_v22  ;;  %vm2834_vm1 = vcmp.ge.s32.totalorder %v7564_v5, %v9000_v48  ;;  %v9142_v58 = vld [vmem:[#allocation82_spill] sm:$0xff] }
 0x32f   :  { %2628 = vadd.xlane.f32.xlu1 %v2375_v25  ;;  %v7610_v23 = vadd.s32 568, %v5846_v43  ;;  %vm9136_vm11 = vcmask 786112   ;;  %v9148_v5 = vmov 0 }
 0x330   :  { %v7529_v20 = vpop.xlane.xlu1 %2496 }
 0x332   :  { %2598 = vadd.xlane.f32.xlu0 %v2360_v34  ;;  %v3732_v34 = vrot.slane %v7529_v20, %v9125_v19 }
 0x333   :  { %2630 = vadd.xlane.f32.xlu1 %v2376_v6  ;;  %v2491_v31 = vpop.xlane.xlu0 %2490 }
 0x334   :  { %v3717_v59 = vrot.slane %v2491_v31, %v9106_v35  ;;  %v7549_v52 = vpop.xlane.xlu1 %2464 }
 0x335   :  { %v3653_v20 = vrot.slane %v7549_v52, %v9125_v19  ;;  %v9139_v52 = vmov 0 }
 0x336   :  { %2600 = vadd.xlane.f32.xlu0 %v2361_v56  ;;  %v3718_v26 = vsel %vm9109_vm4, %v3717_v59, %v3713_v0  ;;  %vm7651_vm4 = vmand %vm2849_vm14, %vm2979_vm0  ;;  %vm9129_vm0 = vcmask 523712  }
 0x337   :  { %2632 = vadd.xlane.f32.xlu1 %v2377_v3  ;;  %v7570_v16 = vpop.xlane.xlu0 %2466  ;;  %v3723_v63 = vsel %vm9113_vm8, %v3722_v61, %v3718_v26  ;;  %vm7668_vm14 = vmand %vm2832_vm12, %vm2962_vm5  ;;  %vm9124_vm8 = vcmask 458112   ;;  %vm9126_vm12 = vcmp.ge.s32.totalorder %v2702_v45, %v9000_v48  ;;  %vm9132_vm5 = vcmp.ge.s32.totalorder %v7553_v47, %v9000_v48  ;;  %v9137_v45 = vld [vmem:[#allocation80_spill] sm:$0xff] }
 0x338   :  { %v7576_v42 = vpop.xlane.xlu1 %2498  ;;  %v3728_v39 = vsel %vm9121_vm6, %v3727_v41, %v3723_v63  ;;  %v9123_v40 = vsel %vm7668_vm14, 4294967295, %v9122_v40  ;;  %v3629_v6 = vsel %vm9124_vm8, %v3628_v37, %v7535_v30  ;;  %vm7690_vm6 = vmand %vm9126_vm12, %vm2963_vm10  ;;  %vm9131_vm12 = vcmp.lt.s32.totalorder %v7553_v47, %v9001_v22  ;;  %v9152_v41 = vld [vmem:[#allocation83_spill] sm:$0xff] }
 0x339   :  { %v9128_v62 = vsel %vm7690_vm6, 4294967295, %v9127_v62  ;;  %v3634_v9 = vsel %vm9129_vm0, %v3633_v50, %v3629_v6  ;;  %v3737_v30 = vrot.slane %v7576_v42, %v9130_v57  ;;  %vm7711_vm8 = vmand %vm9132_vm5, %vm9131_vm12  ;;  %vm9135_vm0 = vcmask 589312  }
 0x33a   :  { %v9134_v18 = vsel %vm7711_vm8, 4294967295, %v9133_v18  ;;  %v3639_v54 = vsel %vm9135_vm0, %v3638_v4, %v3634_v9  ;;  %v3658_v49 = vrot.slane %v7570_v16, %v9130_v57  ;;  %v3733_v31 = vsel %vm9136_vm11, %v3732_v34, %v3728_v39  ;;  %vm7741_vm11 = vmand %vm2834_vm1, %vm2964_vm15 }
 0x33b   :  { %v7615_v21 = vpop.xlane.xlu0 %2468  ;;  %vm9138_vm5 = vcmp.ge.s32.totalorder %v7559_v1, %v9000_v48  ;;  %vm9141_vm10 = vcmask 654912   ;;  %v9143_v16 = vmov 0  ;;  %v2724_v1 = vadd.s32 712, %v5846_v43 }
 0x33c   :  { %v2501_v15 = vpop.xlane.xlu1 %2500  ;;  %vm7727_vm12 = vmand %vm9138_vm5, %vm2981_vm3  ;;  %v3644_v56 = vsel %vm9141_vm10, %v3643_v38, %v3639_v54  ;;  %v3663_v47 = vrot.slane %v7615_v21, %v9137_v45  ;;  %v9144_v16 = vsel %vm7741_vm11, 4294967295, %v9143_v16  ;;  %vm9145_vm3 = vcmask 720512  }
 0x33d   :  { %v3742_v59 = vrot.slane %v2501_v15, %v9137_v45  ;;  %v9140_v52 = vsel %vm7727_vm12, 4294967295, %v9139_v52  ;;  %v3649_v26 = vsel %vm9145_vm3, %v3648_v12, %v3644_v56  ;;  %vm9146_vm0 = vcmp.lt.s32.totalorder %v7567_v29, %v9001_v22 }
 0x33e   :  { %vm9147_vm1 = vcmp.ge.s32.totalorder %v7567_v29, %v9000_v48  ;;  %v2707_v37 = vadd.s32 576, %v5846_v43  ;;  %v2708_v63 = vadd.s32 584, %v5846_v43  ;;  %vm9150_vm5 = vcmask 786112  }
 0x33f   :  { %v2471_v36 = vpop.xlane.xlu0 %2470  ;;  %vm7758_vm15 = vmand %vm9147_vm1, %vm9146_vm0  ;;  %v3654_v21 = vsel %vm9150_vm5, %v3653_v20, %v3649_v26  ;;  %vm9151_vm3 = vcmask 851712   ;;  %vm9153_vm0 = vcmp.ge.s32.totalorder %v7581_v7, %v9000_v48  ;;  %v9154_v29 = vmov 0 }
 0x340   :  { %v2503_v3 = vpop.xlane.xlu1 %2502  ;;  %v3668_v42 = vrot.slane %v2471_v36, %v9142_v58  ;;  %v9149_v5 = vsel %vm7758_vm15, 4294967295, %v9148_v5  ;;  %v3738_v50 = vsel %vm9151_vm3, %v3737_v30, %v3733_v31  ;;  %vm7777_vm1 = vmand %vm9153_vm0, %vm2982_vm7  ;;  %v3659_v38 = vsel %vm9151_vm3, %v3658_v49, %v3654_v21 }
 0x341   :  { %v3747_v0 = vrot.slane %v2503_v3, %v9142_v58  ;;  %v9155_v29 = vsel %vm7777_vm1, 4294967295, %v9154_v29  ;;  %vm9156_vm14 = vcmask 917312   ;;  %vm9157_vm10 = vcmp.lt.s32.totalorder %v7584_v2, %v9001_v22 }
 0x342   :  { %v3743_v39 = vsel %vm9156_vm14, %v3742_v59, %v3738_v50  ;;  %vm9158_vm8 = vcmp.ge.s32.totalorder %v7584_v2, %v9000_v48  ;;  %v9159_v7 = vmov 0  ;;  %vm9161_vm0 = vmmov %vm9156_vm14  ;;  %vm9162_vm5 = vcmask 982912  }
 0x343   :  { %v2473_v61 = vpop.xlane.xlu0 %2472  ;;  %vm7791_vm12 = vmand %vm9158_vm8, %vm9157_vm10  ;;  %v3664_v12 = vsel %vm9161_vm0, %v3663_v47, %v3659_v38  ;;  %v3748_v34 = vsel %vm9162_vm5, %v3747_v0, %v3743_v39  ;;  %vm9163_vm14 = vcmp.lt.s32.totalorder %v7593_v55, %v9001_v22  ;;  %vm9164_vm3 = vcmp.ge.s32.totalorder %v7593_v55, %v9000_v48 }
 0x344   :  { %v3673_v15 = vrot.slane %v2473_v61, %v9152_v41  ;;  %v2505_v4 = vpop.xlane.xlu1 %2504  ;;  %v9160_v7 = vsel %vm7791_vm12, 4294967295, %v9159_v7  ;;  %vm7804_vm6 = vmand %vm9164_vm3, %vm9163_vm14  ;;  %v9165_v36 = vmov 0  ;;  %vm2855_vm8 = vcmp.ge.s32.totalorder %v2724_v1, %v9000_v48 }
 0x345   :  { %v3752_v6 = vrot.slane %v2505_v4, %v9152_v41  ;;  %v9166_v36 = vsel %vm7804_vm6, 4294967295, %v9165_v36  ;;  %vm2985_vm10 = vcmp.lt.s32.totalorder %v2724_v1, %v9001_v22  ;;  %vm9167_vm9 = vmmov %vm9162_vm5  ;;  %vm9168_vm0 = vcmask 1048512  }
 0x346   :  { %v3669_v2 = vsel %vm9167_vm9, %v3668_v42, %v3664_v12  ;;  %vm9169_vm14 = vcmp.lt.s32.totalorder %v7610_v23, %v9001_v22  ;;  %vm9170_vm3 = vcmp.ge.s32.totalorder %v7610_v23, %v9000_v48  ;;  %v9171_v55 = vmov 0  ;;  %vm9173_vm9 = vmmov %vm9168_vm0 }
 0x347   :  { %v7811_v9 = vpop.xlane.xlu0 %2540  ;;  %v3753_v20 = vsel %vm9168_vm0, %v3752_v6, %v3748_v34  ;;  %vm7824_vm7 = vmand %vm9170_vm3, %vm9169_vm14  ;;  %v2725_v30 = vadd.s32 720, %v5846_v43  ;;  %v3674_v54 = vsel %vm9173_vm9, %v3673_v15, %v3669_v2  ;;  %vm9174_vm0 = vcmp.lt.s32.totalorder %v2723_v32, %v9001_v22 }
 0x348   :  { %v9172_v55 = vsel %vm7824_vm7, 4294967295, %v9171_v55  ;;  %v7829_v3 = vpop.xlane.xlu1 %2538  ;;  %4212 = vmatprep.mubr.f32.mxu1 %v3753_v20  ;;  %vm9175_vm5 = vcmp.ge.s32.totalorder %v2723_v32, %v9000_v48  ;;  %v9176_v49 = vmov 0  ;;  %v2726_v23 = vadd.s32 728, %v5846_v43  ;;  %vm7841_vm14 = vmand %vm2855_vm8, %vm2985_vm10 }
 0x349   :  { %vm7836_vm11 = vmand %vm9175_vm5, %vm9174_vm0  ;;  %4213 = vmatmul.mubr.f32.vlgmr.msra.gmra.mrb[38].mxu1 %v3674_v54  ;;  %v9178_v31 = vmov 0  ;;  %vm2968_vm15 = vcmp.lt.s32.totalorder %v2707_v37, %v9001_v22  ;;  %v2709_v59 = vadd.s32 592, %v5846_v43  ;;  %vm2839_vm10 = vcmp.ge.s32.totalorder %v2708_v63, %v9000_v48 }
 0x34a   :  { %v9177_v49 = vsel %vm7836_vm11, 4294967295, %v9176_v49  ;;  %v9179_v31 = vsel %vm7841_vm14, 4294967295, %v9178_v31  ;;  %vm9180_vm5 = vmpackc.low %vm7621_vm13, %vm7599_vm2  ;;  %vm2969_vm9 = vcmp.lt.s32.totalorder %v2708_v63, %v9001_v22  ;;  %v2710_v32 = vadd.s32 600, %v5846_v43 }
 0x34b   :  { %5034 = vmatpush3.bf16.msk.msra.mxu1 %vm9180_vm5, %v9005_v51  ;;  %v7861_v56 = vpop.xlane.xlu0 %2508  ;;  %vm9181_vm0 = vnez %v9118_v8  ;;  %vm2856_vm5 = vcmp.ge.s32.totalorder %v2725_v30, %v9000_v48  ;;  %vm2986_vm8 = vcmp.lt.s32.totalorder %v2725_v30, %v9001_v22  ;;  %vm9183_vm1 = vcmp.ge.s32.totalorder %v2707_v37, %v9000_v48  ;;  %vm7889_vm13 = vmand %vm2839_vm10, %vm2969_vm9 }
 0x34c   :  { %vm9182_vm2 = vmpackc.low %vm7651_vm4, %vm9181_vm0  ;;  %v7875_v25 = vpop.xlane.xlu1 %2506  ;;  %vm2857_vm0 = vcmp.ge.s32.totalorder %v2726_v23, %v9000_v48  ;;  %v9186_v8 = vmov 0  ;;  %vm2840_vm6 = vcmp.ge.s32.totalorder %v2709_v59, %v9000_v48  ;;  %vm2970_vm7 = vcmp.lt.s32.totalorder %v2709_v59, %v9001_v22 }
 0x34d   :  { %5036 = vmatprep.subr.msk.bf16.mxu1 %vm9182_vm2, %v9005_v51  ;;  %vm7883_vm4 = vmand %vm9183_vm1, %vm2968_vm15  ;;  %vm2987_vm2 = vcmp.lt.s32.totalorder %v2726_v23, %v9001_v22  ;;  %v9187_v8 = vsel %vm7889_vm13, 4294967295, %v9186_v8  ;;  %vm9188_vm3 = vnez %v9128_v62  ;;  %vm9189_vm15 = vnez %v9123_v40 }
 0x34e   :  { %v9185_v13 = vsel %vm7883_vm4, 4294967295, %v9184_v13  ;;  %vm9190_vm1 = vmpackc.low %vm9188_vm3, %vm9189_vm15  ;;  %vm2841_vm10 = vcmp.ge.s32.totalorder %v2710_v32, %v9000_v48  ;;  %vm2971_vm9 = vcmp.lt.s32.totalorder %v2710_v32, %v9001_v22  ;;  %v2727_v47 = vadd.s32 736, %v5846_v43 }
 0x34f   :  { %5038 = vmatpush3.bf16.msk.msra.mxu1 %vm9190_vm1, %v9005_v51  ;;  %vm7901_vm11 = vmand %vm2856_vm5, %vm2986_vm8  ;;  %v7908_v0 = vpop.xlane.xlu0 %2510  ;;  %vm9193_vm14 = vnez %v9140_v52  ;;  %vm9194_vm12 = vnez %v9134_v18  ;;  %v9196_v40 = vmov 0  ;;  %v2728_v62 = vadd.s32 744, %v5846_v43 }
 0x350   :  { %v9192_v14 = vsel %vm7901_vm11, 4294967295, %v9191_v14  ;;  %vm9195_vm13 = vmpackc.low %vm9193_vm14, %vm9194_vm12  ;;  %v7921_v1 = vpop.xlane.xlu1 %2542  ;;  %v9198_v26 = vmov 0  ;;  %v2711_v42 = vadd.s32 608, %v5846_v43  ;;  %v9200_v52 = vmov 0 }
 0x351   :  { %5040 = vmatprep.subr.msk.bf16.mxu1 %vm9195_vm13, %v9005_v51  ;;  %vm7916_vm3 = vmand %vm2857_vm0, %vm2987_vm2  ;;  %v2712_v18 = vadd.s32 616, %v5846_v43  ;;  %vm9202_vm12 = vnez %v9149_v5  ;;  %vm9203_vm14 = vnez %v9144_v16  ;;  %vm2858_vm0 = vcmp.ge.s32.totalorder %v2727_v47, %v9000_v48 }
 0x352   :  { %v9197_v40 = vsel %vm7916_vm3, 4294967295, %v9196_v40  ;;  %vm7923_vm8 = vmand %vm2840_vm6, %vm2970_vm7  ;;  %vm2988_vm2 = vcmp.lt.s32.totalorder %v2727_v47, %v9001_v22  ;;  %v2729_v61 = vadd.s32 752, %v5846_v43  ;;  %vm9206_vm15 = vnez %v9160_v7 }
 0x353   :  { %v9199_v26 = vsel %vm7923_vm8, 4294967295, %v9198_v26  ;;  %vm7928_vm5 = vmand %vm2841_vm10, %vm2971_vm9  ;;  %v7946_v37 = vpop.xlane.xlu0 %2512  ;;  %vm9207_vm1 = vnez %v9155_v29  ;;  %v2730_v16 = vadd.s32 760, %v5846_v43  ;;  %v9209_v63 = vmov 0 }
 0x354   :  { %v9201_v52 = vsel %vm7928_vm5, 4294967295, %v9200_v52  ;;  %vm9204_vm13 = vmpackc.low %vm9202_vm12, %vm9203_vm14  ;;  %vm2859_vm12 = vcmp.ge.s32.totalorder %v2728_v62, %v9000_v48  ;;  %vm2989_vm14 = vcmp.lt.s32.totalorder %v2728_v62, %v9001_v22  ;;  %v7961_v5 = vpop.xlane.xlu1 %2544  ;;  %vm2843_vm9 = vcmp.ge.s32.totalorder %v2712_v18, %v9000_v48 }
 0x355   :  { %5042 = vmatpush3.bf16.msk.msra.mxu1 %vm9204_vm13, %v9005_v51  ;;  %vm9208_vm10 = vmpackc.low %vm9206_vm15, %vm9207_vm1  ;;  %vm2842_vm15 = vcmp.ge.s32.totalorder %v2711_v42, %v9000_v48  ;;  %vm2972_vm1 = vcmp.lt.s32.totalorder %v2711_v42, %v9001_v22  ;;  %vm2973_vm7 = vcmp.lt.s32.totalorder %v2712_v18, %v9001_v22  ;;  %vm9211_vm11 = vnez %v9172_v55 }
 0x356   :  { %5044 = vmatprep.subr.msk.bf16.mxu1 %vm9208_vm10, %v9005_v51  ;;  %vm7969_vm10 = vmand %vm2858_vm0, %vm2988_vm2  ;;  %vm9212_vm3 = vnez %v9166_v36  ;;  %vm2860_vm0 = vcmp.ge.s32.totalorder %v2729_v61, %v9000_v48  ;;  %vm2990_vm2 = vcmp.lt.s32.totalorder %v2729_v61, %v9001_v22  ;;  %vm9216_vm8 = vnez %v9179_v31 }
 0x357   :  { %v9210_v63 = vsel %vm7969_vm10, 4294967295, %v9209_v63  ;;  %vm9213_vm4 = vmpackc.low %vm9211_vm11, %vm9212_vm3  ;;  %v7987_v50 = vpop.xlane.xlu0 %2514  ;;  %vm9217_vm5 = vnez %v9177_v49  ;;  %v9219_v15 = vmov 0  ;;  %vm2861_vm11 = vcmp.ge.s32.totalorder %v2730_v16, %v9000_v48 }
 0x358   :  { %vm7981_vm13 = vmand %vm2859_vm12, %vm2989_vm14  ;;  %v2713_v4 = vadd.s32 624, %v5846_v43  ;;  %v8002_v29 = vpop.xlane.xlu1 %2546  ;;  %v9221_v38 = vmov 0  ;;  %v2714_v39 = vadd.s32 632, %v5846_v43  ;;  %v2747_v7 = vadd.s32 896, %v5846_v43 }
 0x359   :  { %5046 = vmatpush3.bf16.msk.msra.mxu1 %vm9213_vm4, %v9005_v51  ;;  %vm9218_vm10 = vmpackc.low %vm9216_vm8, %vm9217_vm5  ;;  %vm2991_vm4 = vcmp.lt.s32.totalorder %v2730_v16, %v9001_v22  ;;  %vm9225_vm5 = vnez %v9187_v8  ;;  %vm9226_vm12 = vnez %v9185_v13  ;;  %v2748_v34 = vadd.s32 904, %v5846_v43 }
 0x35a   :  { %5048 = vmatprep.subr.msk.bf16.mxu1 %vm9218_vm10, %v9005_v51  ;;  %vm7995_vm6 = vmand %vm2842_vm15, %vm2972_vm1  ;;  %vm9233_vm10 = vnez %v9210_v63  ;;  %v2731_v13 = vadd.s32 768, %v5846_v43  ;;  %v8095_v8 = vadd.s32 776, %v5846_v43  ;;  %v8101_v47 = vadd.s32 920, %v5846_v43 }
 0x35b   :  { %v9220_v15 = vsel %vm7995_vm6, 4294967295, %v9219_v15  ;;  %vm8004_vm3 = vmand %vm2843_vm9, %vm2973_vm7  ;;  %v8025_v36 = vpop.xlane.xlu0 %2516  ;;  %vm9230_vm7 = vnez %v9197_v40  ;;  %vm9231_vm9 = vnez %v9192_v14  ;;  %vm2879_vm6 = vcmp.ge.s32.totalorder %v2748_v34, %v9000_v48 }
 0x35c   :  { %v9222_v38 = vsel %vm8004_vm3, 4294967295, %v9221_v38  ;;  %vm8009_vm8 = vmand %vm2860_vm0, %vm2990_vm2  ;;  %vm2844_vm2 = vcmp.ge.s32.totalorder %v2713_v4, %v9000_v48  ;;  %v8039_v2 = vpop.xlane.xlu1 %2548  ;;  %vm3009_vm3 = vcmp.lt.s32.totalorder %v2748_v34, %v9001_v22  ;;  %v8098_v14 = vadd.s32 912, %v5846_v43 }
 0x35d   :  { %vm9227_vm14 = vmpackc.low %vm9225_vm5, %vm9226_vm12  ;;  %vm2845_vm5 = vcmp.ge.s32.totalorder %v2714_v39, %v9000_v48  ;;  %vm2975_vm12 = vcmp.lt.s32.totalorder %v2714_v39, %v9001_v22  ;;  %v8106_v62 = vadd.s32 784, %v5846_v43  ;;  %v8111_v42 = vadd.s32 792, %v5846_v43 }
 0x35e   :  { %5050 = vmatpush3.bf16.msk.msra.mxu1 %vm9227_vm14, %v9005_v51  ;;  %vm8020_vm15 = vmand %vm2861_vm11, %vm2991_vm4  ;;  %vm2974_vm11 = vcmp.lt.s32.totalorder %v2713_v4, %v9001_v22  ;;  %vm2878_vm14 = vcmp.ge.s32.totalorder %v2747_v7, %v9000_v48  ;;  %v8127_v18 = vadd.s32 936, %v5846_v43  ;;  %v8138_v16 = vadd.s32 800, %v5846_v43 }
 0x35f   :  { %vm9232_vm1 = vmpackc.low %vm9230_vm7, %vm9231_vm9  ;;  %vm3008_vm7 = vcmp.lt.s32.totalorder %v2747_v7, %v9001_v22  ;;  %vm9234_vm9 = vnez %v9201_v52  ;;  %v8065_v55 = vpop.xlane.xlu0 %2518  ;;  %v8118_v52 = vadd.s32 928, %v5846_v43  ;;  %v8149_v21 = vadd.s32 808, %v5846_v43 }
 0x360   :  { %5052 = vmatprep.subr.msk.bf16.mxu1 %vm9232_vm1, %v9005_v51  ;;  %vm5055_vm0 = vmpackc.low %vm7981_vm13, %vm9233_vm10  ;;  %vm9235_vm1 = vnez %v9199_v26  ;;  %v8068_v30 = vpop.xlane.xlu1 %2550  ;;  %v3836_v4 = vrot.slane %v7829_v3, %v9082_v46  ;;  %v3761_v39 = vrot.slane %v7861_v56, %v9080_v27  ;;  %v3757_v6 = vrot.slane %v7875_v25, %v9082_v46 }
 0x361   :  { %vm5059_vm13 = vmpackc.low %vm8020_vm15, %vm8009_vm8  ;;  %v8173_v3 = vadd.s32 952, %v5846_v43  ;;  %v3766_v7 = vrot.slane %v7908_v0, %v9090_v24  ;;  %v3850_v56 = vrot.slane %v7961_v5, %v9094_v10  ;;  %v8186_v25 = vadd.s32 816, %v5846_v43 }
 0x362   :  { %vm9236_vm10 = vmpackc.low %vm9234_vm9, %vm9235_vm1  ;;  %vm9239_vm9 = vnez %v9222_v38  ;;  %v8160_v38 = vadd.s32 944, %v5846_v43  ;;  %v3855_v0 = vrot.slane %v8002_v29, %v9097_v28  ;;  %v8199_v5 = vadd.s32 824, %v5846_v43 }
 0x363   :  { %5054 = vmatpush3.bf16.msk.msra.mxu1 %vm9236_vm10, %v9005_v51  ;;  %vm8059_vm4 = vmand %vm2844_vm2, %vm2974_vm11  ;;  %vm9240_vm2 = vnez %v9220_v15  ;;  %v8076_v54 = vpop.xlane.xlu0 %2520  ;;  %v3840_v15 = vrot.slane %v7811_v9, %v9080_v27  ;;  %v3845_v9 = vrot.slane %v7921_v1, %v9090_v24  ;;  %v3771_v1 = vrot.slane %v7946_v37, %v9094_v10 }
 0x364   :  { %5056 = vmatprep.subr.msk.bf16.mxu1 %vm5055_vm0, %v9005_v51  ;;  %vm3103_vm8 = vmand %vm2845_vm5, %vm2975_vm12  ;;  %v8081_v49 = vpop.xlane.xlu1 %2552  ;;  %vm2993_vm5 = vcmp.lt.s32.totalorder %v8095_v8, %v9001_v22  ;;  %vm2880_vm12 = vcmp.ge.s32.totalorder %v8098_v14, %v9000_v48  ;;  %v8202_v20 = vadd.s32 960, %v5846_v43  ;;  %v3776_v37 = vrot.slane %v7987_v50, %v9097_v28 }
 0x365   :  { %vm3136_vm15 = vmand %vm2878_vm14, %vm3008_vm7  ;;  %vm3010_vm14 = vcmp.lt.s32.totalorder %v8098_v14, %v9001_v22  ;;  %vm3011_vm7 = vcmp.lt.s32.totalorder %v8101_v47, %v9001_v22  ;;  %v3860_v29 = vrot.slane %v8039_v2, %v9100_v11  ;;  %v8214_v10 = vadd.s32 968, %v5846_v43 }
 0x366   :  { %vm3137_vm1 = vmand %vm2879_vm6, %vm3009_vm3  ;;  %vm2862_vm6 = vcmp.ge.s32.totalorder %v2731_v13, %v9000_v48  ;;  %vm2863_vm3 = vcmp.ge.s32.totalorder %v8095_v8, %v9000_v48  ;;  %v3865_v50 = vrot.slane %v8068_v30, %v9104_v60  ;;  %v3786_v30 = vrot.slane %v8065_v55, %v9104_v60 }
 0x367   :  { %vm9241_vm11 = vmpackc.low %vm9239_vm9, %vm9240_vm2  ;;  %v8084_v23 = vpop.xlane.xlu0 %2522  ;;  %vm2995_vm9 = vcmp.lt.s32.totalorder %v8111_v42, %v9001_v22  ;;  %vm9248_vm2 = vcmask 261312   ;;  %v3791_v55 = vrot.slane %v8076_v54, %v9105_v33  ;;  %v2742_v2 = vadd.s32 856, %v5846_v43 }
 0x368   :  { %5058 = vmatpush3.bf16.msk.msra.mxu1 %vm9241_vm11, %v9005_v51  ;;  %vm5061_vm10 = vmpackc.low %vm3103_vm8, %vm8059_vm4  ;;  %v8087_v31 = vpop.xlane.xlu1 %2554  ;;  %vm2992_vm4 = vcmp.lt.s32.totalorder %v2731_v13, %v9001_v22  ;;  %vm2864_vm8 = vcmp.ge.s32.totalorder %v8106_v62, %v9000_v48  ;;  %v3870_v13 = vrot.slane %v8081_v49, %v9105_v33 }
 0x369   :  { %5060 = vmatprep.subr.msk.bf16.mxu1 %vm5059_vm13, %v9005_v51  ;;  %vm5063_vm0 = vmpackc.low %vm3137_vm1, %vm3136_vm15  ;;  %vm2881_vm13 = vcmp.ge.s32.totalorder %v8101_v47, %v9000_v48  ;;  %vm2994_vm1 = vcmp.lt.s32.totalorder %v8106_v62, %v9001_v22  ;;  %vm9244_vm15 = vcmask 195712   ;;  %v3875_v49 = vrot.slane %v8087_v31, %v9106_v35 }
 0x36a   :  { %v9261_v47 = vmov 0  ;;  %v9266_v62 = vmov 0 }
 0x36b   :  { %v8089_v59 = vpop.xlane.xlu0 %2524 }
 0x36c   :  { %5062 = vmatpush3.bf16.msk.msra.mxu1 %vm5061_vm10, %v9005_v51  ;;  %v8091_v32 = vpop.xlane.xlu1 %2556  ;;  %vm9242_vm10 = vcmask 130112  }
 0x36d   :  { %5064 = vmatprep.subr.msk.bf16.mxu1 %vm5063_vm0, %v9005_v51  ;;  %v3841_v44 = vsel %vm9242_vm10, %v3840_v15, %v3836_v4  ;;  %vm9243_vm11 = vmmov %vm9242_vm10  ;;  %v3781_v15 = vrot.slane %v8025_v36, %v9100_v11  ;;  %vm9252_vm0 = vcmask 326912   ;;  %v3880_v14 = vrot.slane %v8091_v32, %v9110_v17 }
 0x36e   :  { %v3762_v24 = vsel %vm9243_vm11, %v3761_v39, %v3757_v6  ;;  %v3846_v46 = vsel %vm9244_vm15, %v3845_v9, %v3841_v44  ;;  %vm8226_vm10 = vmand %vm2862_vm6, %vm2992_vm4  ;;  %vm9256_vm4 = vcmask 392512   ;;  %v3796_v9 = vrot.slane %v8084_v23, %v9106_v35 }
 0x36f   :  { %v8103_v40 = vpop.xlane.xlu0 %2526  ;;  %vm9247_vm11 = vmmov %vm9244_vm15  ;;  %v3851_v36 = vsel %vm9248_vm2, %v3850_v56, %v3846_v46  ;;  %v3801_v23 = vrot.slane %v8089_v59, %v9110_v17  ;;  %v9324_v6 = vmov 0 }
 0x370   :  { %v8108_v26 = vpop.xlane.xlu1 %2558  ;;  %v3767_v44 = vsel %vm9247_vm11, %v3766_v7, %v3762_v24  ;;  %vm8248_vm6 = vmand %vm2863_vm3, %vm2993_vm5  ;;  %v3856_v24 = vsel %vm9252_vm0, %v3855_v0, %v3851_v36  ;;  %v3806_v59 = vrot.slane %v8103_v40, %v9116_v53  ;;  %vm9276_vm5 = vcmp.ge.s32.totalorder %v8127_v18, %v9000_v48 }
 0x371   :  { %vm9251_vm11 = vmmov %vm9248_vm2  ;;  %v3861_v31 = vsel %vm9256_vm4, %v3860_v29, %v3856_v24  ;;  %v3885_v32 = vrot.slane %v8108_v26, %v9116_v53  ;;  %v9329_v7 = vmov 0 }
 0x372   :  { %v3772_v46 = vsel %vm9251_vm11, %v3771_v1, %v3767_v44  ;;  %vm8268_vm3 = vmand %vm2880_vm12, %vm3010_vm14 }
 0x373   :  { %v8129_v61 = vpop.xlane.xlu0 %2528  ;;  %vm9255_vm11 = vmmov %vm9252_vm0 }
 0x374   :  { %v8140_v63 = vpop.xlane.xlu1 %2560  ;;  %v3777_v54 = vsel %vm9255_vm11, %v3776_v37, %v3772_v46  ;;  %vm8288_vm12 = vmand %vm2881_vm13, %vm3011_vm7  ;;  %vm9260_vm11 = vcmask 458112  }
 0x375   :  { %vm9259_vm14 = vmmov %vm9256_vm4  ;;  %v3866_v1 = vsel %vm9260_vm11, %v3865_v50, %v3861_v31  ;;  %vm9264_vm4 = vcmask 523712   ;;  %v3890_v26 = vrot.slane %v8140_v63, %v9125_v19 }
 0x376   :  { %v3782_v56 = vsel %vm9259_vm14, %v3781_v15, %v3777_v54  ;;  %vm8304_vm13 = vmand %vm2864_vm8, %vm2994_vm1  ;;  %v3871_v37 = vsel %vm9264_vm4, %v3870_v13, %v3866_v1  ;;  %vm9265_vm8 = vcmp.ge.s32.totalorder %v8111_v42, %v9000_v48  ;;  %v3811_v15 = vrot.slane %v8129_v61, %v9125_v19 }
 0x377   :  { %v8179_v12 = vpop.xlane.xlu0 %2530  ;;  %v9262_v47 = vsel %vm8304_vm13, 4294967295, %v9261_v47  ;;  %vm9263_vm7 = vmmov %vm9260_vm11  ;;  %v9272_v42 = vmov 0  ;;  %vm9274_vm14 = vcmask 654912   ;;  %vm9297_vm13 = vcmask 917312  }
 0x378   :  { %v8192_v34 = vpop.xlane.xlu1 %2562  ;;  %v3787_v0 = vsel %vm9263_vm7, %v3786_v30, %v3782_v56  ;;  %vm8324_vm1 = vmand %vm9265_vm8, %vm2995_vm9  ;;  %vm9269_vm7 = vcmask 589312   ;;  %vm9270_vm9 = vcmp.lt.s32.totalorder %v8118_v52, %v9001_v22  ;;  %vm9271_vm8 = vcmp.ge.s32.totalorder %v8118_v52, %v9000_v48 }
 0x379   :  { %v9267_v62 = vsel %vm8324_vm1, 4294967295, %v9266_v62  ;;  %vm9268_vm11 = vmmov %vm9264_vm4  ;;  %v3876_v63 = vsel %vm9269_vm7, %v3875_v49, %v3871_v37  ;;  %v3895_v50 = vrot.slane %v8192_v34, %v9130_v57  ;;  %v3816_v36 = vrot.slane %v8179_v12, %v9130_v57 }
 0x37a   :  { %v3792_v40 = vsel %vm9268_vm11, %v3791_v55, %v3787_v0  ;;  %vm8344_vm11 = vmand %vm9271_vm8, %vm9270_vm9  ;;  %v3881_v34 = vsel %vm9274_vm14, %v3880_v14, %v3876_v63  ;;  %vm9275_vm4 = vcmp.lt.s32.totalorder %v8127_v18, %v9001_v22  ;;  %v9277_v52 = vmov 0 }
 0x37b   :  { %v8240_v4 = vpop.xlane.xlu0 %2532  ;;  %v9273_v42 = vsel %vm8344_vm11, 4294967295, %v9272_v42  ;;  %v3797_v61 = vsel %vm9269_vm7, %v3796_v9, %v3792_v40  ;;  %vm8359_vm0 = vmand %vm9276_vm5, %vm9275_vm4  ;;  %vm9280_vm8 = vcmask 720512   ;;  %vm9282_vm7 = vcmp.ge.s32.totalorder %v8138_v16, %v9000_v48 }
 0x37c   :  { %v2565_v8 = vpop.xlane.xlu1 %2564  ;;  %v9278_v52 = vsel %vm8359_vm0, 4294967295, %v9277_v52  ;;  %vm9279_vm9 = vmmov %vm9274_vm14  ;;  %v3886_v46 = vsel %vm9280_vm8, %v3885_v32, %v3881_v34  ;;  %v3821_v24 = vrot.slane %v8240_v4, %v9137_v45  ;;  %vm9281_vm14 = vcmp.lt.s32.totalorder %v8138_v16, %v9001_v22 }
 0x37d   :  { %v3900_v30 = vrot.slane %v2565_v8, %v9137_v45  ;;  %v3802_v13 = vsel %vm9279_vm9, %v3801_v23, %v3797_v61  ;;  %vm8374_vm2 = vmand %vm9282_vm7, %vm9281_vm14  ;;  %v9283_v18 = vmov 0  ;;  %vm9286_vm4 = vcmask 786112  }
 0x37e   :  { %v9284_v18 = vsel %vm8374_vm2, 4294967295, %v9283_v18  ;;  %vm9285_vm5 = vmmov %vm9280_vm8  ;;  %v3891_v49 = vsel %vm9286_vm4, %v3890_v26, %v3886_v46  ;;  %vm9287_vm8 = vcmp.lt.s32.totalorder %v8149_v21, %v9001_v22  ;;  %vm9288_vm14 = vcmp.ge.s32.totalorder %v8149_v21, %v9000_v48 }
 0x37f   :  { %v2535_v29 = vpop.xlane.xlu0 %2534  ;;  %v3807_v55 = vsel %vm9285_vm5, %v3806_v59, %v3802_v13  ;;  %vm8391_vm7 = vmand %vm9288_vm14, %vm9287_vm8  ;;  %v9289_v16 = vmov 0  ;;  %v2739_v4 = vadd.s32 832, %v5846_v43  ;;  %vm9293_vm8 = vcmp.lt.s32.totalorder %v8160_v38, %v9001_v22 }
 0x380   :  { %v2567_v44 = vpop.xlane.xlu1 %2566  ;;  %v3826_v8 = vrot.slane %v2535_v29, %v9142_v58  ;;  %v9290_v16 = vsel %vm8391_vm7, 4294967295, %v9289_v16  ;;  %vm9291_vm5 = vmmov %vm9286_vm4  ;;  %vm9292_vm4 = vcmask 851712   ;;  %vm9294_vm14 = vcmp.ge.s32.totalorder %v8160_v38, %v9000_v48 }
 0x381   :  { %v3905_v12 = vrot.slane %v2567_v44, %v9142_v58  ;;  %v3812_v31 = vsel %vm9291_vm5, %v3811_v15, %v3807_v55  ;;  %v3896_v9 = vsel %vm9292_vm4, %v3895_v50, %v3891_v49  ;;  %vm8409_vm15 = vmand %vm9294_vm14, %vm9293_vm8  ;;  %v9295_v21 = vmov 0 }
 0x382   :  { %v9296_v21 = vsel %vm8409_vm15, 4294967295, %v9295_v21  ;;  %v3817_v1 = vsel %vm9292_vm4, %v3816_v36, %v3812_v31  ;;  %v3901_v23 = vsel %vm9297_vm13, %v3900_v30, %v3896_v9  ;;  %vm9298_vm9 = vcmp.lt.s32.totalorder %v8173_v3, %v9001_v22  ;;  %vm9302_vm14 = vmmov %vm9297_vm13 }
 0x383   :  { %v2537_v54 = vpop.xlane.xlu0 %2536  ;;  %vm9299_vm11 = vcmp.ge.s32.totalorder %v8173_v3, %v9000_v48  ;;  %v9300_v38 = vmov 0  ;;  %v3822_v0 = vsel %vm9302_vm14, %v3821_v24, %v3817_v1  ;;  %vm9303_vm4 = vcmask 982912  }
 0x384   :  { %v3831_v14 = vrot.slane %v2537_v54, %v9152_v41  ;;  %v2569_v56 = vpop.xlane.xlu1 %2568  ;;  %vm8424_vm0 = vmand %vm9299_vm11, %vm9298_vm9  ;;  %v3906_v37 = vsel %vm9303_vm4, %v3905_v12, %v3901_v23  ;;  %vm9304_vm13 = vcmp.lt.s32.totalorder %v8186_v25, %v9001_v22  ;;  %vm9305_vm5 = vcmp.ge.s32.totalorder %v8186_v25, %v9000_v48 }
 0x385   :  { %v3910_v32 = vrot.slane %v2569_v56, %v9152_v41  ;;  %v9301_v38 = vsel %vm8424_vm0, 4294967295, %v9300_v38  ;;  %vm8438_vm1 = vmand %vm9305_vm5, %vm9304_vm13  ;;  %v9306_v59 = vmov 0  ;;  %vm2887_vm11 = vcmp.ge.s32.totalorder %v8214_v10, %v9000_v48 }
 0x386   :  { %v9307_v59 = vsel %vm8438_vm1, 4294967295, %v9306_v59  ;;  %vm3017_vm9 = vcmp.lt.s32.totalorder %v8214_v10, %v9001_v22  ;;  %vm9308_vm8 = vmmov %vm9303_vm4  ;;  %vm9309_vm14 = vcmask 1048512   ;;  %vm9310_vm4 = vcmp.lt.s32.totalorder %v8199_v5, %v9001_v22 }
 0x387   :  { %v3827_v3 = vsel %vm9308_vm8, %v3826_v8, %v3822_v0  ;;  %v8447_v26 = vpop.xlane.xlu0 %2604  ;;  %v3911_v29 = vsel %vm9309_vm14, %v3910_v32, %v3906_v37  ;;  %vm9311_vm13 = vcmp.ge.s32.totalorder %v8199_v5, %v9000_v48  ;;  %v9312_v25 = vmov 0  ;;  %vm9314_vm8 = vmmov %vm9309_vm14 }
 0x388   :  { %vm8460_vm1 = vmand %vm9311_vm13, %vm9310_vm4  ;;  %v2740_v10 = vadd.s32 840, %v5846_v43  ;;  %v8465_v40 = vpop.xlane.xlu1 %2602  ;;  %4282 = vmatprep.mubr.f32.mxu1 %v3911_v29  ;;  %v3832_v63 = vsel %vm9314_vm8, %v3831_v14, %v3827_v3  ;;  %vm9315_vm14 = vcmp.lt.s32.totalorder %v8202_v20, %v9001_v22  ;;  %vm9316_vm5 = vcmp.ge.s32.totalorder %v8202_v20, %v9000_v48 }
 0x389   :  { %v9313_v25 = vsel %vm8460_vm1, 4294967295, %v9312_v25  ;;  %vm8474_vm2 = vmand %vm9316_vm5, %vm9315_vm14  ;;  %v9317_v15 = vmov 0  ;;  %v2757_v5 = vadd.s32 976, %v5846_v43  ;;  %4283 = vmatmul.mubr.f32.vlgmr.msra.gmra.mrb[40].mxu1 %v3832_v63  ;;  %v9319_v50 = vmov 0 }
 0x38a   :  { %v9318_v15 = vsel %vm8474_vm2, 4294967295, %v9317_v15  ;;  %vm8479_vm4 = vmand %vm2887_vm11, %vm3017_vm9  ;;  %v2758_v44 = vadd.s32 984, %v5846_v43  ;;  %vm2870_vm8 = vcmp.ge.s32.totalorder %v2739_v4, %v9000_v48  ;;  %vm3000_vm11 = vcmp.lt.s32.totalorder %v2739_v4, %v9001_v22 }
 0x38b   :  { %v9320_v50 = vsel %vm8479_vm4, 4294967295, %v9319_v50  ;;  %vm9321_vm13 = vmpackc.low %vm8248_vm6, %vm8226_vm10  ;;  %v2741_v20 = vadd.s32 848, %v5846_v43  ;;  %v8497_v61 = vpop.xlane.xlu0 %2572  ;;  %vm2871_vm14 = vcmp.ge.s32.totalorder %v2740_v10, %v9000_v48  ;;  %vm9326_vm1 = vnez %v9267_v62 }
 0x38c   :  { %5066 = vmatpush3.bf16.msk.msra.mxu1 %vm9321_vm13, %v9005_v51  ;;  %vm9322_vm10 = vmpackc.low %vm8288_vm12, %vm8268_vm3  ;;  %vm3001_vm13 = vcmp.lt.s32.totalorder %v2740_v10, %v9001_v22  ;;  %v8512_v39 = vpop.xlane.xlu1 %2570  ;;  %vm2888_vm3 = vcmp.ge.s32.totalorder %v2757_v5, %v9000_v48  ;;  %vm3018_vm12 = vcmp.lt.s32.totalorder %v2757_v5, %v9001_v22  ;;  %vm2889_vm9 = vcmp.ge.s32.totalorder %v2758_v44, %v9000_v48  ;;  %v9376_v5 = vld [vmem:[#allocation53_spill] sm:$0xff] }
 0x38d   :  { %5068 = vmatprep.subr.msk.bf16.mxu1 %vm9322_vm10, %v9005_v51  ;;  %vm8520_vm10 = vmand %vm2870_vm8, %vm3000_vm11  ;;  %vm3019_vm6 = vcmp.lt.s32.totalorder %v2758_v44, %v9001_v22  ;;  %vm9327_vm15 = vnez %v9262_v47  ;;  %vm2872_vm8 = vcmp.ge.s32.totalorder %v2741_v20, %v9000_v48  ;;  %vm3002_vm11 = vcmp.lt.s32.totalorder %v2741_v20, %v9001_v22  ;;  %v9377_v20 = vld [vmem:[#allocation58_spill] sm:$0xff] }
 0x38e   :  { %v9325_v6 = vsel %vm8520_vm10, 4294967295, %v9324_v6  ;;  %vm9328_vm0 = vmpackc.low %vm9326_vm1, %vm9327_vm15  ;;  %vm9331_vm2 = vnez %v9278_v52  ;;  %vm9332_vm4 = vnez %v9273_v42  ;;  %v9334_v47 = vmov 0 }
 0x38f   :  { %vm8532_vm5 = vmand %vm2871_vm14, %vm3001_vm13  ;;  %v8538_v34 = vpop.xlane.xlu0 %2574  ;;  %vm2873_vm15 = vcmp.ge.s32.totalorder %v2742_v2, %v9000_v48  ;;  %v2759_v62 = vadd.s32 992, %v5846_v43  ;;  %v9336_v30 = vmov 0  ;;  %v2760_v42 = vadd.s32 1000, %v5846_v43 }
 0x390   :  { %5070 = vmatpush3.bf16.msk.msra.mxu1 %vm9328_vm0, %v9005_v51  ;;  %v9330_v7 = vsel %vm8532_vm5, 4294967295, %v9329_v7  ;;  %vm9333_vm10 = vmpackc.low %vm9331_vm2, %vm9332_vm4  ;;  %vm3003_vm0 = vcmp.lt.s32.totalorder %v2742_v2, %v9001_v22  ;;  %v8553_v36 = vpop.xlane.xlu1 %2606  ;;  %v9338_v52 = vmov 0  ;;  %v2743_v13 = vadd.s32 864, %v5846_v43 }
 0x391   :  { %5072 = vmatprep.subr.msk.bf16.mxu1 %vm9333_vm10, %v9005_v51  ;;  %vm8546_vm7 = vmand %vm2888_vm3, %vm3018_vm12  ;;  %vm9340_vm4 = vnez %v9290_v16  ;;  %vm9341_vm14 = vnez %v9284_v18  ;;  %v9343_v46 = vmov 0  ;;  %v2744_v24 = vadd.s32 872, %v5846_v43 }
 0x392   :  { %v9335_v47 = vsel %vm8546_vm7, 4294967295, %v9334_v47  ;;  %vm8555_vm1 = vmand %vm2889_vm9, %vm3019_vm6  ;;  %vm9345_vm6 = vnez %v9301_v38  ;;  %vm9346_vm9 = vnez %v9296_v21  ;;  %v2761_v18 = vadd.s32 1008, %v5846_v43 }
 0x393   :  { %v9337_v30 = vsel %vm8555_vm1, 4294967295, %v9336_v30  ;;  %vm8560_vm2 = vmand %vm2872_vm8, %vm3002_vm11  ;;  %v8576_v12 = vpop.xlane.xlu0 %2576  ;;  %vm2890_vm11 = vcmp.ge.s32.totalorder %v2759_v62, %v9000_v48  ;;  %v2762_v49 = vadd.s32 1016, %v5846_v43  ;;  %vm2875_vm1 = vcmp.ge.s32.totalorder %v2744_v24, %v9000_v48 }
 0x394   :  { %v9339_v52 = vsel %vm8560_vm2, 4294967295, %v9338_v52  ;;  %vm9342_vm13 = vmpackc.low %vm9340_vm4, %vm9341_vm14  ;;  %v8591_v55 = vpop.xlane.xlu1 %2608  ;;  %vm2891_vm4 = vcmp.ge.s32.totalorder %v2760_v42, %v9000_v48  ;;  %vm3021_vm14 = vcmp.lt.s32.totalorder %v2760_v42, %v9001_v22  ;;  %vm3005_vm10 = vcmp.lt.s32.totalorder %v2744_v24, %v9001_v22 }
 0x395   :  { %5074 = vmatpush3.bf16.msk.msra.mxu1 %vm9342_vm13, %v9005_v51  ;;  %vm8571_vm3 = vmand %vm2873_vm15, %vm3003_vm0  ;;  %vm3020_vm15 = vcmp.lt.s32.totalorder %v2759_v62, %v9001_v22  ;;  %vm9350_vm0 = vnez %v9307_v59  ;;  %vm9354_vm13 = vnez %v9320_v50  ;;  %vm9355_vm2 = vnez %v9318_v15 }
 0x396   :  { %v9344_v46 = vsel %vm8571_vm3, 4294967295, %v9343_v46  ;;  %vm9347_vm12 = vmpackc.low %vm9345_vm6, %vm9346_vm9  ;;  %vm2874_vm6 = vcmp.ge.s32.totalorder %v2743_v13, %v9000_v48  ;;  %vm3004_vm9 = vcmp.lt.s32.totalorder %v2743_v13, %v9001_v22  ;;  %v2745_v9 = vadd.s32 880, %v5846_v43 }
 0x397   :  { %5076 = vmatprep.subr.msk.bf16.mxu1 %vm9347_vm12, %v9005_v51  ;;  %vm9349_vm12 = vnez %v9313_v25  ;;  %vm8612_vm7 = vmand %vm2890_vm11, %vm3020_vm15  ;;  %v8618_v54 = vpop.xlane.xlu0 %2578  ;;  %vm3022_vm11 = vcmp.lt.s32.totalorder %v2761_v18, %v9001_v22  ;;  %v2746_v56 = vadd.s32 888, %v5846_v43  ;;  %v3998_v15 = vrot.slane %v8447_v26, %v9080_v27 }
 0x398   :  { %vm9351_vm8 = vmpackc.low %vm9349_vm12, %vm9350_vm0  ;;  %v8632_v4 = vpop.xlane.xlu1 %2610  ;;  %vm2893_vm0 = vcmp.ge.s32.totalorder %v2762_v49, %v9000_v48  ;;  %vm3023_vm12 = vcmp.lt.s32.totalorder %v2762_v49, %v9001_v22  ;;  %v3994_v50 = vrot.slane %v8465_v40, %v9376_v5  ;;  %v3919_v44 = vrot.slane %v8497_v61, %v9080_v27 }
 0x399   :  { %5078 = vmatpush3.bf16.msk.msra.mxu1 %vm9351_vm8, %v9005_v51  ;;  %vm9356_vm3 = vmpackc.low %vm9354_vm13, %vm9355_vm2  ;;  %vm2892_vm8 = vcmp.ge.s32.totalorder %v2761_v18, %v9000_v48  ;;  %v4003_v2 = vrot.slane %v8553_v36, %v9377_v20  ;;  %v4013_v40 = vrot.slane %v8632_v4, %v9097_v28 }
 0x39a   :  { %5080 = vmatprep.subr.msk.bf16.mxu1 %vm9356_vm3, %v9005_v51  ;;  %vm8626_vm5 = vmand %vm2891_vm4, %vm3021_vm14  ;;  %vm9363_vm3 = vnez %v9330_v7  ;;  %vm9364_vm4 = vnez %v9325_v6  ;;  %v3924_v6 = vrot.slane %v8538_v34, %v9377_v20  ;;  %v9378_v7 = vld [vmem:[#allocation62_spill] sm:$0xff] }
 0x39b   :  { %vm8634_vm15 = vmand %vm2874_vm6, %vm3004_vm9  ;;  %v8656_v1 = vpop.xlane.xlu0 %2580  ;;  %v3929_v26 = vrot.slane %v8576_v12, %v9378_v7 }
 0x39c   :  { %vm8641_vm2 = vmand %vm2875_vm1, %vm3005_vm10  ;;  %vm9368_vm1 = vnez %v9337_v30  ;;  %vm9369_vm10 = vnez %v9335_v47  ;;  %v2613_v23 = vpop.xlane.xlu1 %2612  ;;  %v4008_v47 = vrot.slane %v8591_v55, %v9378_v7  ;;  %v3939_v42 = vrot.slane %v8656_v1, %v9100_v11 }
 0x39d   :  { %vm9365_vm14 = vmpackc.low %vm9363_vm3, %vm9364_vm4  ;;  %vm3006_vm3 = vcmp.lt.s32.totalorder %v2745_v9, %v9001_v22  ;;  %v4018_v36 = vrot.slane %v2613_v23, %v9100_v11 }
 0x39e   :  { %5082 = vmatpush3.bf16.msk.msra.mxu1 %vm9365_vm14, %v9005_v51  ;;  %vm8652_vm13 = vmand %vm2892_vm8, %vm3022_vm11  ;;  %vm2876_vm11 = vcmp.ge.s32.totalorder %v2745_v9, %v9000_v48  ;;  %vm9373_vm14 = vnez %v9344_v46 }
 0x39f   :  { %vm9370_vm6 = vmpackc.low %vm9368_vm1, %vm9369_vm10  ;;  %vm9374_vm1 = vnez %v9339_v52  ;;  %v2583_v32 = vpop.xlane.xlu0 %2582 }
 0x3a0   :  { %5084 = vmatprep.subr.msk.bf16.mxu1 %vm9370_vm6, %v9005_v51  ;;  %vm8664_vm9 = vmand %vm2893_vm0, %vm3023_vm12  ;;  %vm2877_vm0 = vcmp.ge.s32.totalorder %v2746_v56, %v9000_v48  ;;  %vm3007_vm12 = vcmp.lt.s32.totalorder %v2746_v56, %v9001_v22  ;;  %v2615_v38 = vpop.xlane.xlu1 %2614  ;;  %v3944_v24 = vrot.slane %v2583_v32, %v9104_v60 }
 0x3a1   :  { %vm5087_vm8 = vmpackc.low %vm8626_vm5, %vm8612_vm7  ;;  %v4023_v52 = vrot.slane %v2615_v38, %v9104_v60 }
 0x3a2   :  { %vm5089_vm4 = vmpackc.low %vm8641_vm2, %vm8634_vm15 }
 0x3a3   :  { %vm9375_vm10 = vmpackc.low %vm9373_vm14, %vm9374_vm1  ;;  %v2585_v48 = vpop.xlane.xlu0 %2584  ;;  %vm9389_vm1 = vcmask 458112  }
 0x3a4   :  { %5086 = vmatpush3.bf16.msk.msra.mxu1 %vm9375_vm10, %v9005_v51  ;;  %vm5091_vm7 = vmpackc.low %vm8664_vm9, %vm8652_vm13  ;;  %v2617_v22 = vpop.xlane.xlu1 %2616  ;;  %vm9379_vm13 = vcmask 130112   ;;  %vm9381_vm9 = vcmask 195712   ;;  %v3949_v49 = vrot.slane %v2585_v48, %v9105_v33 }
 0x3a5   :  { %5088 = vmatprep.subr.msk.bf16.mxu1 %vm5087_vm8, %v9005_v51  ;;  %vm3134_vm5 = vmand %vm2876_vm11, %vm3006_vm3  ;;  %v3999_v61 = vsel %vm9379_vm13, %v3998_v15, %v3994_v50  ;;  %vm9383_vm11 = vcmask 261312   ;;  %v4028_v12 = vrot.slane %v2617_v22, %v9105_v33 }
 0x3a6   :  { %vm3135_vm15 = vmand %vm2877_vm0, %vm3007_vm12  ;;  %v4004_v30 = vsel %vm9381_vm9, %v4003_v2, %v3999_v61  ;;  %vm9387_vm12 = vcmask 392512  }
 0x3a7   :  { %vm5093_vm2 = vmpackc.low %vm3135_vm15, %vm3134_vm5  ;;  %v2587_v0 = vpop.xlane.xlu0 %2586  ;;  %v4009_v46 = vsel %vm9383_vm11, %v4008_v47, %v4004_v30  ;;  %vm9393_vm15 = vcmask 589312  }
 0x3a8   :  { %5090 = vmatpush3.bf16.msk.msra.mxu1 %vm5089_vm4, %v9005_v51  ;;  %v2619_v37 = vpop.xlane.xlu1 %2618  ;;  %vm9380_vm6 = vmmov %vm9379_vm13  ;;  %vm9385_vm4 = vcmask 326912   ;;  %v3954_v4 = vrot.slane %v2587_v0, %v9106_v35  ;;  %vm9395_vm13 = vcmask 654912  }
 0x3a9   :  { %5092 = vmatprep.subr.msk.bf16.mxu1 %vm5091_vm7, %v9005_v51  ;;  %vm9382_vm8 = vmmov %vm9381_vm9  ;;  %v4014_v55 = vsel %vm9385_vm4, %v4013_v40, %v4009_v46  ;;  %v4033_v8 = vrot.slane %v2619_v37, %v9106_v35  ;;  %vm9391_vm7 = vcmask 523712   ;;  %vm9397_vm9 = vcmask 720512  }
 0x3aa   :  { %vm9384_vm3 = vmmov %vm9383_vm11  ;;  %v4019_v16 = vsel %vm9387_vm12, %v4018_v36, %v4014_v55  ;;  %vm9399_vm11 = vcmask 786112  }
 0x3ab   :  { %v2589_v59 = vpop.xlane.xlu0 %2588  ;;  %vm9386_vm0 = vmmov %vm9385_vm4  ;;  %v4024_v9 = vsel %vm9389_vm1, %v4023_v52, %v4019_v16  ;;  %vm9401_vm4 = vcmask 851712  }
 0x3ac   :  { %5094 = vmatpush3.bf16.msk.msra.mxu1 %vm5093_vm2, %v9005_v51  ;;  %v2621_v3 = vpop.xlane.xlu1 %2620  ;;  %v3915_v51 = vrot.slane %v8512_v39, %v9376_v5  ;;  %v3934_v39 = vrot.slane %v8618_v54, %v9097_v28  ;;  %vm9388_vm14 = vmmov %vm9387_vm12  ;;  %v3959_v14 = vrot.slane %v2589_v59, %v9110_v17  ;;  %v4029_v21 = vsel %vm9391_vm7, %v4028_v12, %v4024_v9 }
 0x3ad   :  { %v4038_v60 = vrot.slane %v2621_v3, %v9110_v17  ;;  %vm9390_vm10 = vmmov %vm9389_vm1  ;;  %v4034_v32 = vsel %vm9393_vm15, %v4033_v8, %v4029_v21  ;;  %vm9403_vm12 = vcmask 917312   ;;  %vm9405_vm1 = vcmask 982912  }
 0x3ae   :  { %v3920_v34 = vsel %vm9380_vm6, %v3919_v44, %v3915_v51  ;;  %vm9392_vm5 = vmmov %vm9391_vm7  ;;  %vm9407_vm7 = vcmask 1048512  }
 0x3af   :  { %v2591_v29 = vpop.xlane.xlu0 %2590  ;;  %v3925_v13 = vsel %vm9382_vm8, %v3924_v6, %v3920_v34  ;;  %vm9394_vm2 = vmmov %vm9393_vm15  ;;  %v4039_v0 = vsel %vm9395_vm13, %v4038_v60, %v4034_v32 }
 0x3b0   :  { %v2623_v25 = vpop.xlane.xlu1 %2622  ;;  %v3930_v18 = vsel %vm9384_vm3, %v3929_v26, %v3925_v13  ;;  %v3964_v1 = vrot.slane %v2591_v29, %v9116_v53  ;;  %vm9396_vm6 = vmmov %vm9395_vm13 }
 0x3b1   :  { %v3935_v54 = vsel %vm9386_vm0, %v3934_v39, %v3930_v18  ;;  %v4043_v56 = vrot.slane %v2623_v25, %v9116_v53  ;;  %vm9398_vm8 = vmmov %vm9397_vm9 }
 0x3b2   :  { %v3940_v31 = vsel %vm9388_vm14, %v3939_v42, %v3935_v54  ;;  %vm9400_vm3 = vmmov %vm9399_vm11 }
 0x3b3   :  { %v2593_v10 = vpop.xlane.xlu0 %2592  ;;  %v3945_v33 = vsel %vm9390_vm10, %v3944_v24, %v3940_v31  ;;  %v4044_v3 = vsel %vm9397_vm9, %v4043_v56, %v4039_v0  ;;  %vm9402_vm0 = vmmov %vm9401_vm4 }
 0x3b4   :  { %v2625_v63 = vpop.xlane.xlu1 %2624  ;;  %v3950_v35 = vsel %vm9392_vm5, %v3949_v49, %v3945_v33  ;;  %v3969_v38 = vrot.slane %v2593_v10, %v9125_v19  ;;  %vm9404_vm14 = vmmov %vm9403_vm12 }
 0x3b5   :  { %v4048_v43 = vrot.slane %v2625_v63, %v9125_v19  ;;  %v3955_v22 = vsel %vm9394_vm2, %v3954_v4, %v3950_v35  ;;  %vm9406_vm10 = vmmov %vm9405_vm1 }
 0x3b6   :  { %v3960_v59 = vsel %vm9396_vm6, %v3959_v14, %v3955_v22  ;;  %vm9408_vm5 = vmmov %vm9407_vm7 }
 0x3b7   :  { %v2595_v62 = vpop.xlane.xlu0 %2594  ;;  %v3965_v19 = vsel %vm9398_vm8, %v3964_v1, %v3960_v59  ;;  %v4049_v10 = vsel %vm9399_vm11, %v4048_v43, %v4044_v3 }
 0x3b8   :  { %v2627_v27 = vpop.xlane.xlu1 %2626  ;;  %v3974_v37 = vrot.slane %v2595_v62, %v9130_v57  ;;  %v3970_v5 = vsel %vm9400_vm3, %v3969_v38, %v3965_v19 }
 0x3b9   :  { %v4053_v48 = vrot.slane %v2627_v27, %v9130_v57  ;;  %v9409_v27 = vld [vmem:[#allocation16_spill] sm:$0xff] }
 0x3ba   :  { %v3975_v51 = vsel %vm9402_vm0, %v3974_v37, %v3970_v5 }
 0x3bb   :  { %v2597_v28 = vpop.xlane.xlu0 %2596  ;;  %v4054_v57 = vsel %vm9401_vm4, %v4053_v48, %v4049_v10 }
 0x3bc   :  { %v2629_v11 = vpop.xlane.xlu1 %2628  ;;  %v3979_v29 = vrot.slane %v2597_v28, %v9137_v45 }
 0x3bd   :  { %v4058_v53 = vrot.slane %v2629_v11, %v9137_v45 }
 0x3be   :  { %v3980_v2 = vsel %vm9404_vm14, %v3979_v29, %v3975_v51 }
 0x3bf   :  { %v2599_v23 = vpop.xlane.xlu0 %2598  ;;  %v4059_v45 = vsel %vm9403_vm12, %v4058_v53, %v4054_v57 }
 0x3c0   :  { %v2631_v17 = vpop.xlane.xlu1 %2630  ;;  %v3984_v63 = vrot.slane %v2599_v23, %v9142_v58 }
 0x3c1   :  { %v4063_v25 = vrot.slane %v2631_v17, %v9142_v58 }
 0x3c2   :  { %v3985_v58 = vsel %vm9406_vm10, %v3984_v63, %v3980_v2 }
 0x3c3   :  { %v2601_v15 = vpop.xlane.xlu0 %2600  ;;  %v4064_v6 = vsel %vm9405_vm1, %v4063_v25, %v4059_v45 }
 0x3c4   :  { %v3989_v50 = vrot.slane %v2601_v15, %v9152_v41  ;;  %v2633_v44 = vpop.xlane.xlu1 %2632 }
 0x3c5   :  { %v4068_v20 = vrot.slane %v2633_v44, %v9152_v41 }
 0x3c6   :  { %v3990_v47 = vsel %vm9408_vm5, %v3989_v50, %v3985_v58 }
 0x3c7   :  { %v4069_v7 = vsel %vm9407_vm7, %v4068_v20, %v4064_v6 }
 0x3c8   :  { %4352 = vmatprep.mubr.f32.mxu1 %v4069_v7 }
 0x3c9   :  { %4353 = vmatmul.mubr.f32.vlgmr.msra.gmra.mrb[42].mxu1 %v3990_v47 }
 0x41c   :  { %v4764_v62 = vpop.f32.mrb[38].mxu1 }
 0x41d   :  { %v4765_v26 = vpop.f32.mrb[39].mxu1 }
 0x41e   :  { %v4766_v40 = vadd.f32 %v4765_v26, %v4764_v62 }
 0x420   :  { %v4215_v61 = vadd.f32 %v4766_v40, %v9409_v27 }
 0x45c   :  { %v4799_v39 = vpop.f32.mrb[40].mxu1 }
 0x45d   :  { %v4800_v36 = vpop.f32.mrb[41].mxu1 }
 0x45e   :  { %v4801_v41 = vadd.f32 %v4800_v36, %v4799_v39 }
 0x460   :  { %v4285_v34 = vadd.f32 %v4801_v41, %v4215_v61 }
 0x49c   :  { %v4834_v30 = vpop.f32.mrb[42].mxu1 }
 0x49d   :  { %v4835_v42 = vpop.f32.mrb[43].mxu1 }
 0x49e   :  { %v4836_v52 = vadd.f32 %v4835_v42, %v4834_v30 }
 0x4a0   :  { %v4355_v13 = vadd.f32 %v4836_v52, %v4285_v34 }
 0x4a2   :  { %4358 = vst [vmem:[#allocation2] sm:$0x1] %v4355_v13 }
 0x4a3   :  { %5184 = shalt.err (!%p5181_p4)
}
 0x4a4   :  { %s5185_s6 = scalar_lea.hbm %s8784_s4, 16 }
 0x4a5   :  { %p5186_p5 = scmp.ne.s32.totalorder %s8784_s4, %s5185_s6  ;;  %p5189_p6 = scmp.lt.u32.totalorder %s5185_s6, %s8784_s4 }
 0x4a7   :  { %p5191_p7 = pnand %p5189_p6, %p5186_p5 }
 0x4a9   :  { %5194 = shalt.err (!%p5191_p7)
}
 0x4aa   :  { %4368 = dma.vmem_to_hbm [thread:$0]  %s4366_s27, 16, %s8784_s4, [#allocation3]  }
 0x4ab   :  { %5195 = dma.done.wait [#allocation3], 16  }
 0x4ac   :  { %5196 = vsyncadd [#allocation3], 4294967280 }
 0x4ad   :  { %4372 = vsyncpa [#allocation3], 1 }

</bundles_post_ra>
